<compile_context>
chip_gen: v6e
topology: v6e:2x2x1
jax: 0.10.0
libtpu: 0.0.40
codegen_flags: <defaults>
</compile_context>

<pallas_src>
import functools

import jax
import jax.numpy as jnp
from jax.experimental import pallas as pl
from jax.experimental.pallas import tpu as pltpu

INPUT_SIZE = 784
HIDDEN1 = 500
HIDDEN2 = 300
NUM_CLASSES = 10

# Lane-aligned (multiple-of-128) padded dims used inside the kernel.
H1_PAD = 512
H2_PAD = 384
OUT_PAD = 128


def mlp_relu_kernel(x_ref, w1_ref, b1_ref, w2_ref, b2_ref, w3_ref, b3_ref, o_ref):
    # fc1 + ReLU  (bf16 MXU matmul, f32 accumulation / bias / ReLU)
    h1 = jnp.dot(x_ref[...], w1_ref[...], preferred_element_type=jnp.float32)
    h1 = jnp.maximum(h1 + b1_ref[...], 0.0).astype(jnp.bfloat16)
    # fc2 + ReLU
    h2 = jnp.dot(h1, w2_ref[...], preferred_element_type=jnp.float32)
    h2 = jnp.maximum(h2 + b2_ref[...], 0.0).astype(jnp.bfloat16)
    # fc3 (logits, no activation)
    out = jnp.dot(h2, w3_ref[...], preferred_element_type=jnp.float32)
    o_ref[...] = (out + b3_ref[...]).astype(o_ref.dtype)


@functools.partial(jax.jit, static_argnames=("bm",))
def _mlp_forward_padded(xb, w1, b1, w2, b2, w3, b3, *, bm):
    Bp = xb.shape[0]
    grid = (Bp // bm,)
    resident = lambda shape: pl.BlockSpec(shape, lambda i: (0,) * len(shape))
    return pl.pallas_call(
        mlp_relu_kernel,
        out_shape=jax.ShapeDtypeStruct((Bp, OUT_PAD), jnp.float32),
        grid_spec=pltpu.PrefetchScalarGridSpec(
            num_scalar_prefetch=0,
            grid=grid,
            in_specs=[
                pl.BlockSpec((bm, INPUT_SIZE), lambda i: (i, 0)),  # x tile (bf16)
                resident((INPUT_SIZE, H1_PAD)),  # w1 (bf16, VMEM-resident)
                resident((1, H1_PAD)),           # b1 (f32)
                resident((H1_PAD, H2_PAD)),      # w2
                resident((1, H2_PAD)),           # b2
                resident((H2_PAD, OUT_PAD)),     # w3
                resident((1, OUT_PAD)),          # b3
            ],
            out_specs=pl.BlockSpec((bm, OUT_PAD), lambda i: (i, 0)),
        ),
        compiler_params=pltpu.CompilerParams(
            dimension_semantics=("parallel",),
        ),
    )(xb, w1, b1, w2, b2, w3, b3)


def prepare_params(w1, b1, w2, b2, w3, b3):
    """Zero-pad to lane multiples and cast weights to bf16 (done once, outside the kernel)."""
    def pad2(a, rows, cols):
        return jnp.pad(a, ((0, rows - a.shape[0]), (0, cols - a.shape[1])))

    w1p = pad2(w1, INPUT_SIZE, H1_PAD).astype(jnp.bfloat16)
    b1p = pad2(b1, 1, H1_PAD).astype(jnp.float32)
    w2p = pad2(w2, H1_PAD, H2_PAD).astype(jnp.bfloat16)
    b2p = pad2(b2, 1, H2_PAD).astype(jnp.float32)
    w3p = pad2(w3, H2_PAD, OUT_PAD).astype(jnp.bfloat16)
    b3p = pad2(b3, 1, OUT_PAD).astype(jnp.float32)
    return w1p, b1p, w2p, b2p, w3p, b3p


def neural_net_relu(x, w1p, b1p, w2p, b2p, w3p, b3p, *, bm=128):
    """x: [B, 784] f32/bf16. Params must come from prepare_params. Returns [B, 10] f32."""
    B = x.shape[0]
    # Don't use a batch tile larger than needed for tiny batches (sublane min is 8).
    bm = max(8, min(bm, ((B + 7) // 8) * 8))
    Bp = ((B + bm - 1) // bm) * bm
    xb = x.astype(jnp.bfloat16)
    if Bp != B:  # pad batch to a tile multiple; padded rows are discarded below
        xb = jnp.pad(xb, ((0, Bp - B), (0, 0)))
    out = _mlp_forward_padded(xb, w1p, b1p, w2p, b2p, w3p, b3p, bm=bm)
    return out[:B, :NUM_CLASSES]


def init_linear_params(key, fan_in, fan_out):
    # Matches PyTorch nn.Linear default init: U(-1/sqrt(fan_in), +1/sqrt(fan_in)).
    kw, kb = jax.random.split(key)
    bound = 1.0 / jnp.sqrt(float(fan_in))
    # Stored as [in, out] (transposed vs torch's [out, in]) so y = x @ W + b.
    w = jax.random.uniform(kw, (fan_in, fan_out), jnp.float32, -bound, bound)
    b = jax.random.uniform(kb, (1, fan_out), jnp.float32, -bound, bound)
    return w, b


if __name__ == "__main__":
    key = jax.random.PRNGKey(0)
    kx, k1, k2, k3 = jax.random.split(key, 4)

    batch = 256  # grid of 2 "parallel" steps at bm=128 -> both v7x TensorCores busy
    x = jax.random.normal(kx, (batch, INPUT_SIZE), jnp.float32)

    w1, b1 = init_linear_params(k1, INPUT_SIZE, HIDDEN1)
    w2, b2 = init_linear_params(k2, HIDDEN1, HIDDEN2)
    w3, b3 = init_linear_params(k3, HIDDEN2, NUM_CLASSES)

    params = prepare_params(w1, b1, w2, b2, w3, b3)
    out = neural_net_relu(x, *params, bm=128)
    out = jax.block_until_ready(out)

    # Pure-JAX reference mirroring the kernel's bf16 operands / f32 accumulation.
    rnd = lambda a: a.astype(jnp.bfloat16).astype(jnp.float32)
    h1 = jnp.maximum(rnd(x) @ rnd(w1) + b1, 0.0)
    h2 = jnp.maximum(rnd(h1) @ rnd(w2) + b2, 0.0)
    ref = rnd(h2) @ rnd(w3) + b3

    assert out.shape == (batch, NUM_CLASSES)
    assert jnp.allclose(out, ref, atol=1e-2, rtol=1e-2)

    print("KERNEL_OK")
</pallas_src>

<mosaic_0001>
module attributes {stable_mosaic.version = 11 : i64} {
  func.func @mlp_relu_kernel(%arg0: i32, %arg1: memref<128x784xbf16, #tpu.memory_space<vmem>>, %arg2: memref<784x512xbf16, #tpu.memory_space<vmem>>, %arg3: memref<1x512xf32, #tpu.memory_space<vmem>>, %arg4: memref<512x384xbf16, #tpu.memory_space<vmem>>, %arg5: memref<1x384xf32, #tpu.memory_space<vmem>>, %arg6: memref<384x128xbf16, #tpu.memory_space<vmem>>, %arg7: memref<1x128xf32, #tpu.memory_space<vmem>>, %arg8: memref<128x128xf32, #tpu.memory_space<vmem>>) attributes {dimension_semantics = [#tpu.dimension_semantics<parallel>], iteration_bounds = array<i64: 2>, scalar_prefetch = 0 : i64, scratch_operands = 0 : i64, tpu.core_type = #tpu.core_type<tc>, window_params = [{transform_indices = @transform_0, window_bounds = array<i64: 128, 784>}, {pipeline_mode = #tpu.pipeline_mode<synchronous>, transform_indices = @transform_1, window_bounds = array<i64: 784, 512>}, {pipeline_mode = #tpu.pipeline_mode<synchronous>, transform_indices = @transform_2, window_bounds = array<i64: 1, 512>}, {pipeline_mode = #tpu.pipeline_mode<synchronous>, transform_indices = @transform_3, window_bounds = array<i64: 512, 384>}, {pipeline_mode = #tpu.pipeline_mode<synchronous>, transform_indices = @transform_4, window_bounds = array<i64: 1, 384>}, {pipeline_mode = #tpu.pipeline_mode<synchronous>, transform_indices = @transform_5, window_bounds = array<i64: 384, 128>}, {pipeline_mode = #tpu.pipeline_mode<synchronous>, transform_indices = @transform_6, window_bounds = array<i64: 1, 128>}, {transform_indices = @transform_7, window_bounds = array<i64: 128, 128>}]} {
    %c0 = arith.constant 0 : index
    %c0_0 = arith.constant 0 : index
    %0 = vector.load %arg1[%c0, %c0_0] : memref<128x784xbf16, #tpu.memory_space<vmem>>, vector<128x784xbf16>
    %c0_1 = arith.constant 0 : index
    %c0_2 = arith.constant 0 : index
    %1 = vector.load %arg2[%c0_1, %c0_2] : memref<784x512xbf16, #tpu.memory_space<vmem>>, vector<784x512xbf16>
    %cst = arith.constant dense<0.000000e+00> : vector<128x512xf32>
    %2 = tpu.matmul %0, %1, %cst {dimension_numbers = #tpu.dot_dimension_numbers<[1], [0], [0], [1], [0, 0, 1, 1], [], []>} : vector<128x784xbf16>, vector<784x512xbf16>, vector<128x512xf32> -> vector<128x512xf32>
    %c0_3 = arith.constant 0 : index
    %c0_4 = arith.constant 0 : index
    %3 = vector.load %arg3[%c0_3, %c0_4] : memref<1x512xf32, #tpu.memory_space<vmem>>, vector<1x512xf32>
    %4 = vector.broadcast %3 : vector<1x512xf32> to vector<128x512xf32>
    %5 = arith.addf %2, %4 : vector<128x512xf32>
    %cst_5 = arith.constant 0.000000e+00 : f32
    %6 = vector.broadcast %cst_5 : f32 to vector<128x512xf32>
    %7 = arith.maximumf %5, %6 : vector<128x512xf32>
    %8 = arith.truncf %7 : vector<128x512xf32> to vector<128x512xbf16>
    %c0_6 = arith.constant 0 : index
    %c0_7 = arith.constant 0 : index
    %9 = vector.load %arg4[%c0_6, %c0_7] : memref<512x384xbf16, #tpu.memory_space<vmem>>, vector<512x384xbf16>
    %cst_8 = arith.constant dense<0.000000e+00> : vector<128x384xf32>
    %10 = tpu.matmul %8, %9, %cst_8 {dimension_numbers = #tpu.dot_dimension_numbers<[1], [0], [0], [1], [0, 0, 1, 1], [], []>} : vector<128x512xbf16>, vector<512x384xbf16>, vector<128x384xf32> -> vector<128x384xf32>
    %c0_9 = arith.constant 0 : index
    %c0_10 = arith.constant 0 : index
    %11 = vector.load %arg5[%c0_9, %c0_10] : memref<1x384xf32, #tpu.memory_space<vmem>>, vector<1x384xf32>
    %12 = vector.broadcast %11 : vector<1x384xf32> to vector<128x384xf32>
    %13 = arith.addf %10, %12 : vector<128x384xf32>
    %cst_11 = arith.constant 0.000000e+00 : f32
    %14 = vector.broadcast %cst_11 : f32 to vector<128x384xf32>
    %15 = arith.maximumf %13, %14 : vector<128x384xf32>
    %16 = arith.truncf %15 : vector<128x384xf32> to vector<128x384xbf16>
    %c0_12 = arith.constant 0 : index
    %c0_13 = arith.constant 0 : index
    %17 = vector.load %arg6[%c0_12, %c0_13] : memref<384x128xbf16, #tpu.memory_space<vmem>>, vector<384x128xbf16>
    %cst_14 = arith.constant dense<0.000000e+00> : vector<128x128xf32>
    %18 = tpu.matmul %16, %17, %cst_14 {dimension_numbers = #tpu.dot_dimension_numbers<[1], [0], [0], [1], [0, 0, 1, 1], [], []>} : vector<128x384xbf16>, vector<384x128xbf16>, vector<128x128xf32> -> vector<128x128xf32>
    %c0_15 = arith.constant 0 : index
    %c0_16 = arith.constant 0 : index
    %19 = vector.load %arg7[%c0_15, %c0_16] : memref<1x128xf32, #tpu.memory_space<vmem>>, vector<1x128xf32>
    %20 = vector.broadcast %19 : vector<1x128xf32> to vector<128x128xf32>
    %21 = arith.addf %18, %20 : vector<128x128xf32>
    %c0_17 = arith.constant 0 : index
    %c0_18 = arith.constant 0 : index
    %22 = vector.load %arg8[%c0_17, %c0_18] : memref<128x128xf32, #tpu.memory_space<vmem>>, vector<128x128xf32>
    tpu.vector_store %arg8[%c0_17, %c0_18], %21 {strides = array<i32>} : memref<128x128xf32, #tpu.memory_space<vmem>>, vector<128x128xf32>,
    return
  }
  func.func @transform_0(%arg0: i32) -> (i32, i32) {
    %c0_i32 = arith.constant 0 : i32
    %c0_i32_0 = arith.constant 0 : i32
    return %arg0, %c0_i32 : i32, i32
  }
  func.func @transform_1(%arg0: i32) -> (i32, i32) {
    %c0_i32 = arith.constant 0 : i32
    %c0_i32_0 = arith.constant 0 : i32
    %c0_i32_1 = arith.constant 0 : i32
    return %c0_i32, %c0_i32_0 : i32, i32
  }
  func.func @transform_2(%arg0: i32) -> (i32, i32) {
    %c0_i32 = arith.constant 0 : i32
    %c0_i32_0 = arith.constant 0 : i32
    %c0_i32_1 = arith.constant 0 : i32
    return %c0_i32, %c0_i32_0 : i32, i32
  }
  func.func @transform_3(%arg0: i32) -> (i32, i32) {
    %c0_i32 = arith.constant 0 : i32
    %c0_i32_0 = arith.constant 0 : i32
    %c0_i32_1 = arith.constant 0 : i32
    return %c0_i32, %c0_i32_0 : i32, i32
  }
  func.func @transform_4(%arg0: i32) -> (i32, i32) {
    %c0_i32 = arith.constant 0 : i32
    %c0_i32_0 = arith.constant 0 : i32
    %c0_i32_1 = arith.constant 0 : i32
    return %c0_i32, %c0_i32_0 : i32, i32
  }
  func.func @transform_5(%arg0: i32) -> (i32, i32) {
    %c0_i32 = arith.constant 0 : i32
    %c0_i32_0 = arith.constant 0 : i32
    %c0_i32_1 = arith.constant 0 : i32
    return %c0_i32, %c0_i32_0 : i32, i32
  }
  func.func @transform_6(%arg0: i32) -> (i32, i32) {
    %c0_i32 = arith.constant 0 : i32
    %c0_i32_0 = arith.constant 0 : i32
    %c0_i32_1 = arith.constant 0 : i32
    return %c0_i32, %c0_i32_0 : i32, i32
  }
  func.func @transform_7(%arg0: i32) -> (i32, i32) {
    %c0_i32 = arith.constant 0 : i32
    %c0_i32_0 = arith.constant 0 : i32
    return %arg0, %c0_i32 : i32, i32
  }
}

</mosaic_0001>

<bundles_post_ra>
// kernel: _mlp_forward_padded.1
= control target key start
LH: loop header
LB: loop body
LE: loop exit
PB: predicated region body
PF: predicated region fallthrough
CT: control target
= control target key end

     0   :  { %12 = vsyncpa [#allocation3], 0  ;;  %s7672_s0 = inlined_call_operand.vmem [shape: bf16[256,784], index: 0, kind: input, shape index: {}]   ;;  %s7673_s1 = inlined_call_operand.vmem [shape: bf16[784,512], index: 1, kind: input, shape index: {}]   ;;  %s7674_s2 = inlined_call_operand.vmem [shape: f32[1,512], index: 2, kind: input, shape index: {}]   ;;  %s7675_s3 = inlined_call_operand.hbm [shape: bf16[512,384], index: 3, kind: input, shape index: {}]   ;;  %s7676_s4 = inlined_call_operand.vmem [shape: f32[1,384], index: 4, kind: input, shape index: {}]   ;;  %s7677_s5 = inlined_call_operand.hbm [shape: bf16[384,128], index: 5, kind: input, shape index: {}]   ;;  %s7678_s6 = inlined_call_operand.vmem [shape: f32[1,128], index: 6, kind: input, shape index: {}]   ;;  %s7679_s7 = inlined_call_operand.hbm [shape: f32[256,128], index: 7, kind: output, shape index: {}]  }
   0x1   :  { %13 = vsyncpa [#allocation6], 0 }
   0x2   :  { %14 = vsyncpa [#allocation4], 0 }
   0x3   :  { %16 = vsyncpa [#allocation4 + $0x1], 0  ;;  %s5994_s24 = smov 0   ;;  %s5996_s25 = smov 0  }
   0x4   :  { %s5998_s26 = smov 0   ;;  %s6000_s27 = smov 0  }
   0x5 LB: > { %s6015_s28 = sadd.s32 4294967295, %s5942_s27   ;;  %s4537_s29 = sadd.s32 4294967294, %s5942_s27   ;;  %s5942_s27 = sphi %s6000_s27, %s7733_s27   ;;  %s5938_s26 = sphi %s5998_s26, %s7732_s26   ;;  %s5934_s25 = sphi %s5996_s25, %s7731_s25   ;;  %s5930_s24 = sphi %s5994_s24, %s7730_s24  }
   0x6   : > { %s6019_s30 = sadd.s32 1, %s5942_s27   ;;  %s181_s8 = sadd.s32 1, %s5938_s26 }
   0x7   : > { %s178_s9 = ssub.s32 %s5942_s27, %s6019_s30  ;;  %p191_p0 = scmp.ne.s32.totalorder %s5938_s26, %s5934_s25 }
   0x8   : > { %p179_p1 = scmp.eq.s32.totalorder %s178_s9, 0  ;;  %p192_p2 = scmp.eq.s32.totalorder %s6015_s28, 1 }
   0x9   : > { %p197_p3 = scmp.ne.s32.totalorder %s5934_s25, %s5930_s24  ;;  %p198_p4 = scmp.eq.s32.totalorder %s4537_s29, 1 }
   0xa   : > { %s6030_s10 = scalar_select %p179_p1, %s5938_s26, %s181_s8  }
   0xb   : > { %p6032_p5 = por %p192_p2, %p191_p0  ;;  %p6036_p6 = por %p198_p4, %p197_p3 }
   0xc   : > { %p4538_p7 = scmp.ge.s32.totalorder %s5942_s27, 1  ;;  %p205_p8 = scmp.lt.s32.totalorder %s5942_s27, 3 }
   0xd   : > { %s7690_s12 = scalar_select %p6036_p6, 1, 0 }
   0xe   : > { %p7680_p9 = scmp.eq.s32.totalorder %s6015_s28, 0  ;;  %p6043_p10 = pnand %p4538_p7, %p205_p8 }
   0xf   : > { %s5944_s14 = smov [#allocation2]   ;;  %s5945_s17 = smov [#allocation5]  }
  0x10   : > { %s223_s15 = sshll.u32 %s5944_s14, 4  ;;  %p5194_p11 = pneg %p6043_p10  ;;  %s224_s15 = int_to_ptr.vmem [resolvable:$true] %s223_s15 }
  0x11   : > { %s239_s18 = sshll.u32 %s5945_s17, 4  ;;  %s5833_s19 = scalar_lea.vmem %s224_s15, 12288  ;;  %s240_s18 = int_to_ptr.vmem [resolvable:$true] %s239_s18 }
  0x12   : > { %p6051_p12 = pnand %p7680_p9, %p5194_p11  ;;  %p5834_p0 = scmp.ne.s32.totalorder %s224_s15, %s5833_s19 }
  0x13   : > { %p5841_p3 = scmp.lt.s32.totalorder %s224_s15, %s224_s15  ;;  %p5842_p4 = scmp.lt.s32.totalorder %s5833_s19, %s5833_s19 }
  0x14   : > { %p5824_p13 = pneg %p6051_p12 }
  0x15   : > { %p5843_p7 = por %p5842_p4, %p5841_p3 }
  0x16   : > { %p5836_p1 = pnand %p5834_p0, %p5824_p13 }
  0x18   : > { %p5837_p2 = pneg %p5836_p1 }
  0x1a   : > { %p5844_p8 = pnand %p5843_p7, %p5837_p2 }
  0x1c   : > { %5847 = shalt.err (!%p5844_p8)
}
  0x1d   : > { %s5946_s20 = smov 192   ;;  %s5947_s21 = smov 12  }
  0x1e   : > { %5197 = dma.hbm_to_vmem [thread:$0]  (!%p6051_p12), %s7675_s3, 12288, %s224_s15, [#allocation3], %s5946_s20, %s5946_s20, %s5947_s21  }
  0x1f   : > { %s5859_s29 = scalar_lea.vmem %s240_s18, 3072  ;;  %p5867_p9 = scmp.lt.s32.totalorder %s240_s18, %s240_s18 }
  0x20   : > { %p5860_p11 = scmp.ne.s32.totalorder %s240_s18, %s5859_s29  ;;  %p5868_p6 = scmp.lt.s32.totalorder %s5859_s29, %s5859_s29 }
  0x22   : > { %p5862_p0 = pnand %p5860_p11, %p5824_p13  ;;  %p5869_p3 = por %p5868_p6, %p5867_p9 }
  0x24   : > { %p5863_p1 = pneg %p5862_p0 }
  0x26   : > { %p5870_p2 = pnand %p5869_p3, %p5863_p1 }
  0x28   : > { %5873 = shalt.err (!%p5870_p2)
}
  0x29   : > { %s5948_s8 = smov 64   ;;  %s5949_s9 = smov 4  }
  0x2a   : > { %5200 = dma.hbm_to_vmem [thread:$0]  (!%p6051_p12), %s7677_s5, 3072, %s240_s18, [#allocation6], %s5948_s8, %s5948_s8, %s5949_s9  }
  0x2b   : > { %268 = sbr.rel (%p6043_p10) target bundleno = 1061 (0x425), region = 48 }
  0x30   : > { %p7693_p4 = scmp.eq.s32.totalorder %s6015_s28, 0 }
  0x32   : > { %5917 = dma.done.wait (%p7693_p4), [#allocation3], 12288   ;;  %p7694_p13 = pmov %p7693_p4 }
  0x33   : > { %p7695_p6 = pmov %p7693_p4 }
  0x34   : > { %5919 = vsyncadd (%p7694_p13), [#allocation3], 4294955008 }
  0x35   : > { %5921 = dma.done.wait (%p7695_p6), [#allocation6], 3072   ;;  %p7696_p9 = pmov %p7693_p4 }
  0x36   : > { %v5251_v0 = vld [vmem:[%s7673_s1 + $0xe4] ss:$16 sps:$4 sm:$0xff]   ;;  %v5255_v2 = vld [vmem:[%s7673_s1 + $0xe0] ss:$16 sps:$4 sm:$0xff]   ;;  %s4546_s13 = sshll.u32 %s6015_s28, 4  ;;  %vm1856_vm0 = vcmask 130048  }
  0x37   : > { %5923 = vsyncadd (%p7696_p9), [#allocation6], 4294964224  ;;  %v5253_v1 = vld [vmem:[%s7673_s1 + $0x2e4] ss:$16 sps:$4 sm:$0xff]   ;;  %1881 = vmatprep.subr.bf16.mxu0 %v5251_v0  ;;  %v5256_v3 = vld [vmem:[%s7673_s1 + $0x2e0] ss:$16 sps:$4 sm:$0xff]  }
  0x38   : > { %1994 = vmatprep.subr.bf16.mxu1 %v5253_v1  ;;  %v5257_v4 = vld [vmem:[%s7673_s1 + $0xc4] ss:$16 sps:$4 sm:$0xff]   ;;  %1882 = vmatpush1.bf16.msra.mxu0 %v5255_v2  ;;  %v5261_v6 = vld [vmem:[%s7673_s1 + $0xc0] ss:$16 sps:$4 sm:$0xff]   ;;  %p306_p10 = scmp.lt.s32.totalorder %s4546_s13, 31  ;;  %s302_s21 = sand.u32 1, %s5934_s25  }
  0x39   : > { %1995 = vmatpush1.bf16.msra.mxu1 %v5256_v3  ;;  %v5259_v5 = vld [vmem:[%s7673_s1 + $0x2c4] ss:$16 sps:$4 sm:$0xff]   ;;  %1883 = vmatprep.subr.bf16.mxu0 %v5257_v4  ;;  %v5262_v7 = vld [vmem:[%s7673_s1 + $0x2c0] ss:$16 sps:$4 sm:$0xff]   ;;  %s4545_s22 = sshll.u32 %s302_s21, 7  ;;  %s5951_s19 = smov [#allocation7]  }
  0x3a   : > { %1996 = vmatprep.subr.bf16.mxu1 %v5259_v5  ;;  %v5263_v8 = vld [vmem:[%s7673_s1 + $0xa4] ss:$16 sps:$4 sm:$0xff]   ;;  %v5267_v10 = vld [vmem:[%s7673_s1 + $0xa0] ss:$16 sps:$4 sm:$0xff]   ;;  %s7735_s13 = smov (!%p306_p10, %s4546_s13), 31  ;;  %s7589_s29 = scalar_lea.vmem [#allocation7], %s4545_s22 }
  0x3b   : > { %v5265_v9 = vld [vmem:[%s7673_s1 + $0x2a4] ss:$16 sps:$4 sm:$0xff]   ;;  %v5268_v11 = vld [vmem:[%s7673_s1 + $0x2a0] ss:$16 sps:$4 sm:$0xff]   ;;  %s5183_s15 = smul.u32 28, %s7735_s13  ;;  %s4942_s13 = sshll.u32 %s6015_s28, 11 }
  0x3c   : > { %1884 = vmatpush1.bf16.msra.mxu0 %v5261_v6  ;;  %v5269_v12 = vld [vmem:[%s7673_s1 + $0x84] ss:$16 sps:$4 sm:$0xff]   ;;  %v5273_v14 = vld [vmem:[%s7673_s1 + $0x80] ss:$16 sps:$4 sm:$0xff]   ;;  %s4453_s8 = sshll.u32 %s7589_s29, 4  ;;  %s7624_s16 = scalar_lea.hbm %s7679_s7, %s4942_s13  ;;  %s7626_s8 = int_to_ptr.vmem [resolvable:$true] %s4453_s8 }
  0x3d   : > { %1997 = vmatpush1.bf16.msra.mxu1 %v5262_v7  ;;  %1885 = vmatprep.subr.bf16.mxu0 %v5263_v8  ;;  %v5271_v13 = vld [vmem:[%s7673_s1 + $0x284] ss:$16 sps:$4 sm:$0xff]   ;;  %v5274_v15 = vld [vmem:[%s7673_s1 + $0x280] ss:$16 sps:$4 sm:$0xff]   ;;  %s6222_s9 = scalar_lea.vmem %s7672_s0, %s5183_s15  ;;  %s7632_s28 = scalar_lea.sflag [#allocation4], %s302_s21 }
  0x3e   : > { %1998 = vmatprep.subr.bf16.mxu1 %v5265_v9  ;;  %v5275_v16 = vld [vmem:[%s7673_s1 + $0x64] ss:$16 sps:$4 sm:$0xff]   ;;  %v5279_v18 = vld [vmem:[%s7673_s1 + $0x60] ss:$16 sps:$4 sm:$0xff]   ;;  %v5352_v51 = vld [vmem:[%s6222_s9 + $0xc] ss:$28 sps:$4 sm:$0xff]  }
  0x3f   : > { %v5277_v17 = vld [vmem:[%s7673_s1 + $0x264] ss:$16 sps:$4 sm:$0xff]   ;;  %v5280_v19 = vld [vmem:[%s7673_s1 + $0x260] ss:$16 sps:$4 sm:$0xff]   ;;  %2026 = vmatprep.mubr.bf16.mxu1 %v5352_v51  ;;  %v5362_v9 = vld [vmem:[%s6222_s9 + $0x3c] ss:$28 sps:$4 sm:$0xff]  }
  0x40   : > { %1886 = vmatpush1.bf16.msra.mxu0 %v5267_v10  ;;  %v5281_v20 = vld [vmem:[%s7673_s1 + $0x44] ss:$16 sps:$4 sm:$0xff]   ;;  %v5285_v22 = vld [vmem:[%s7673_s1 + $0x40] ss:$16 sps:$4 sm:$0xff]   ;;  %v5424_v51 = vld [vmem:[%s6222_s9 + $0x15c] ss:$28 sps:$4 sm:$0xff]  }
  0x41   : > { %1999 = vmatpush1.bf16.msra.mxu1 %v5268_v11  ;;  %1887 = vmatprep.subr.bf16.mxu0 %v5269_v12  ;;  %v5283_v21 = vld [vmem:[%s7673_s1 + $0x244] ss:$16 sps:$4 sm:$0xff]   ;;  %v5286_v23 = vld [vmem:[%s7673_s1 + $0x240] ss:$16 sps:$4 sm:$0xff]   ;;  %s5874_s18 = scalar_lea.vmem %s7626_s8, 2048 }
  0x42   : > { %2000 = vmatprep.subr.bf16.mxu1 %v5271_v13  ;;  %v5287_v24 = vld [vmem:[%s7673_s1 + $0x24] ss:$16 sps:$4 sm:$0xff]   ;;  %v5291_v26 = vld [vmem:[%s7673_s1 + $0x20] ss:$16 sps:$4 sm:$0xff]   ;;  %p5875_p12 = scmp.ne.s32.totalorder %s7626_s8, %s5874_s18 }
  0x43   : > { %v5289_v25 = vld [vmem:[%s7673_s1 + $0x224] ss:$16 sps:$4 sm:$0xff]   ;;  %v5292_v27 = vld [vmem:[%s7673_s1 + $0x220] ss:$16 sps:$4 sm:$0xff]  }
  0x44   : > { %1888 = vmatpush1.bf16.msra.mxu0 %v5273_v14  ;;  %v5293_v28 = vld [vmem:[%s7673_s1 + $0x4] ss:$16 sps:$4 sm:$0xff]   ;;  %v5297_v30 = vld [vmem:[%s7673_s1] ss:$16 sps:$4 sm:$0xff]   ;;  %p5876_p7 = pnand %p5875_p12, %p6032_p5 }
  0x45   : > { %2001 = vmatpush1.bf16.msra.mxu1 %v5274_v15  ;;  %1889 = vmatprep.subr.bf16.mxu0 %v5275_v16  ;;  %v5295_v29 = vld [vmem:[%s7673_s1 + $0x204] ss:$16 sps:$4 sm:$0xff]   ;;  %v5298_v31 = vld [vmem:[%s7673_s1 + $0x200] ss:$16 sps:$4 sm:$0xff]  }
  0x46   : > { %2002 = vmatprep.subr.bf16.mxu1 %v5277_v17  ;;  %v5299_v32 = vld [vmem:[%s7673_s1 + $0x1e4] ss:$16 sps:$4 sm:$0xff]   ;;  %v5303_v34 = vld [vmem:[%s7673_s1 + $0x1e0] ss:$16 sps:$4 sm:$0xff]   ;;  %p5877_p8 = pneg %p5876_p7 }
  0x47   : > { %v5301_v33 = vld [vmem:[%s7673_s1 + $0x3e4] ss:$16 sps:$4 sm:$0xff]   ;;  %v5304_v35 = vld [vmem:[%s7673_s1 + $0x3e0] ss:$16 sps:$4 sm:$0xff]  }
  0x48   : > { %1890 = vmatpush1.bf16.msra.mxu0 %v5279_v18  ;;  %v5305_v36 = vld [vmem:[%s7673_s1 + $0x1c4] ss:$16 sps:$4 sm:$0xff]   ;;  %v5309_v38 = vld [vmem:[%s7673_s1 + $0x1c0] ss:$16 sps:$4 sm:$0xff]   ;;  %v5376_v18 = vld [vmem:[%s6222_s9 + $0x7c] ss:$28 sps:$4 sm:$0xff]  }
  0x49   : > { %2003 = vmatpush1.bf16.msra.mxu1 %v5280_v19  ;;  %1891 = vmatprep.subr.bf16.mxu0 %v5281_v20  ;;  %v5307_v37 = vld [vmem:[%s7673_s1 + $0x3c4] ss:$16 sps:$4 sm:$0xff]   ;;  %v5310_v39 = vld [vmem:[%s7673_s1 + $0x3c0] ss:$16 sps:$4 sm:$0xff]  }
  0x4a   : > { %2004 = vmatprep.subr.bf16.mxu1 %v5283_v21  ;;  %v5311_v40 = vld [vmem:[%s7673_s1 + $0x1a4] ss:$16 sps:$4 sm:$0xff]   ;;  %v5315_v42 = vld [vmem:[%s7673_s1 + $0x1a0] ss:$16 sps:$4 sm:$0xff]  }
  0x4b   : > { %v5313_v41 = vld [vmem:[%s7673_s1 + $0x3a4] ss:$16 sps:$4 sm:$0xff]   ;;  %v5316_v43 = vld [vmem:[%s7673_s1 + $0x3a0] ss:$16 sps:$4 sm:$0xff]  }
  0x4c   : > { %1892 = vmatpush1.bf16.msra.mxu0 %v5285_v22  ;;  %v5317_v44 = vld [vmem:[%s7673_s1 + $0x184] ss:$16 sps:$4 sm:$0xff]   ;;  %v5321_v46 = vld [vmem:[%s7673_s1 + $0x180] ss:$16 sps:$4 sm:$0xff]  }
  0x4d   : > { %2005 = vmatpush1.bf16.msra.mxu1 %v5286_v23  ;;  %1893 = vmatprep.subr.bf16.mxu0 %v5287_v24  ;;  %v5319_v45 = vld [vmem:[%s7673_s1 + $0x384] ss:$16 sps:$4 sm:$0xff]   ;;  %v5322_v47 = vld [vmem:[%s7673_s1 + $0x380] ss:$16 sps:$4 sm:$0xff]  }
  0x4e   : > { %2006 = vmatprep.subr.bf16.mxu1 %v5289_v25  ;;  %v5323_v48 = vld [vmem:[%s7673_s1 + $0x164] ss:$16 sps:$4 sm:$0xff]   ;;  %v5327_v52 = vld [vmem:[%s7673_s1 + $0x160] ss:$16 sps:$4 sm:$0xff]   ;;  %v5386_v25 = vld [vmem:[%s6222_s9 + $0xac] ss:$28 sps:$4 sm:$0xff]  }
  0x4f   : > { %v5349_v49 = vld [vmem:[%s6222_s9 + $0x4] ss:$28 sps:$4 sm:$0xff]   ;;  %v5366_v13 = vld [vmem:[%s6222_s9 + $0x38] ss:$28 sps:$4 sm:$0xff]   ;;  %v5378_v21 = vld [vmem:[%s6222_s9 + $0x70] ss:$28 sps:$4 sm:$0xff]  }
  0x50   : > { %1894 = vmatpush1.bf16.msra.mxu0 %v5291_v26  ;;  %v5325_v50 = vld [vmem:[%s7673_s1 + $0x364] ss:$16 sps:$4 sm:$0xff]   ;;  %1913 = vmatprep.mubr.bf16.mxu0 %v5349_v49  ;;  %v5328_v53 = vld [vmem:[%s7673_s1 + $0x360] ss:$16 sps:$4 sm:$0xff]  }
  0x51   : > { %2007 = vmatpush1.bf16.msra.mxu1 %v5292_v27  ;;  %1895 = vmatprep.subr.bf16.mxu0 %v5293_v28  ;;  %v5329_v54 = vld [vmem:[%s7673_s1 + $0x144] ss:$16 sps:$4 sm:$0xff]   ;;  %v5333_v56 = vld [vmem:[%s7673_s1 + $0x140] ss:$16 sps:$4 sm:$0xff]  }
  0x52   : > { %2008 = vmatprep.subr.bf16.mxu1 %v5295_v29  ;;  %v5331_v55 = vld [vmem:[%s7673_s1 + $0x344] ss:$16 sps:$4 sm:$0xff]   ;;  %v5334_v57 = vld [vmem:[%s7673_s1 + $0x340] ss:$16 sps:$4 sm:$0xff]  }
  0x53   : > { %v5335_v58 = vld [vmem:[%s7673_s1 + $0x124] ss:$16 sps:$4 sm:$0xff]   ;;  %v5339_v60 = vld [vmem:[%s7673_s1 + $0x120] ss:$16 sps:$4 sm:$0xff]  }
  0x54   : > { %1896 = vmatpush1.bf16.msra.mxu0 %v5297_v30  ;;  %v5337_v59 = vld [vmem:[%s7673_s1 + $0x324] ss:$16 sps:$4 sm:$0xff]   ;;  %v5340_v61 = vld [vmem:[%s7673_s1 + $0x320] ss:$16 sps:$4 sm:$0xff]  }
  0x55   : > { %2009 = vmatpush1.bf16.msra.mxu1 %v5298_v31  ;;  %1897 = vmatprep.subr.bf16.mxu0 %v5299_v32  ;;  %v5341_v62 = vld [vmem:[%s7673_s1 + $0x104] ss:$16 sps:$4 sm:$0xff]   ;;  %v5345_v0 = vld [vmem:[%s7673_s1 + $0x100] ss:$16 sps:$4 sm:$0xff]  }
  0x56   : > { %2010 = vmatprep.subr.bf16.mxu1 %v5301_v33  ;;  %v5343_v63 = vld [vmem:[%s7673_s1 + $0x304] ss:$16 sps:$4 sm:$0xff]   ;;  %v5346_v1 = vld [vmem:[%s7673_s1 + $0x300] ss:$16 sps:$4 sm:$0xff]  }
  0x57   : > { %v5355_v2 = vld [vmem:[%s7673_s1 + $0x4e4] ss:$16 sps:$4 sm:$0xff]   ;;  %v5347_v4 = vld [vmem:[%s6222_s9] ss:$28 sps:$4 sm:$0xff]   ;;  %v5391_v30 = vld [vmem:[%s6222_s9 + $0xb0] ss:$28 sps:$4 sm:$0xff]  }
  0x58   : > { %1898 = vmatpush2.bf16.msra.mxu0 %v5303_v34  ;;  %v5358_v3 = vld [vmem:[%s7673_s1 + $0x604] ss:$16 sps:$4 sm:$0xff]   ;;  %v5353_v6 = vld [vmem:[%s7673_s1 + $0x4e0] ss:$16 sps:$4 sm:$0xff]   ;;  %v5400_v34 = vld [vmem:[%s6222_s9 + $0xec] ss:$28 sps:$4 sm:$0xff]  }
  0x59   : > { %2011 = vmatpush2.bf16.msra.mxu1 %v5304_v35  ;;  %1899 = vmatprep.subr.bf16.mxu0 %v5305_v36  ;;  %v5350_v5 = vld [vmem:[%s6222_s9 + $0x8] ss:$28 sps:$4 sm:$0xff]   ;;  %v5356_v7 = vld [vmem:[%s7673_s1 + $0x600] ss:$16 sps:$4 sm:$0xff]   ;;  %v5379_v22 = vld [vmem:[%s6222_s9 + $0x78] ss:$28 sps:$4 sm:$0xff]  }
  0x5a   : > { %2012 = vmatprep.subr.bf16.mxu1 %v5307_v37  ;;  %v5361_v8 = vld [vmem:[%s7673_s1 + $0x4c4] ss:$16 sps:$4 sm:$0xff]   ;;  %v5359_v11 = vld [vmem:[%s7673_s1 + $0x4c0] ss:$16 sps:$4 sm:$0xff]   ;;  %v5455_v35 = vld [vmem:[%s7673_s1 + $0x2ec] ss:$16 sps:$4 sm:$0xff]  }
  0x5b   : > { %v5364_v10 = vld [vmem:[%s6222_s9 + $0x44] ss:$28 sps:$4 sm:$0xff]   ;;  %v5374_v17 = vld [vmem:[%s6222_s9 + $0x74] ss:$28 sps:$4 sm:$0xff]  }
  0x5c   : > { %1900 = vmatpush2.bf16.msra.mxu0 %v5309_v38  ;;  %v5370_v12 = vld [vmem:[%s7673_s1 + $0x4a4] ss:$16 sps:$4 sm:$0xff]   ;;  %v5367_v14 = vld [vmem:[%s6222_s9 + $0x40] ss:$28 sps:$4 sm:$0xff]  }
  0x5d   : > { %2013 = vmatpush2.bf16.msra.mxu1 %v5310_v39  ;;  %1901 = vmatprep.subr.bf16.mxu0 %v5311_v40  ;;  %v5368_v15 = vld [vmem:[%s7673_s1 + $0x4a0] ss:$16 sps:$4 sm:$0xff]   ;;  %v5373_v16 = vld [vmem:[%s7673_s1 + $0x484] ss:$16 sps:$4 sm:$0xff]  }
  0x5e   : > { %2014 = vmatprep.subr.bf16.mxu1 %v5313_v41  ;;  %v5371_v19 = vld [vmem:[%s7673_s1 + $0x480] ss:$16 sps:$4 sm:$0xff]   ;;  %v5382_v20 = vld [vmem:[%s7673_s1 + $0x464] ss:$16 sps:$4 sm:$0xff]   ;;  %v5410_v41 = vld [vmem:[%s6222_s9 + $0x11c] ss:$28 sps:$4 sm:$0xff]  }
  0x5f   : > { %v5380_v23 = vld [vmem:[%s7673_s1 + $0x460] ss:$16 sps:$4 sm:$0xff]   ;;  %v5385_v24 = vld [vmem:[%s7673_s1 + $0x444] ss:$16 sps:$4 sm:$0xff]  }
  0x60   : > { %1902 = vmatpush2.bf16.msra.mxu0 %v5315_v42  ;;  %v5388_v26 = vld [vmem:[%s6222_s9 + $0xb4] ss:$28 sps:$4 sm:$0xff]   ;;  %v5390_v29 = vld [vmem:[%s6222_s9 + $0xa8] ss:$28 sps:$4 sm:$0xff]   ;;  %v5402_v38 = vld [vmem:[%s6222_s9 + $0xe0] ss:$28 sps:$4 sm:$0xff]  }
  0x61   : > { %2015 = vmatpush2.bf16.msra.mxu1 %v5316_v43  ;;  %1903 = vmatprep.subr.bf16.mxu0 %v5317_v44  ;;  %v5383_v27 = vld [vmem:[%s7673_s1 + $0x440] ss:$16 sps:$4 sm:$0xff]   ;;  %v5394_v28 = vld [vmem:[%s7673_s1 + $0x424] ss:$16 sps:$4 sm:$0xff]  }
  0x62   : > { %2016 = vmatprep.subr.bf16.mxu1 %v5319_v45  ;;  %v5392_v31 = vld [vmem:[%s7673_s1 + $0x420] ss:$16 sps:$4 sm:$0xff]   ;;  %v5397_v32 = vld [vmem:[%s7673_s1 + $0x404] ss:$16 sps:$4 sm:$0xff]  }
  0x63   : > { %v5398_v33 = vld [vmem:[%s6222_s9 + $0xe4] ss:$28 sps:$4 sm:$0xff]   ;;  %v5414_v45 = vld [vmem:[%s6222_s9 + $0x118] ss:$28 sps:$4 sm:$0xff]  }
  0x64   : > { %1904 = vmatpush2.bf16.msra.mxu0 %v5321_v46  ;;  %v5395_v36 = vld [vmem:[%s7673_s1 + $0x400] ss:$16 sps:$4 sm:$0xff]   ;;  %v5406_v37 = vld [vmem:[%s7673_s1 + $0x5e4] ss:$16 sps:$4 sm:$0xff]  }
  0x65   : > { %2017 = vmatpush2.bf16.msra.mxu1 %v5322_v47  ;;  %1905 = vmatprep.subr.bf16.mxu0 %v5323_v48  ;;  %v5403_v39 = vld [vmem:[%s6222_s9 + $0xe8] ss:$28 sps:$4 sm:$0xff]   ;;  %v5404_v40 = vld [vmem:[%s7673_s1 + $0x5e0] ss:$16 sps:$4 sm:$0xff]  }
  0x66   : > { %2018 = vmatprep.subr.bf16.mxu1 %v5325_v50  ;;  %v5409_v42 = vld [vmem:[%s7673_s1 + $0x5c4] ss:$16 sps:$4 sm:$0xff]   ;;  %v5407_v44 = vld [vmem:[%s7673_s1 + $0x5c0] ss:$16 sps:$4 sm:$0xff]  }
  0x67   : > { %v5412_v43 = vld [vmem:[%s6222_s9 + $0x124] ss:$28 sps:$4 sm:$0xff]   ;;  %v5422_v49 = vld [vmem:[%s6222_s9 + $0x154] ss:$28 sps:$4 sm:$0xff]  }
  0x68   : > { %1906 = vmatpush2.bf16.msra.mxu0 %v5327_v52  ;;  %v5418_v46 = vld [vmem:[%s7673_s1 + $0x5a4] ss:$16 sps:$4 sm:$0xff]   ;;  %v5415_v47 = vld [vmem:[%s6222_s9 + $0x120] ss:$28 sps:$4 sm:$0xff]  }
  0x69   : > { %2019 = vmatpush2.bf16.msra.mxu1 %v5328_v53  ;;  %1907 = vmatprep.subr.bf16.mxu0 %v5329_v54  ;;  %v5416_v48 = vld [vmem:[%s7673_s1 + $0x5a0] ss:$16 sps:$4 sm:$0xff]   ;;  %v5421_v50 = vld [vmem:[%s7673_s1 + $0x584] ss:$16 sps:$4 sm:$0xff]  }
  0x6a   : > { %2020 = vmatprep.subr.bf16.mxu1 %v5331_v55  ;;  %v5419_v52 = vld [vmem:[%s7673_s1 + $0x580] ss:$16 sps:$4 sm:$0xff]   ;;  %v5430_v54 = vld [vmem:[%s7673_s1 + $0x564] ss:$16 sps:$4 sm:$0xff]  }
  0x6b   : > { %v5426_v53 = vld [vmem:[%s6222_s9 + $0x150] ss:$28 sps:$4 sm:$0xff]   ;;  %v5427_v55 = vld [vmem:[%s6222_s9 + $0x158] ss:$28 sps:$4 sm:$0xff]  }
  0x6c   : > { %1908 = vmatpush2.bf16.msra.mxu0 %v5333_v56  ;;  %v5428_v56 = vld [vmem:[%s7673_s1 + $0x560] ss:$16 sps:$4 sm:$0xff]  }
  0x6d   : > { %2021 = vmatpush2.bf16.msra.mxu1 %v5334_v57  ;;  %1909 = vmatprep.subr.bf16.mxu0 %v5335_v58  ;;  %v5433_v57 = vld [vmem:[%s7673_s1 + $0x544] ss:$16 sps:$4 sm:$0xff]   ;;  %v5434_v58 = vld [vmem:[%s6222_s9 + $0x18c] ss:$28 sps:$4 sm:$0xff]  }
  0x6e   : > { %2022 = vmatprep.subr.bf16.mxu1 %v5337_v59  ;;  %v5436_v59 = vld [vmem:[%s6222_s9 + $0x194] ss:$28 sps:$4 sm:$0xff]  }
  0x70   : > { %1910 = vmatpush2.bf16.msra.mxu0 %v5339_v60  ;;  %v5431_v60 = vld [vmem:[%s7673_s1 + $0x540] ss:$16 sps:$4 sm:$0xff]  }
  0x71   : > { %2023 = vmatpush2.bf16.msra.mxu1 %v5340_v61  ;;  %1911 = vmatprep.subr.bf16.mxu0 %v5341_v62  ;;  %v5442_v61 = vld [vmem:[%s7673_s1 + $0x524] ss:$16 sps:$4 sm:$0xff]  }
  0x72   : > { %2024 = vmatprep.subr.bf16.mxu1 %v5343_v63  ;;  %v5438_v62 = vld [vmem:[%s6222_s9 + $0x188] ss:$28 sps:$4 sm:$0xff]   ;;  %v5439_v63 = vld [vmem:[%s6222_s9 + $0x190] ss:$28 sps:$4 sm:$0xff]  }
  0x74   : > { %1912 = vmatpush2.bf16.msra.mxu0 %v5345_v0  ;;  %v5440_v0 = vld [vmem:[%s7673_s1 + $0x520] ss:$16 sps:$4 sm:$0xff]  }
  0x75   : > { %2025 = vmatpush2.bf16.msra.mxu1 %v5346_v1  ;;  %2107 = vmatprep.subr.bf16.mxu0 %v5355_v2  ;;  %v5448_v1 = vld [vmem:[%s6222_s9 + $0x14] ss:$28 sps:$4 sm:$0xff]  }
  0x76   : > { %2234 = vmatprep.subr.bf16.mxu1 %v5358_v3  ;;  %v5445_v2 = vld [vmem:[%s7673_s1 + $0x504] ss:$16 sps:$4 sm:$0xff]   ;;  %v5443_v3 = vld [vmem:[%s7673_s1 + $0x500] ss:$16 sps:$4 sm:$0xff]  }
  0x77   : > { %1914 = vmatmul.mubr.bf16.vlgmr.msra.gmra.mxu0 %v5347_v4  ;;  %v5950_v4 = vmov 0  }
  0x78   : > { %2027 = vmatmul.mubr.bf16.vlgmr.msra.gmra.mxu1 %v5350_v5  ;;  %2108 = vmatpush1.bf16.msra.mxu0 %v5353_v6  ;;  %v5452_v5 = vld [vmem:[%s7673_s1 + $0xec] ss:$16 sps:$4 sm:$0xff]  }
  0x79   : > { %2235 = vmatpush1.bf16.msra.mxu1 %v5356_v7  ;;  %2109 = vmatprep.subr.bf16.mxu0 %v5361_v8  ;;  %v5446_v6 = vld [vmem:[%s6222_s9 + $0x10] ss:$28 sps:$4 sm:$0xff]   ;;  %v5449_v7 = vld [vmem:[%s6222_s9 + $0x18] ss:$28 sps:$4 sm:$0xff]  }
  0x7a   : > { %1923 = vmatprep.mubr.bf16.mxu0 %v5362_v9  ;;  %2036 = vmatprep.mubr.bf16.mxu1 %v5364_v10  ;;  %v5450_v8 = vld [vmem:[%s7673_s1 + $0xe8] ss:$16 sps:$4 sm:$0xff]   ;;  %v5458_v10 = vld [vmem:[%s7673_s1 + $0xcc] ss:$16 sps:$4 sm:$0xff]  }
  0x7b   : > { %2446 = vmatprep.subr.bf16.mxu1 %v5455_v35  ;;  %v5453_v9 = vld [vmem:[%s7673_s1 + $0x2e8] ss:$16 sps:$4 sm:$0xff]  }
  0x7c   : > { %2110 = vmatpush1.bf16.msra.mxu0 %v5359_v11  ;;  %v5461_v11 = vld [vmem:[%s7673_s1 + $0x2cc] ss:$16 sps:$4 sm:$0xff]   ;;  %v5488_v35 = vld [vmem:[%s7673_s1 + $0x48] ss:$16 sps:$4 sm:$0xff]  }
  0x7d   : > { %2111 = vmatprep.subr.bf16.mxu0 %v5370_v12  ;;  %v5462_v12 = vld [vmem:[%s6222_s9 + $0x4c] ss:$28 sps:$4 sm:$0xff]  }
  0x7f   : > { %1924 = vmatmul.mubr.bf16.gmra.mxu0 %v5366_v13  ;;  %v5456_v13 = vld [vmem:[%s7673_s1 + $0xc8] ss:$16 sps:$4 sm:$0xff]  }
  0x80   : > { %2037 = vmatmul.mubr.bf16.gmra.mxu1 %v5367_v14  ;;  %2112 = vmatpush1.bf16.msra.mxu0 %v5368_v15  ;;  %v5459_v14 = vld [vmem:[%s7673_s1 + $0x2c8] ss:$16 sps:$4 sm:$0xff]  }
  0x81   : > { %1933 = vmatprep.mubr.bf16.mxu0 %v5374_v17  ;;  %2113 = vmatprep.subr.bf16.mxu0 %v5373_v16  ;;  %v5464_v15 = vld [vmem:[%s6222_s9 + $0x48] ss:$28 sps:$4 sm:$0xff]   ;;  %v5468_v16 = vld [vmem:[%s7673_s1 + $0xac] ss:$16 sps:$4 sm:$0xff]  }
  0x82   : > { %2046 = vmatprep.mubr.bf16.mxu1 %v5376_v18  ;;  %v5471_v17 = vld [vmem:[%s7673_s1 + $0x2ac] ss:$16 sps:$4 sm:$0xff]  }
  0x83   : > { %v5465_v18 = vld [vmem:[%s6222_s9 + $0x50] ss:$28 sps:$4 sm:$0xff]  }
  0x84   : > { %2114 = vmatpush1.bf16.msra.mxu0 %v5371_v19  ;;  %v5466_v19 = vld [vmem:[%s7673_s1 + $0xa8] ss:$16 sps:$4 sm:$0xff]  }
  0x85   : > { %2115 = vmatprep.subr.bf16.mxu0 %v5382_v20  ;;  %v5469_v20 = vld [vmem:[%s7673_s1 + $0x2a8] ss:$16 sps:$4 sm:$0xff]  }
  0x87   : > { %1934 = vmatmul.mubr.bf16.gmra.mxu0 %v5378_v21  ;;  %v5474_v21 = vld [vmem:[%s7673_s1 + $0x8c] ss:$16 sps:$4 sm:$0xff]  }
  0x88   : > { %2047 = vmatmul.mubr.bf16.gmra.mxu1 %v5379_v22  ;;  %2116 = vmatpush1.bf16.msra.mxu0 %v5380_v23  ;;  %v5477_v22 = vld [vmem:[%s7673_s1 + $0x28c] ss:$16 sps:$4 sm:$0xff]   ;;  %v5478_v23 = vld [vmem:[%s6222_s9 + $0x84] ss:$28 sps:$4 sm:$0xff]  }
  0x89   : > { %1943 = vmatprep.mubr.bf16.mxu0 %v5386_v25  ;;  %2117 = vmatprep.subr.bf16.mxu0 %v5385_v24  ;;  %v5472_v24 = vld [vmem:[%s7673_s1 + $0x88] ss:$16 sps:$4 sm:$0xff]  }
  0x8a   : > { %2056 = vmatprep.mubr.bf16.mxu1 %v5388_v26  ;;  %v5475_v25 = vld [vmem:[%s7673_s1 + $0x288] ss:$16 sps:$4 sm:$0xff]   ;;  %v5480_v26 = vld [vmem:[%s6222_s9 + $0x80] ss:$28 sps:$4 sm:$0xff]  }
  0x8c   : > { %2118 = vmatpush1.bf16.msra.mxu0 %v5383_v27  ;;  %v5484_v27 = vld [vmem:[%s7673_s1 + $0x6c] ss:$16 sps:$4 sm:$0xff]  }
  0x8d   : > { %2119 = vmatprep.subr.bf16.mxu0 %v5394_v28  ;;  %v5487_v28 = vld [vmem:[%s7673_s1 + $0x26c] ss:$16 sps:$4 sm:$0xff]  }
  0x8f   : > { %1944 = vmatmul.mubr.bf16.gmra.mxu0 %v5390_v29  ;;  %v5481_v29 = vld [vmem:[%s6222_s9 + $0x88] ss:$28 sps:$4 sm:$0xff]  }
  0x90   : > { %2057 = vmatmul.mubr.bf16.gmra.mxu1 %v5391_v30  ;;  %2120 = vmatpush1.bf16.msra.mxu0 %v5392_v31  ;;  %v5482_v30 = vld [vmem:[%s7673_s1 + $0x68] ss:$16 sps:$4 sm:$0xff]  }
  0x91   : > { %1953 = vmatprep.mubr.bf16.mxu0 %v5398_v33  ;;  %2121 = vmatprep.subr.bf16.mxu0 %v5397_v32  ;;  %v5485_v31 = vld [vmem:[%s7673_s1 + $0x268] ss:$16 sps:$4 sm:$0xff]   ;;  %v5490_v32 = vld [vmem:[%s7673_s1 + $0x4c] ss:$16 sps:$4 sm:$0xff]  }
  0x92   : > { %2066 = vmatprep.mubr.bf16.mxu1 %v5400_v34  ;;  %v5493_v33 = vld [vmem:[%s7673_s1 + $0x24c] ss:$16 sps:$4 sm:$0xff]  }
  0x93   : > { %v6496_v34 = vld [vmem:[%s6222_s9 + $0xbc] ss:$28 sps:$4 sm:$0xff]  }
  0x94   : > { %2122 = vmatpush1.bf16.msra.mxu0 %v5395_v36  ;;  %v5491_v36 = vld [vmem:[%s7673_s1 + $0x248] ss:$16 sps:$4 sm:$0xff]  }
  0x95   : > { %2123 = vmatprep.subr.bf16.mxu0 %v5406_v37  ;;  %v5500_v37 = vld [vmem:[%s7673_s1 + $0x2c] ss:$16 sps:$4 sm:$0xff]  }
  0x97   : > { %1954 = vmatmul.mubr.bf16.gmra.mxu0 %v5402_v38  ;;  %v5503_v38 = vld [vmem:[%s7673_s1 + $0x22c] ss:$16 sps:$4 sm:$0xff]  }
  0x98   : > { %2067 = vmatmul.mubr.bf16.gmra.mxu1 %v5403_v39  ;;  %2124 = vmatpush2.bf16.msra.mxu0 %v5404_v40  ;;  %v5496_v39 = vld [vmem:[%s6222_s9 + $0xb8] ss:$28 sps:$4 sm:$0xff]   ;;  %v5497_v40 = vld [vmem:[%s6222_s9 + $0xc0] ss:$28 sps:$4 sm:$0xff]  }
  0x99   : > { %1963 = vmatprep.mubr.bf16.mxu0 %v5410_v41  ;;  %2125 = vmatprep.subr.bf16.mxu0 %v5409_v42  ;;  %v5498_v41 = vld [vmem:[%s7673_s1 + $0x28] ss:$16 sps:$4 sm:$0xff]  }
  0x9a   : > { %2076 = vmatprep.mubr.bf16.mxu1 %v5412_v43  ;;  %v5501_v42 = vld [vmem:[%s7673_s1 + $0x228] ss:$16 sps:$4 sm:$0xff]   ;;  %v5506_v43 = vld [vmem:[%s7673_s1 + $0xc] ss:$16 sps:$4 sm:$0xff]  }
  0x9c   : > { %2126 = vmatpush2.bf16.msra.mxu0 %v5407_v44  ;;  %v5509_v44 = vld [vmem:[%s7673_s1 + $0x20c] ss:$16 sps:$4 sm:$0xff]  }
  0x9d   : > { %2127 = vmatprep.subr.bf16.mxu0 %v5418_v46  ;;  %v5504_v46 = vld [vmem:[%s7673_s1 + $0x8] ss:$16 sps:$4 sm:$0xff]  }
  0x9f   : > { %1964 = vmatmul.mubr.bf16.gmra.mxu0 %v5414_v45  ;;  %v6528_v45 = vld [vmem:[%s6222_s9 + $0xf4] ss:$28 sps:$4 sm:$0xff]  }
  0xa0   : > { %2077 = vmatmul.mubr.bf16.gmra.mxu1 %v5415_v47  ;;  %2128 = vmatpush2.bf16.msra.mxu0 %v5416_v48  ;;  %v5507_v47 = vld [vmem:[%s7673_s1 + $0x208] ss:$16 sps:$4 sm:$0xff]   ;;  %v5516_v48 = vld [vmem:[%s7673_s1 + $0x1ec] ss:$16 sps:$4 sm:$0xff]  }
  0xa1   : > { %1973 = vmatprep.mubr.bf16.mxu0 %v5422_v49  ;;  %2129 = vmatprep.subr.bf16.mxu0 %v5421_v50  ;;  %v5519_v49 = vld [vmem:[%s7673_s1 + $0x3ec] ss:$16 sps:$4 sm:$0xff]  }
  0xa2   : > { %2086 = vmatprep.mubr.bf16.mxu1 %v5424_v51  ;;  %v5512_v50 = vld [vmem:[%s6222_s9 + $0xf0] ss:$28 sps:$4 sm:$0xff]   ;;  %v5513_v51 = vld [vmem:[%s6222_s9 + $0xf8] ss:$28 sps:$4 sm:$0xff]  }
  0xa4   : > { %2130 = vmatpush2.bf16.msra.mxu0 %v5419_v52  ;;  %v5514_v52 = vld [vmem:[%s7673_s1 + $0x1e8] ss:$16 sps:$4 sm:$0xff]  }
  0xa5   : > { %2131 = vmatprep.subr.bf16.mxu0 %v5430_v54  ;;  %v5522_v54 = vld [vmem:[%s7673_s1 + $0x1cc] ss:$16 sps:$4 sm:$0xff]  }
  0xa7   : > { %1974 = vmatmul.mubr.bf16.gmra.mxu0 %v5426_v53  ;;  %v5517_v53 = vld [vmem:[%s7673_s1 + $0x3e8] ss:$16 sps:$4 sm:$0xff]  }
  0xa8   : > { %2087 = vmatmul.mubr.bf16.gmra.mxu1 %v5427_v55  ;;  %2132 = vmatpush2.bf16.msra.mxu0 %v5428_v56  ;;  %v5525_v55 = vld [vmem:[%s7673_s1 + $0x3cc] ss:$16 sps:$4 sm:$0xff]  }
  0xa9   : > { %1983 = vmatprep.mubr.bf16.mxu0 %v5434_v58  ;;  %2133 = vmatprep.subr.bf16.mxu0 %v5433_v57  ;;  %v6560_v56 = vld [vmem:[%s6222_s9 + $0x12c] ss:$28 sps:$4 sm:$0xff]  }
  0xaa   : > { %2096 = vmatprep.mubr.bf16.mxu1 %v5436_v59  ;;  %v5520_v57 = vld [vmem:[%s7673_s1 + $0x1c8] ss:$16 sps:$4 sm:$0xff]   ;;  %v5532_v59 = vld [vmem:[%s7673_s1 + $0x1ac] ss:$16 sps:$4 sm:$0xff]  }
  0xab   : > { %v5523_v58 = vld [vmem:[%s7673_s1 + $0x3c8] ss:$16 sps:$4 sm:$0xff]  }
  0xac   : > { %2134 = vmatpush2.bf16.msra.mxu0 %v5431_v60  ;;  %v5535_v60 = vld [vmem:[%s7673_s1 + $0x3ac] ss:$16 sps:$4 sm:$0xff]  }
  0xad   : > { %2135 = vmatprep.subr.bf16.mxu0 %v5442_v61  ;;  %v6578_v61 = vld [vmem:[%s6222_s9 + $0x128] ss:$28 sps:$4 sm:$0xff]  }
  0xaf   : > { %1984 = vmatmul.mubr.bf16.gmra.mxu0 %v5438_v62  ;;  %v6581_v62 = vld [vmem:[%s6222_s9 + $0x130] ss:$28 sps:$4 sm:$0xff]  }
  0xb0   : > { %2097 = vmatmul.mubr.bf16.gmra.mxu1 %v5439_v63  ;;  %2136 = vmatpush2.bf16.msra.mxu0 %v5440_v0  ;;  %v5530_v63 = vld [vmem:[%s7673_s1 + $0x1a8] ss:$16 sps:$4 sm:$0xff]  }
  0xb1   : > { %2139 = vmatprep.mubr.bf16.mxu0 %v5448_v1  ;;  %2137 = vmatprep.subr.bf16.mxu0 %v5445_v2  ;;  %v5533_v0 = vld [vmem:[%s7673_s1 + $0x3a8] ss:$16 sps:$4 sm:$0xff]   ;;  %v5538_v1 = vld [vmem:[%s7673_s1 + $0x18c] ss:$16 sps:$4 sm:$0xff]  }
  0xb2   : > { %2252 = vmatprep.mubr.bf16.mxu1 %v5950_v4  ;;  %v5541_v2 = vld [vmem:[%s7673_s1 + $0x38c] ss:$16 sps:$4 sm:$0xff]  }
  0xb4   : > { %2138 = vmatpush2.bf16.msra.mxu0 %v5443_v3  ;;  %v6596_v3 = vld [vmem:[%s6222_s9 + $0x164] ss:$28 sps:$4 sm:$0xff]  }
  0xb5   : > { %2333 = vmatprep.subr.bf16.mxu0 %v5452_v5  ;;  %v5536_v5 = vld [vmem:[%s7673_s1 + $0x188] ss:$16 sps:$4 sm:$0xff]  }
  0xb7   : > { %2140 = vmatmul.mubr.bf16.vlgmr.msra.gmra.mxu0 %v5446_v6  ;;  %v5539_v6 = vld [vmem:[%s7673_s1 + $0x388] ss:$16 sps:$4 sm:$0xff]  }
  0xb8   : > { %4800 = vmatmul.mubr.msk.bf16.vlgmr.msra.gmra.mxu1 %vm1856_vm0, %v5449_v7  ;;  %2334 = vmatpush1.bf16.msra.mxu0 %v5450_v8  ;;  %v5548_v7 = vld [vmem:[%s7673_s1 + $0x16c] ss:$16 sps:$4 sm:$0xff]  }
  0xb9   : > { %2447 = vmatpush1.bf16.msra.mxu1 %v5453_v9  ;;  %2335 = vmatprep.subr.bf16.mxu0 %v5458_v10  ;;  %v5551_v8 = vld [vmem:[%s7673_s1 + $0x36c] ss:$16 sps:$4 sm:$0xff]   ;;  %v6619_v10 = vld [vmem:[%s6222_s9 + $0x168] ss:$28 sps:$4 sm:$0xff]  }
  0xba   : > { %2448 = vmatprep.subr.bf16.mxu1 %v5461_v11  ;;  %2149 = vmatprep.mubr.bf16.mxu0 %v5462_v12  ;;  %v6616_v9 = vld [vmem:[%s6222_s9 + $0x160] ss:$28 sps:$4 sm:$0xff]   ;;  %v5546_v11 = vld [vmem:[%s7673_s1 + $0x168] ss:$16 sps:$4 sm:$0xff]  }
  0xbb   : > { %2262 = vmatprep.mubr.bf16.mxu1 %v5950_v4  ;;  %v5549_v12 = vld [vmem:[%s7673_s1 + $0x368] ss:$16 sps:$4 sm:$0xff]  }
  0xbc   : > { %2336 = vmatpush1.bf16.msra.mxu0 %v5456_v13  ;;  %v5554_v13 = vld [vmem:[%s7673_s1 + $0x14c] ss:$16 sps:$4 sm:$0xff]  }
  0xbd   : > { %2449 = vmatpush1.bf16.msra.mxu1 %v5459_v14  ;;  %2337 = vmatprep.subr.bf16.mxu0 %v5468_v16  ;;  %v5557_v14 = vld [vmem:[%s7673_s1 + $0x34c] ss:$16 sps:$4 sm:$0xff]   ;;  %v5552_v16 = vld [vmem:[%s7673_s1 + $0x148] ss:$16 sps:$4 sm:$0xff]  }
  0xbe   : > { %2450 = vmatprep.subr.bf16.mxu1 %v5471_v17  ;;  %v5555_v17 = vld [vmem:[%s7673_s1 + $0x348] ss:$16 sps:$4 sm:$0xff]  }
  0xbf   : > { %2150 = vmatmul.mubr.bf16.gmra.mxu0 %v5464_v15  ;;  %v6634_v15 = vld [vmem:[%s6222_s9 + $0x19c] ss:$28 sps:$4 sm:$0xff]  }
  0xc0   : > { %4801 = vmatmul.mubr.msk.bf16.gmra.mxu1 %vm1856_vm0, %v5465_v18  ;;  %2338 = vmatpush1.bf16.msra.mxu0 %v5466_v19  ;;  %v6646_v18 = vld [vmem:[%s6222_s9 + $0x198] ss:$28 sps:$4 sm:$0xff]   ;;  %v5564_v19 = vld [vmem:[%s7673_s1 + $0x12c] ss:$16 sps:$4 sm:$0xff]  }
  0xc1   : > { %2451 = vmatpush1.bf16.msra.mxu1 %v5469_v20  ;;  %2339 = vmatprep.subr.bf16.mxu0 %v5474_v21  ;;  %v5567_v20 = vld [vmem:[%s7673_s1 + $0x32c] ss:$16 sps:$4 sm:$0xff]  }
  0xc2   : > { %2452 = vmatprep.subr.bf16.mxu1 %v5477_v22  ;;  %2159 = vmatprep.mubr.bf16.mxu0 %v5478_v23  ;;  %v6657_v21 = vld [vmem:[%s6222_s9 + $0x1a0] ss:$28 sps:$4 sm:$0xff]   ;;  %v5562_v22 = vld [vmem:[%s7673_s1 + $0x128] ss:$16 sps:$4 sm:$0xff]  }
  0xc3   : > { %2272 = vmatprep.mubr.bf16.mxu1 %v5950_v4  ;;  %v5565_v23 = vld [vmem:[%s7673_s1 + $0x328] ss:$16 sps:$4 sm:$0xff]  }
  0xc4   : > { %2340 = vmatpush1.bf16.msra.mxu0 %v5472_v24  ;;  %v5570_v24 = vld [vmem:[%s7673_s1 + $0x10c] ss:$16 sps:$4 sm:$0xff]  }
  0xc5   : > { %2453 = vmatpush1.bf16.msra.mxu1 %v5475_v25  ;;  %2341 = vmatprep.subr.bf16.mxu0 %v5484_v27  ;;  %v5573_v25 = vld [vmem:[%s7673_s1 + $0x30c] ss:$16 sps:$4 sm:$0xff]   ;;  %v5571_v27 = vld [vmem:[%s7673_s1 + $0x308] ss:$16 sps:$4 sm:$0xff]  }
  0xc6   : > { %2454 = vmatprep.subr.bf16.mxu1 %v5487_v28  ;;  %v5576_v28 = vld [vmem:[%s7673_s1 + $0x4ec] ss:$16 sps:$4 sm:$0xff]  }
  0xc7   : > { %2160 = vmatmul.mubr.bf16.gmra.mxu0 %v5480_v26  ;;  %v5568_v26 = vld [vmem:[%s7673_s1 + $0x108] ss:$16 sps:$4 sm:$0xff]  }
  0xc8   : > { %4802 = vmatmul.mubr.msk.bf16.gmra.mxu1 %vm1856_vm0, %v5481_v29  ;;  %2342 = vmatpush1.bf16.msra.mxu0 %v5482_v30  ;;  %v5579_v29 = vld [vmem:[%s7673_s1 + $0x60c] ss:$16 sps:$4 sm:$0xff]   ;;  %v5777_v30 = vld [vmem:[%s6222_s9 + $0x4] ss:$28 sps:$4 sm:$0xff]  }
  0xc9   : > { %2455 = vmatpush1.bf16.msra.mxu1 %v5485_v31  ;;  %2343 = vmatprep.subr.bf16.mxu0 %v5490_v32  ;;  %v5778_v31 = vld [vmem:[%s6222_s9 + $0xc] ss:$28 sps:$4 sm:$0xff]  }
  0xca   : > { %2456 = vmatprep.subr.bf16.mxu1 %v5493_v33  ;;  %2169 = vmatprep.mubr.bf16.mxu0 %v6496_v34  ;;  %v5574_v32 = vld [vmem:[%s7673_s1 + $0x4e8] ss:$16 sps:$4 sm:$0xff]  }
  0xcb   : > { %2282 = vmatprep.mubr.bf16.mxu1 %v5950_v4  ;;  %v5577_v33 = vld [vmem:[%s7673_s1 + $0x608] ss:$16 sps:$4 sm:$0xff]  }
  0xcc   : > { %2344 = vmatpush1.bf16.msra.mxu0 %v5488_v35  ;;  %v5582_v35 = vld [vmem:[%s7673_s1 + $0x4cc] ss:$16 sps:$4 sm:$0xff]  }
  0xcd   : > { %2457 = vmatpush1.bf16.msra.mxu1 %v5491_v36  ;;  %2345 = vmatprep.subr.bf16.mxu0 %v5500_v37  ;;  %v5580_v36 = vld [vmem:[%s7673_s1 + $0x4c8] ss:$16 sps:$4 sm:$0xff]   ;;  %v5779_v37 = vld [vmem:[%s6222_s9] ss:$28 sps:$4 sm:$0xff]  }
  0xce   : > { %2458 = vmatprep.subr.bf16.mxu1 %v5503_v38  ;;  %v5780_v38 = vld [vmem:[%s6222_s9 + $0x8] ss:$28 sps:$4 sm:$0xff]  }
  0xcf   : > { %2170 = vmatmul.mubr.bf16.gmra.mxu0 %v5496_v39  ;;  %v5781_v39 = vld [vmem:[%s6222_s9 + $0x3c] ss:$28 sps:$4 sm:$0xff]  }
  0xd0   : > { %4803 = vmatmul.mubr.msk.bf16.gmra.mxu1 %vm1856_vm0, %v5497_v40  ;;  %2346 = vmatpush1.bf16.msra.mxu0 %v5498_v41  ;;  %v5585_v40 = vld [vmem:[%s7673_s1 + $0x4ac] ss:$16 sps:$4 sm:$0xff]   ;;  %v5782_v41 = vld [vmem:[%s6222_s9 + $0x44] ss:$28 sps:$4 sm:$0xff]  }
  0xd1   : > { %2459 = vmatpush1.bf16.msra.mxu1 %v5501_v42  ;;  %2347 = vmatprep.subr.bf16.mxu0 %v5506_v43  ;;  %v5583_v42 = vld [vmem:[%s7673_s1 + $0x4a8] ss:$16 sps:$4 sm:$0xff]   ;;  %v5588_v43 = vld [vmem:[%s7673_s1 + $0x48c] ss:$16 sps:$4 sm:$0xff]  }
  0xd2   : > { %2460 = vmatprep.subr.bf16.mxu1 %v5509_v44  ;;  %2179 = vmatprep.mubr.bf16.mxu0 %v6528_v45  ;;  %v5586_v44 = vld [vmem:[%s7673_s1 + $0x488] ss:$16 sps:$4 sm:$0xff]  }
  0xd3   : > { %2292 = vmatprep.mubr.bf16.mxu1 %v5950_v4 }
  0xd4   : > { %2348 = vmatpush1.bf16.msra.mxu0 %v5504_v46  ;;  %v5783_v46 = vld [vmem:[%s6222_s9 + $0x38] ss:$28 sps:$4 sm:$0xff]  }
  0xd5   : > { %2461 = vmatpush1.bf16.msra.mxu1 %v5507_v47  ;;  %2349 = vmatprep.subr.bf16.mxu0 %v5516_v48  ;;  %v5784_v47 = vld [vmem:[%s6222_s9 + $0x40] ss:$28 sps:$4 sm:$0xff]   ;;  %v5785_v48 = vld [vmem:[%s6222_s9 + $0x74] ss:$28 sps:$4 sm:$0xff]  }
  0xd6   : > { %2462 = vmatprep.subr.bf16.mxu1 %v5519_v49  ;;  %v5786_v49 = vld [vmem:[%s6222_s9 + $0x7c] ss:$28 sps:$4 sm:$0xff]  }
  0xd7   : > { %2180 = vmatmul.mubr.bf16.gmra.mxu0 %v5512_v50  ;;  %v5591_v50 = vld [vmem:[%s7673_s1 + $0x46c] ss:$16 sps:$4 sm:$0xff]  }
  0xd8   : > { %4804 = vmatmul.mubr.msk.bf16.gmra.mxu1 %vm1856_vm0, %v5513_v51  ;;  %2350 = vmatpush2.bf16.msra.mxu0 %v5514_v52  ;;  %v5589_v51 = vld [vmem:[%s7673_s1 + $0x468] ss:$16 sps:$4 sm:$0xff]   ;;  %v5594_v52 = vld [vmem:[%s7673_s1 + $0x44c] ss:$16 sps:$4 sm:$0xff]  }
  0xd9   : > { %2463 = vmatpush2.bf16.msra.mxu1 %v5517_v53  ;;  %2351 = vmatprep.subr.bf16.mxu0 %v5522_v54  ;;  %v5592_v53 = vld [vmem:[%s7673_s1 + $0x448] ss:$16 sps:$4 sm:$0xff]   ;;  %v5787_v54 = vld [vmem:[%s6222_s9 + $0x70] ss:$28 sps:$4 sm:$0xff]  }
  0xda   : > { %2464 = vmatprep.subr.bf16.mxu1 %v5525_v55  ;;  %2189 = vmatprep.mubr.bf16.mxu0 %v6560_v56  ;;  %v5788_v55 = vld [vmem:[%s6222_s9 + $0x78] ss:$28 sps:$4 sm:$0xff]  }
  0xdb   : > { %2302 = vmatprep.mubr.bf16.mxu1 %v5950_v4 }
  0xdc   : > { %2352 = vmatpush2.bf16.msra.mxu0 %v5520_v57  ;;  %v5597_v57 = vld [vmem:[%s7673_s1 + $0x42c] ss:$16 sps:$4 sm:$0xff]  }
  0xdd   : > { %2465 = vmatpush2.bf16.msra.mxu1 %v5523_v58  ;;  %2353 = vmatprep.subr.bf16.mxu0 %v5532_v59  ;;  %v5789_v58 = vld [vmem:[%s6222_s9 + $0xac] ss:$28 sps:$4 sm:$0xff]   ;;  %v5790_v59 = vld [vmem:[%s6222_s9 + $0xb4] ss:$28 sps:$4 sm:$0xff]  }
  0xde   : > { %2466 = vmatprep.subr.bf16.mxu1 %v5535_v60  ;;  %v5595_v60 = vld [vmem:[%s7673_s1 + $0x428] ss:$16 sps:$4 sm:$0xff]  }
  0xdf   : > { %2190 = vmatmul.mubr.bf16.gmra.mxu0 %v6578_v61 }
  0xe0   : > { %4805 = vmatmul.mubr.msk.bf16.gmra.mxu1 %vm1856_vm0, %v6581_v62  ;;  %2354 = vmatpush2.bf16.msra.mxu0 %v5530_v63  ;;  %v5600_v63 = vld [vmem:[%s7673_s1 + $0x40c] ss:$16 sps:$4 sm:$0xff]  }
  0xe1   : > { %2467 = vmatpush2.bf16.msra.mxu1 %v5533_v0  ;;  %2355 = vmatprep.subr.bf16.mxu0 %v5538_v1  ;;  %v5598_v0 = vld [vmem:[%s7673_s1 + $0x408] ss:$16 sps:$4 sm:$0xff]  }
  0xe2   : > { %2468 = vmatprep.subr.bf16.mxu1 %v5541_v2  ;;  %2199 = vmatprep.mubr.bf16.mxu0 %v6596_v3  ;;  %v5791_v1 = vld [vmem:[%s6222_s9 + $0xa8] ss:$28 sps:$4 sm:$0xff]   ;;  %v5792_v2 = vld [vmem:[%s6222_s9 + $0xb0] ss:$28 sps:$4 sm:$0xff]  }
  0xe3   : > { %2312 = vmatprep.mubr.bf16.mxu1 %v5950_v4 }
  0xe4   : > { %2356 = vmatpush2.bf16.msra.mxu0 %v5536_v5  ;;  %v5603_v5 = vld [vmem:[%s7673_s1 + $0x5ec] ss:$16 sps:$4 sm:$0xff]  }
  0xe5   : > { %2469 = vmatpush2.bf16.msra.mxu1 %v5539_v6  ;;  %2357 = vmatprep.subr.bf16.mxu0 %v5548_v7  ;;  %v5793_v6 = vld [vmem:[%s6222_s9 + $0xe4] ss:$28 sps:$4 sm:$0xff]   ;;  %v5794_v7 = vld [vmem:[%s6222_s9 + $0xec] ss:$28 sps:$4 sm:$0xff]  }
  0xe6   : > { %2470 = vmatprep.subr.bf16.mxu1 %v5551_v8  ;;  %v5601_v8 = vld [vmem:[%s7673_s1 + $0x5e8] ss:$16 sps:$4 sm:$0xff]  }
  0xe7   : > { %2200 = vmatmul.mubr.bf16.gmra.mxu0 %v6616_v9 }
  0xe8   : > { %4806 = vmatmul.mubr.msk.bf16.gmra.mxu1 %vm1856_vm0, %v6619_v10  ;;  %2358 = vmatpush2.bf16.msra.mxu0 %v5546_v11  ;;  %v5606_v11 = vld [vmem:[%s7673_s1 + $0x5cc] ss:$16 sps:$4 sm:$0xff]  }
  0xe9   : > { %2471 = vmatpush2.bf16.msra.mxu1 %v5549_v12  ;;  %2359 = vmatprep.subr.bf16.mxu0 %v5554_v13  ;;  %v5604_v12 = vld [vmem:[%s7673_s1 + $0x5c8] ss:$16 sps:$4 sm:$0xff]   ;;  %v5795_v13 = vld [vmem:[%s6222_s9 + $0xe0] ss:$28 sps:$4 sm:$0xff]  }
  0xea   : > { %2472 = vmatprep.subr.bf16.mxu1 %v5557_v14  ;;  %2209 = vmatprep.mubr.bf16.mxu0 %v6634_v15  ;;  %v5796_v14 = vld [vmem:[%s6222_s9 + $0xe8] ss:$28 sps:$4 sm:$0xff]  }
  0xeb   : > { %2322 = vmatprep.mubr.bf16.mxu1 %v5950_v4 }
  0xec   : > { %2360 = vmatpush2.bf16.msra.mxu0 %v5552_v16  ;;  %v5609_v16 = vld [vmem:[%s7673_s1 + $0x5ac] ss:$16 sps:$4 sm:$0xff]  }
  0xed   : > { %2473 = vmatpush2.bf16.msra.mxu1 %v5555_v17  ;;  %2361 = vmatprep.subr.bf16.mxu0 %v5564_v19  ;;  %v5797_v17 = vld [vmem:[%s6222_s9 + $0x11c] ss:$28 sps:$4 sm:$0xff]   ;;  %v5798_v19 = vld [vmem:[%s6222_s9 + $0x124] ss:$28 sps:$4 sm:$0xff]  }
  0xee   : > { %2474 = vmatprep.subr.bf16.mxu1 %v5567_v20  ;;  %v5607_v20 = vld [vmem:[%s7673_s1 + $0x5a8] ss:$16 sps:$4 sm:$0xff]  }
  0xef   : > { %2210 = vmatmul.mubr.bf16.gmra.mxu0 %v6646_v18 }
  0xf0   : > { %4807 = vmatmul.mubr.msk.bf16.gmra.mxu1 %vm1856_vm0, %v6657_v21  ;;  %2362 = vmatpush2.bf16.msra.mxu0 %v5562_v22  ;;  %v5612_v22 = vld [vmem:[%s7673_s1 + $0x58c] ss:$16 sps:$4 sm:$0xff]  }
  0xf1   : > { %2475 = vmatpush2.bf16.msra.mxu1 %v5565_v23  ;;  %2363 = vmatprep.subr.bf16.mxu0 %v5570_v24  ;;  %v5610_v23 = vld [vmem:[%s7673_s1 + $0x588] ss:$16 sps:$4 sm:$0xff]  }
  0xf2   : > { %2476 = vmatprep.subr.bf16.mxu1 %v5573_v25  ;;  %2365 = vmatprep.mubr.bf16.mxu0 %v5777_v30  ;;  %v5799_v24 = vld [vmem:[%s6222_s9 + $0x118] ss:$28 sps:$4 sm:$0xff]   ;;  %v5800_v25 = vld [vmem:[%s6222_s9 + $0x120] ss:$28 sps:$4 sm:$0xff]  }
  0xf3   : > { %2478 = vmatprep.mubr.bf16.mxu1 %v5778_v31  ;;  %v5618_v30 = vld [vmem:[%s7673_s1 + $0x54c] ss:$16 sps:$4 sm:$0xff]  }
  0xf4   : > { %2364 = vmatpush2.bf16.msra.mxu0 %v5568_v26  ;;  %v5615_v26 = vld [vmem:[%s7673_s1 + $0x56c] ss:$16 sps:$4 sm:$0xff]  }
  0xf5   : > { %2477 = vmatpush2.bf16.msra.mxu1 %v5571_v27  ;;  %2559 = vmatprep.subr.bf16.mxu0 %v5576_v28  ;;  %v5801_v27 = vld [vmem:[%s6222_s9 + $0x154] ss:$28 sps:$4 sm:$0xff]   ;;  %v5802_v28 = vld [vmem:[%s6222_s9 + $0x15c] ss:$28 sps:$4 sm:$0xff]  }
  0xf6   : > { %2686 = vmatprep.subr.bf16.mxu1 %v5579_v29  ;;  %v5613_v29 = vld [vmem:[%s7673_s1 + $0x568] ss:$16 sps:$4 sm:$0xff]   ;;  %v5803_v31 = vld [vmem:[%s6222_s9 + $0x150] ss:$28 sps:$4 sm:$0xff]  }
  0xf7   : > { %2366 = vmatmul.mubr.bf16.vlgmr.msra.gmra.mxu0 %v5779_v37  ;;  %v5806_v37 = vld [vmem:[%s6222_s9 + $0x194] ss:$28 sps:$4 sm:$0xff]  }
  0xf8   : > { %2479 = vmatmul.mubr.bf16.vlgmr.msra.gmra.mxu1 %v5780_v38  ;;  %2560 = vmatpush1.bf16.msra.mxu0 %v5574_v32  ;;  %v5804_v32 = vld [vmem:[%s6222_s9 + $0x158] ss:$28 sps:$4 sm:$0xff]   ;;  %v5621_v38 = vld [vmem:[%s7673_s1 + $0x52c] ss:$16 sps:$4 sm:$0xff]  }
  0xf9   : > { %2687 = vmatpush1.bf16.msra.mxu1 %v5577_v33  ;;  %2561 = vmatprep.subr.bf16.mxu0 %v5582_v35  ;;  %v5616_v33 = vld [vmem:[%s7673_s1 + $0x548] ss:$16 sps:$4 sm:$0xff]  }
  0xfa   : > { %2375 = vmatprep.mubr.bf16.mxu0 %v5781_v39  ;;  %2488 = vmatprep.mubr.bf16.mxu1 %v5782_v41  ;;  %v5805_v35 = vld [vmem:[%s6222_s9 + $0x18c] ss:$28 sps:$4 sm:$0xff]  }
  0xfb   : > { %v5619_v39 = vld [vmem:[%s7673_s1 + $0x528] ss:$16 sps:$4 sm:$0xff]   ;;  %v5624_v41 = vld [vmem:[%s7673_s1 + $0x50c] ss:$16 sps:$4 sm:$0xff]  }
  0xfc   : > { %2562 = vmatpush1.bf16.msra.mxu0 %v5580_v36  ;;  %v576_v36 = vlaneseq }
  0xfd   : > { %2563 = vmatprep.subr.bf16.mxu0 %v5585_v40 }
  0xfe   : > { %v6806_v40 = vshrl.u32 %v576_v36, 7 }
  0xff   : > { %2376 = vmatmul.mubr.bf16.gmra.mxu0 %v5783_v46  ;;  %v5809_v46 = vld [vmem:[%s6222_s9 + $0x14] ss:$28 sps:$4 sm:$0xff]  }
 0x100   : > { %2489 = vmatmul.mubr.bf16.gmra.mxu1 %v5784_v47  ;;  %2564 = vmatpush1.bf16.msra.mxu0 %v5583_v42  ;;  %7697 = vst [vmem:[#allocation11_spill] sm:$0xff] %v6806_v40  ;;  %v5807_v42 = vld [vmem:[%s6222_s9 + $0x188] ss:$28 sps:$4 sm:$0xff]   ;;  %v7681_v47 = vsub.s32 0, %v6806_v40 }
 0x101   : > { %2385 = vmatprep.mubr.bf16.mxu0 %v5785_v48  ;;  %2565 = vmatprep.subr.bf16.mxu0 %v5588_v43  ;;  %v5808_v43 = vld [vmem:[%s6222_s9 + $0x190] ss:$28 sps:$4 sm:$0xff]   ;;  %v6822_v48 = vld [vmem:[%s7674_s2] sm:$0xf] }
 0x102   : > { %2498 = vmatprep.mubr.bf16.mxu1 %v5786_v49  ;;  %7698 = vst [vmem:[#allocation12_spill] sm:$0xff] %v6822_v48  ;;  %v5627_v49 = vld [vmem:[#allocation2 + $0xac] ss:$12 sps:$4 sm:$0xff]  }
 0x104   : > { %2566 = vmatpush1.bf16.msra.mxu0 %v5586_v44  ;;  %v5622_v44 = vld [vmem:[%s7673_s1 + $0x508] ss:$16 sps:$4 sm:$0xff]  }
 0x105   : > { %2567 = vmatprep.subr.bf16.mxu0 %v5591_v50  ;;  %v7682_v50 = vsub.s32 1, %v6806_v40 }
 0x107   : > { %2386 = vmatmul.mubr.bf16.gmra.mxu0 %v5787_v54  ;;  %v5630_v54 = vld [vmem:[#allocation2 + $0x94] ss:$12 sps:$4 sm:$0xff]  }
 0x108   : > { %2499 = vmatmul.mubr.bf16.gmra.mxu1 %v5788_v55  ;;  %2568 = vmatpush1.bf16.msra.mxu0 %v5589_v51  ;;  %v6828_v51 = vrot.slane %v6822_v48, %v7681_v47  ;;  %v5722_v47 = vld [vmem:[#allocation2 + $0x2a0] ss:$12 sps:$4 sm:$0xff]  }
 0x109   : > { %2395 = vmatprep.mubr.bf16.mxu0 %v5789_v58  ;;  %2569 = vmatprep.subr.bf16.mxu0 %v5594_v52  ;;  %v5625_v52 = vld [vmem:[#allocation2 + $0xa8] ss:$12 sps:$4 sm:$0xff]   ;;  %v5810_v58 = vld [vmem:[%s6222_s9 + $0x10] ss:$28 sps:$4 sm:$0xff]  }
 0x10a   : > { %2508 = vmatprep.mubr.bf16.mxu1 %v5790_v59  ;;  %v5811_v59 = vld [vmem:[%s6222_s9 + $0x18] ss:$28 sps:$4 sm:$0xff]  }
 0x10c   : > { %2570 = vmatpush1.bf16.msra.mxu0 %v5592_v53  ;;  %v6833_v53 = vrot.slane %v6822_v48, %v7682_v50 }
 0x10d   : > { %2571 = vmatprep.subr.bf16.mxu0 %v5597_v57 }
 0x10f   : > { %2396 = vmatmul.mubr.bf16.gmra.mxu0 %v5791_v1 }
 0x110   : > { %2509 = vmatmul.mubr.bf16.gmra.mxu1 %v5792_v2  ;;  %2572 = vmatpush1.bf16.msra.mxu0 %v5595_v60  ;;  %v5628_v2 = vld [vmem:[#allocation2 + $0x90] ss:$12 sps:$4 sm:$0xff]  }
 0x111   : > { %2405 = vmatprep.mubr.bf16.mxu0 %v5793_v6  ;;  %2573 = vmatprep.subr.bf16.mxu0 %v5600_v63  ;;  %v5812_v63 = vld [vmem:[%s6222_s9 + $0x4c] ss:$28 sps:$4 sm:$0xff]  }
 0x112   : > { %2518 = vmatprep.mubr.bf16.mxu1 %v5794_v7  ;;  %v5633_v7 = vld [vmem:[#allocation2 + $0x7c] ss:$12 sps:$4 sm:$0xff]  }
 0x114   : > { %2574 = vmatpush1.bf16.msra.mxu0 %v5598_v0 }
 0x115   : > { %2575 = vmatprep.subr.bf16.mxu0 %v5603_v5 }
 0x117   : > { %2406 = vmatmul.mubr.bf16.gmra.mxu0 %v5795_v13 }
 0x118   : > { %2519 = vmatmul.mubr.bf16.gmra.mxu1 %v5796_v14  ;;  %2576 = vmatpush2.bf16.msra.mxu0 %v5601_v8 }
 0x119   : > { %2415 = vmatprep.mubr.bf16.mxu0 %v5797_v17  ;;  %2577 = vmatprep.subr.bf16.mxu0 %v5606_v11  ;;  %v5636_v17 = vld [vmem:[#allocation2 + $0x64] ss:$12 sps:$4 sm:$0xff]  }
 0x11a   : > { %2528 = vmatprep.mubr.bf16.mxu1 %v5798_v19 }
 0x11c   : > { %2578 = vmatpush2.bf16.msra.mxu0 %v5604_v12 }
 0x11d   : > { %2579 = vmatprep.subr.bf16.mxu0 %v5609_v16  ;;  %v5631_v16 = vld [vmem:[#allocation2 + $0x78] ss:$12 sps:$4 sm:$0xff]  }
 0x11f   : > { %2416 = vmatmul.mubr.bf16.gmra.mxu0 %v5799_v24 }
 0x120   : > { %2529 = vmatmul.mubr.bf16.gmra.mxu1 %v5800_v25  ;;  %2580 = vmatpush2.bf16.msra.mxu0 %v5607_v20  ;;  %v5815_v25 = vld [vmem:[%s6222_s9 + $0x84] ss:$28 sps:$4 sm:$0xff]  }
 0x121   : > { %2425 = vmatprep.mubr.bf16.mxu0 %v5801_v27  ;;  %2581 = vmatprep.subr.bf16.mxu0 %v5612_v22  ;;  %v5813_v22 = vld [vmem:[%s6222_s9 + $0x48] ss:$28 sps:$4 sm:$0xff]  }
 0x122   : > { %2538 = vmatprep.mubr.bf16.mxu1 %v5802_v28  ;;  %v5634_v28 = vld [vmem:[#allocation2 + $0x60] ss:$12 sps:$4 sm:$0xff]  }
 0x124   : > { %2582 = vmatpush2.bf16.msra.mxu0 %v5610_v23  ;;  %v5814_v23 = vld [vmem:[%s6222_s9 + $0x50] ss:$28 sps:$4 sm:$0xff]  }
 0x125   : > { %2583 = vmatprep.subr.bf16.mxu0 %v5615_v26 }
 0x127   : > { %2426 = vmatmul.mubr.bf16.gmra.mxu0 %v5803_v31  ;;  %v5639_v31 = vld [vmem:[#allocation2 + $0x4c] ss:$12 sps:$4 sm:$0xff]  }
 0x128   : > { %2539 = vmatmul.mubr.bf16.gmra.mxu1 %v5804_v32  ;;  %2584 = vmatpush2.bf16.msra.mxu0 %v5613_v29 }
 0x129   : > { %2435 = vmatprep.mubr.bf16.mxu0 %v5805_v35  ;;  %2585 = vmatprep.subr.bf16.mxu0 %v5618_v30 }
 0x12a   : > { %2548 = vmatprep.mubr.bf16.mxu1 %v5806_v37 }
 0x12c   : > { %2586 = vmatpush2.bf16.msra.mxu0 %v5616_v33 }
 0x12d   : > { %2587 = vmatprep.subr.bf16.mxu0 %v5621_v38  ;;  %v5637_v38 = vld [vmem:[#allocation2 + $0x48] ss:$12 sps:$4 sm:$0xff]  }
 0x12f   : > { %2436 = vmatmul.mubr.bf16.gmra.mxu0 %v5807_v42  ;;  %v5689_v42 = vld [vmem:[#allocation2 + $0x228] ss:$12 sps:$4 sm:$0xff]  }
 0x130   : > { %2549 = vmatmul.mubr.bf16.gmra.mxu1 %v5808_v43  ;;  %2588 = vmatpush2.bf16.msra.mxu0 %v5619_v39  ;;  %v5691_v39 = vld [vmem:[#allocation2 + $0x22c] ss:$12 sps:$4 sm:$0xff]  }
 0x131   : > { %2591 = vmatprep.mubr.bf16.mxu0 %v5809_v46  ;;  %2589 = vmatprep.subr.bf16.mxu0 %v5624_v41  ;;  %v5642_v41 = vld [vmem:[#allocation2 + $0x34] ss:$12 sps:$4 sm:$0xff]  }
 0x132   : > { %2704 = vmatprep.mubr.bf16.mxu1 %v5950_v4  ;;  %v5816_v46 = vld [vmem:[%s6222_s9 + $0x80] ss:$28 sps:$4 sm:$0xff]   ;;  %3651 = vmatprep.subr.bf16.mxu1 %v5691_v39 }
 0x134   : > { %2590 = vmatpush2.bf16.msra.mxu0 %v5622_v44 }
 0x135   : > { %3538 = vmatprep.subr.bf16.mxu0 %v5627_v49  ;;  %v5817_v49 = vld [vmem:[%s6222_s9 + $0x88] ss:$28 sps:$4 sm:$0xff]  }
 0x137   : > { %v1915_v55 = vpop.f32.mrf.mxu0  ;;  %2592 = vmatmul.mubr.bf16.vlgmr.msra.gmra.mxu0 %v5810_v58  ;;  %v5694_v58 = vld [vmem:[#allocation2 + $0x214] ss:$12 sps:$4 sm:$0xff]  }
 0x138   : > { %v2028_v57 = vpop.f32.mrf.mxu1  ;;  %4808 = vmatmul.mubr.msk.bf16.vlgmr.msra.gmra.mxu1 %vm1856_vm0, %v5811_v59  ;;  %v1916_v60 = vadd.f32 %v1915_v55, %v6828_v51  ;;  %2601 = vmatprep.mubr.bf16.mxu0 %v5812_v63  ;;  %v5645_v63 = vld [vmem:[#allocation2 + $0x1c] ss:$12 sps:$4 sm:$0xff]  }
 0x139   : > { %2714 = vmatprep.mubr.bf16.mxu1 %v5950_v4  ;;  %v1917_v0 = vpop.f32.mrf.mxu0  ;;  %3539 = vmatpush1.bf16.msra.mxu0 %v5625_v52 }
 0x13a   : > { %v2030_v1 = vpop.f32.mrf.mxu1  ;;  %v6841_v5 = vadd.f32 %v2028_v57, %v1916_v60  ;;  %v1918_v6 = vadd.f32 %v1917_v0, %v6833_v53  ;;  %3540 = vmatprep.subr.bf16.mxu0 %v5630_v54  ;;  %v5640_v57 = vld [vmem:[#allocation2 + $0x30] ss:$12 sps:$4 sm:$0xff]   ;;  %3652 = vmatpush1.bf16.msra.mxu1 %v5689_v42  ;;  %v5698_v42 = vld [vmem:[#allocation2 + $0x1e0] ss:$12 sps:$4 sm:$0xff]  }
 0x13b   : > { %v6844_v8 = vpop.f32.mrf.mxu0  ;;  %v5692_v0 = vld [vmem:[#allocation2 + $0x210] ss:$12 sps:$4 sm:$0xff]   ;;  %3653 = vmatprep.subr.bf16.mxu1 %v5694_v58 }
 0x13c   : > { %v6846_v11 = vpop.f32.mrf.mxu1  ;;  %v6848_v12 = vadd.f32 %v2030_v1, %v1918_v6 }
 0x13d   : > { %v6850_v13 = vpop.f32.mrf.mxu0  ;;  %3541 = vmatpush1.bf16.msra.mxu0 %v5628_v2 }
 0x13e   : > { %v6852_v14 = vpop.f32.mrf.mxu1  ;;  %3542 = vmatprep.subr.bf16.mxu0 %v5633_v7  ;;  %3654 = vmatpush1.bf16.msra.mxu1 %v5692_v0  ;;  %v5821_v0 = vld [vmem:[%s6222_s9 + $0xf8] ss:$28 sps:$4 sm:$0xff]  }
 0x13f   : > { %v1925_v19 = vpop.f32.mrf.mxu0  ;;  %2602 = vmatmul.mubr.bf16.gmra.mxu0 %v5813_v22 }
 0x140   : > { %v2038_v20 = vpop.f32.mrf.mxu1  ;;  %4809 = vmatmul.mubr.msk.bf16.gmra.mxu1 %vm1856_vm0, %v5814_v23  ;;  %v1926_v24 = vadd.f32 %v1925_v19, %v6828_v51  ;;  %2611 = vmatprep.mubr.bf16.mxu0 %v5815_v25  ;;  %v5648_v19 = vld [vmem:[#allocation2 + $0x4] ss:$12 sps:$4 sm:$0xff]   ;;  %v5819_v25 = vld [vmem:[%s6222_s9 + $0xc0] ss:$28 sps:$4 sm:$0xff]  }
 0x141   : > { %2724 = vmatprep.mubr.bf16.mxu1 %v5950_v4  ;;  %v1927_v26 = vpop.f32.mrf.mxu0  ;;  %3543 = vmatpush1.bf16.msra.mxu0 %v5631_v16  ;;  %v5643_v16 = vld [vmem:[#allocation2 + $0x18] ss:$12 sps:$4 sm:$0xff]  }
 0x142   : > { %v2040_v27 = vpop.f32.mrf.mxu1  ;;  %v6860_v29 = vadd.f32 %v2038_v20, %v1926_v24  ;;  %v1928_v30 = vadd.f32 %v1927_v26, %v6833_v53  ;;  %3544 = vmatprep.subr.bf16.mxu0 %v5636_v17  ;;  %v5697_v17 = vld [vmem:[#allocation2 + $0x1fc] ss:$12 sps:$4 sm:$0xff]   ;;  %v5695_v20 = vld [vmem:[#allocation2 + $0x1f8] ss:$12 sps:$4 sm:$0xff]  }
 0x143   : > { %v6863_v32 = vpop.f32.mrf.mxu0  ;;  %v5818_v24 = vld [vmem:[%s6222_s9 + $0xb8] ss:$28 sps:$4 sm:$0xff]   ;;  %3655 = vmatprep.subr.bf16.mxu1 %v5697_v17 }
 0x144   : > { %v6865_v33 = vpop.f32.mrf.mxu1  ;;  %v6867_v35 = vadd.f32 %v2040_v27, %v1928_v30  ;;  %v5646_v30 = vld [vmem:[#allocation2] ss:$12 sps:$4 sm:$0xff]   ;;  %3656 = vmatpush1.bf16.msra.mxu1 %v5695_v20  ;;  %v5652_v20 = vld [vmem:[#allocation2 + $0x150] ss:$12 sps:$4 sm:$0xff]   ;;  %v1930_v40 = vadd.f32 %v6863_v32, %v6828_v51 }
 0x145   : > { %v6869_v36 = vpop.f32.mrf.mxu0  ;;  %3545 = vmatpush1.bf16.msra.mxu0 %v5634_v28 }
 0x146   : > { %v6871_v37 = vpop.f32.mrf.mxu1  ;;  %3546 = vmatprep.subr.bf16.mxu0 %v5639_v31  ;;  %v5700_v31 = vld [vmem:[#allocation2 + $0x1e4] ss:$12 sps:$4 sm:$0xff]  }
 0x147   : > { %v1935_v43 = vpop.f32.mrf.mxu0  ;;  %2612 = vmatmul.mubr.bf16.gmra.mxu0 %v5816_v46  ;;  %3657 = vmatprep.subr.bf16.mxu1 %v5700_v31 }
 0x148   : > { %v2048_v44 = vpop.f32.mrf.mxu1  ;;  %4810 = vmatmul.mubr.msk.bf16.gmra.mxu1 %vm1856_vm0, %v5817_v49  ;;  %v1936_v52 = vadd.f32 %v1935_v43, %v6828_v51  ;;  %2621 = vmatprep.mubr.bf16.mxu0 %v6496_v34 }
 0x149   : > { %2734 = vmatprep.mubr.bf16.mxu1 %v5950_v4  ;;  %v1937_v54 = vpop.f32.mrf.mxu0  ;;  %3547 = vmatpush1.bf16.msra.mxu0 %v5637_v38 }
 0x14a   : > { %v2050_v55 = vpop.f32.mrf.mxu1  ;;  %v6879_v59 = vadd.f32 %v2048_v44, %v1936_v52  ;;  %v1938_v60 = vadd.f32 %v1937_v54, %v6833_v53  ;;  %3548 = vmatprep.subr.bf16.mxu0 %v5642_v41  ;;  %v5651_v41 = vld [vmem:[#allocation2 + $0x16c] ss:$12 sps:$4 sm:$0xff]   ;;  %v5649_v52 = vld [vmem:[#allocation2 + $0x168] ss:$12 sps:$4 sm:$0xff]   ;;  %3658 = vmatpush1.bf16.msra.mxu1 %v5698_v42  ;;  %v5660_v42 = vld [vmem:[#allocation2 + $0x124] ss:$12 sps:$4 sm:$0xff]  }
 0x14b   : > { %v6882_v1 = vpop.f32.mrf.mxu0  ;;  %v5703_v54 = vld [vmem:[#allocation2 + $0x1cc] ss:$12 sps:$4 sm:$0xff]  }
 0x14c   : > { %v6884_v34 = vpop.f32.mrf.mxu1  ;;  %v6886_v2 = vadd.f32 %v2050_v55, %v1938_v60  ;;  %v5654_v55 = vld [vmem:[#allocation2 + $0x154] ss:$12 sps:$4 sm:$0xff]   ;;  %3659 = vmatprep.subr.bf16.mxu1 %v5703_v54 }
 0x14d   : > { %v6888_v6 = vpop.f32.mrf.mxu0  ;;  %3549 = vmatpush1.bf16.msra.mxu0 %v5640_v57  ;;  %v5701_v57 = vld [vmem:[#allocation2 + $0x1c8] ss:$12 sps:$4 sm:$0xff]  }
 0x14e   : > { %v6890_v7 = vpop.f32.mrf.mxu1  ;;  %3550 = vmatprep.subr.bf16.mxu0 %v5645_v63  ;;  %v5820_v63 = vld [vmem:[%s6222_s9 + $0xf0] ss:$28 sps:$4 sm:$0xff]   ;;  %3660 = vmatpush1.bf16.msra.mxu1 %v5701_v57  ;;  %s5878_s9 = sshll.u32 %s5951_s19, 4  ;;  %s5879_s9 = int_to_ptr.vmem [resolvable:$false] %s5878_s9 }
 0x14f   : > { %v1945_v22 = vpop.f32.mrf.mxu0  ;;  %2622 = vmatmul.mubr.bf16.gmra.mxu0 %v5818_v24  ;;  %s5880_s20 = scalar_lea.vmem %s5879_s9, 4096  ;;  %p5881_p11 = scmp.lt.s32.totalorder %s7626_s8, %s5879_s9 }
 0x150   : > { %v2058_v23 = vpop.f32.mrf.mxu1  ;;  %4811 = vmatmul.mubr.msk.bf16.gmra.mxu1 %vm1856_vm0, %v5819_v25  ;;  %v1946_v26 = vadd.f32 %v1945_v22, %v6828_v51  ;;  %2631 = vmatprep.mubr.bf16.mxu0 %v6528_v45  ;;  %v5706_v22 = vld [vmem:[#allocation2 + $0x1b4] ss:$12 sps:$4 sm:$0xff]   ;;  %v5657_v25 = vld [vmem:[#allocation2 + $0x13c] ss:$12 sps:$4 sm:$0xff]   ;;  %p5882_p0 = scmp.lt.s32.totalorder %s5880_s20, %s5874_s18 }
 0x151   : > { %2744 = vmatprep.mubr.bf16.mxu1 %v5950_v4  ;;  %v1947_v27 = vpop.f32.mrf.mxu0  ;;  %3551 = vmatpush1.bf16.msra.mxu0 %v5643_v16 }
 0x152   : > { %v2060_v28 = vpop.f32.mrf.mxu1  ;;  %v6898_v38 = vadd.f32 %v2058_v23, %v1946_v26  ;;  %v1948_v39 = vadd.f32 %v1947_v27, %v6833_v53  ;;  %3552 = vmatprep.subr.bf16.mxu0 %v5648_v19  ;;  %v5704_v26 = vld [vmem:[#allocation2 + $0x1b0] ss:$12 sps:$4 sm:$0xff]   ;;  %3661 = vmatprep.subr.bf16.mxu1 %v5706_v22  ;;  %p5883_p1 = por %p5882_p0, %p5881_p11 }
 0x153   : > { %v6901_v43 = vpop.f32.mrf.mxu0  ;;  %3662 = vmatpush1.bf16.msra.mxu1 %v5704_v26  ;;  %v5715_v26 = vld [vmem:[#allocation2 + $0x2ec] ss:$12 sps:$4 sm:$0xff]  }
 0x154   : > { %v6903_v45 = vpop.f32.mrf.mxu1  ;;  %v6905_v44 = vadd.f32 %v2060_v28, %v1948_v39  ;;  %v5655_v39 = vld [vmem:[#allocation2 + $0x138] ss:$12 sps:$4 sm:$0xff]   ;;  %p5884_p3 = pnand %p5883_p1, %p5877_p8 }
 0x155   : > { %v6907_v46 = vpop.f32.mrf.mxu0  ;;  %3553 = vmatpush1.bf16.msra.mxu0 %v5646_v30 }
 0x156   : > { %v6909_v49 = vpop.f32.mrf.mxu1  ;;  %3554 = vmatprep.subr.bf16.mxu0 %v5651_v41  ;;  %v5709_v41 = vld [vmem:[#allocation2 + $0x19c] ss:$12 sps:$4 sm:$0xff]  }
 0x157   : > { %v1955_v58 = vpop.f32.mrf.mxu0  ;;  %2632 = vmatmul.mubr.bf16.gmra.mxu0 %v5820_v63  ;;  %v5658_v63 = vld [vmem:[#allocation2 + $0x120] ss:$12 sps:$4 sm:$0xff]   ;;  %3663 = vmatprep.subr.bf16.mxu1 %v5709_v41  ;;  %v5713_v41 = vld [vmem:[#allocation2 + $0x2e8] ss:$12 sps:$4 sm:$0xff]  }
 0x158   : > { %v2068_v60 = vpop.f32.mrf.mxu1  ;;  %4812 = vmatmul.mubr.msk.bf16.gmra.mxu1 %vm1856_vm0, %v5821_v0  ;;  %v1956_v16 = vadd.f32 %v1955_v58, %v6828_v51  ;;  %2641 = vmatprep.mubr.bf16.mxu0 %v6560_v56  ;;  %v5712_v0 = vld [vmem:[#allocation2 + $0x184] ss:$12 sps:$4 sm:$0xff]  }
 0x159   : > { %2754 = vmatprep.mubr.bf16.mxu1 %v5950_v4  ;;  %v1957_v17 = vpop.f32.mrf.mxu0  ;;  %3555 = vmatpush2.bf16.msra.mxu0 %v5649_v52  ;;  %v5707_v52 = vld [vmem:[#allocation2 + $0x198] ss:$12 sps:$4 sm:$0xff]  }
 0x15a   : > { %v2070_v19 = vpop.f32.mrf.mxu1  ;;  %v6917_v23 = vadd.f32 %v2068_v60, %v1956_v16  ;;  %v1958_v24 = vadd.f32 %v1957_v17, %v6833_v53  ;;  %3556 = vmatprep.subr.bf16.mxu0 %v5654_v55  ;;  %3664 = vmatpush1.bf16.msra.mxu1 %v5707_v52 }
 0x15b   : > { %v6920_v27 = vpop.f32.mrf.mxu0  ;;  %3665 = vmatprep.subr.bf16.mxu1 %v5712_v0 }
 0x15c   : > { %v6922_v28 = vpop.f32.mrf.mxu1  ;;  %v6924_v56 = vadd.f32 %v2070_v19, %v1958_v24 }
 0x15d   : > { %v6926_v30 = vpop.f32.mrf.mxu0  ;;  %3557 = vmatpush2.bf16.msra.mxu0 %v5652_v20 }
 0x15e   : > { %v6928_v31 = vpop.f32.mrf.mxu1  ;;  %3558 = vmatprep.subr.bf16.mxu0 %v5657_v25  ;;  %v5661_v25 = vld [vmem:[#allocation2 + $0x108] ss:$12 sps:$4 sm:$0xff]  }
 0x15f   : > { %v1965_v54 = vpop.f32.mrf.mxu0  ;;  %2642 = vmatmul.mubr.bf16.gmra.mxu0 %v6578_v61  ;;  %v5663_v61 = vld [vmem:[#allocation2 + $0x10c] ss:$12 sps:$4 sm:$0xff]  }
 0x160   : > { %v2078_v55 = vpop.f32.mrf.mxu1  ;;  %4813 = vmatmul.mubr.msk.bf16.gmra.mxu1 %vm1856_vm0, %v6581_v62  ;;  %v1966_v57 = vadd.f32 %v1965_v54, %v6828_v51  ;;  %2651 = vmatprep.mubr.bf16.mxu0 %v6596_v3  ;;  %v5710_v62 = vld [vmem:[#allocation2 + $0x180] ss:$12 sps:$4 sm:$0xff]  }
 0x161   : > { %2764 = vmatprep.mubr.bf16.mxu1 %v5950_v4  ;;  %v1967_v58 = vpop.f32.mrf.mxu0  ;;  %3559 = vmatpush2.bf16.msra.mxu0 %v5655_v39  ;;  %v5666_v39 = vld [vmem:[#allocation2 + $0xf4] ss:$12 sps:$4 sm:$0xff]  }
 0x162   : > { %v2080_v60 = vpop.f32.mrf.mxu1  ;;  %v6936_v16 = vadd.f32 %v2078_v55, %v1966_v57  ;;  %v1968_v17 = vadd.f32 %v1967_v58, %v6833_v53  ;;  %3560 = vmatprep.subr.bf16.mxu0 %v5660_v42  ;;  %3666 = vmatpush1.bf16.msra.mxu1 %v5710_v62  ;;  %v5664_v58 = vld [vmem:[#allocation2 + $0xf0] ss:$12 sps:$4 sm:$0xff]  }
 0x163   : > { %v6939_v19 = vpop.f32.mrf.mxu0  ;;  %3667 = vmatprep.subr.bf16.mxu1 %v5715_v26  ;;  %v5721_v26 = vld [vmem:[#allocation2 + $0x2bc] ss:$12 sps:$4 sm:$0xff]  }
 0x164   : > { %v6941_v20 = vpop.f32.mrf.mxu1  ;;  %v6943_v3 = vadd.f32 %v2080_v60, %v1968_v17  ;;  %v5718_v60 = vld [vmem:[#allocation2 + $0x2d4] ss:$12 sps:$4 sm:$0xff]  }
 0x165   : > { %v6945_v22 = vpop.f32.mrf.mxu0  ;;  %3561 = vmatpush2.bf16.msra.mxu0 %v5658_v63 }
 0x166   : > { %v6947_v24 = vpop.f32.mrf.mxu1  ;;  %3562 = vmatprep.subr.bf16.mxu0 %v5663_v61  ;;  %3668 = vmatpush2.bf16.msra.mxu1 %v5713_v41 }
 0x167   : > { %v1975_v42 = vpop.f32.mrf.mxu0  ;;  %2652 = vmatmul.mubr.bf16.gmra.mxu0 %v6616_v9  ;;  %v5669_v9 = vld [vmem:[#allocation2 + $0xdc] ss:$12 sps:$4 sm:$0xff]   ;;  %3669 = vmatprep.subr.bf16.mxu1 %v5718_v60  ;;  %v5724_v60 = vld [vmem:[#allocation2 + $0x2a4] ss:$12 sps:$4 sm:$0xff]  }
 0x168   : > { %v2088_v52 = vpop.f32.mrf.mxu1  ;;  %4814 = vmatmul.mubr.msk.bf16.gmra.mxu1 %vm1856_vm0, %v6619_v10  ;;  %v1976_v54 = vadd.f32 %v1975_v42, %v6828_v51  ;;  %2661 = vmatprep.mubr.bf16.mxu0 %v6634_v15  ;;  %v5716_v10 = vld [vmem:[#allocation2 + $0x2d0] ss:$12 sps:$4 sm:$0xff]  }
 0x169   : > { %2774 = vmatprep.mubr.bf16.mxu1 %v5950_v4  ;;  %v1977_v55 = vpop.f32.mrf.mxu0  ;;  %3563 = vmatpush2.bf16.msra.mxu0 %v5661_v25  ;;  %v5667_v25 = vld [vmem:[#allocation2 + $0xd8] ss:$12 sps:$4 sm:$0xff]  }
 0x16a   : > { %v2090_v57 = vpop.f32.mrf.mxu1  ;;  %v6955_v63 = vadd.f32 %v2088_v52, %v1976_v54  ;;  %v1978_v0 = vadd.f32 %v1977_v55, %v6833_v53  ;;  %3564 = vmatprep.subr.bf16.mxu0 %v5666_v39  ;;  %v5672_v42 = vld [vmem:[#allocation2 + $0xc4] ss:$12 sps:$4 sm:$0xff]   ;;  %3670 = vmatpush2.bf16.msra.mxu1 %v5716_v10 }
 0x16b   : > { %v6958_v17 = vpop.f32.mrf.mxu0  ;;  %v5719_v39 = vld [vmem:[#allocation2 + $0x2b8] ss:$12 sps:$4 sm:$0xff]   ;;  %3671 = vmatprep.subr.bf16.mxu1 %v5721_v26  ;;  %v5673_v10 = vld [vmem:[#allocation2 + $0x170] ss:$12 sps:$4 sm:$0xff]  }
 0x16c   : > { %v6960_v61 = vpop.f32.mrf.mxu1  ;;  %v6962_v4 = vadd.f32 %v2090_v57, %v1978_v0 }
 0x16d   : > { %v6964_v15 = vpop.f32.mrf.mxu0  ;;  %3565 = vmatpush2.bf16.msra.mxu0 %v5664_v58  ;;  %v5670_v58 = vld [vmem:[#allocation2 + $0xc0] ss:$12 sps:$4 sm:$0xff]  }
 0x16e   : > { %v6966_v62 = vpop.f32.mrf.mxu1  ;;  %3566 = vmatprep.subr.bf16.mxu0 %v5669_v9  ;;  %3672 = vmatpush2.bf16.msra.mxu1 %v5719_v39 }
 0x16f   : > { %v1985_v41 = vpop.f32.mrf.mxu0  ;;  %2662 = vmatmul.mubr.bf16.gmra.mxu0 %v6646_v18  ;;  %3673 = vmatprep.subr.bf16.mxu1 %v5724_v60 }
 0x170   : > { %v2098_v52 = vpop.f32.mrf.mxu1  ;;  %4815 = vmatmul.mubr.msk.bf16.gmra.mxu1 %vm1856_vm0, %v6657_v21  ;;  %v1986_v54 = vadd.f32 %v1985_v41, %v6828_v51  ;;  %v5727_v41 = vld [vmem:[#allocation2 + $0x28c] ss:$12 sps:$4 sm:$0xff]  }
 0x171   : > { %v1987_v55 = vpop.f32.mrf.mxu0  ;;  %3567 = vmatpush2.bf16.msra.mxu0 %v5667_v25 }
 0x172   : > { %v2100_v57 = vpop.f32.mrf.mxu1  ;;  %v6972_v0 = vadd.f32 %v2098_v52, %v1986_v54  ;;  %v1988_v9 = vadd.f32 %v1987_v55, %v6833_v53  ;;  %3568 = vmatprep.subr.bf16.mxu0 %v5672_v42  ;;  %v1920_v52 = vadd.f32 %v6844_v8, %v6828_v51  ;;  %3674 = vmatpush2.bf16.msra.mxu1 %v5722_v47  ;;  %v5725_v42 = vld [vmem:[#allocation2 + $0x288] ss:$12 sps:$4 sm:$0xff]  }
 0x173   : > { %v6975_v18 = vpop.f32.mrf.mxu0  ;;  %3675 = vmatprep.subr.bf16.mxu1 %v5727_v41  ;;  %v1922_v55 = vadd.f32 %v6850_v13, %v6833_v53  ;;  %v5733_v13 = vld [vmem:[#allocation2 + $0x25c] ss:$12 sps:$4 sm:$0xff]  }
 0x174   : > { %7699 = vst [vmem:[#allocation13_spill] sm:$0xff] %v6972_v0  ;;  %7700 = vst [vmem:[#allocation14_spill] sm:$0xff] %v6975_v18  ;;  %v6977_v50 = vpop.f32.mrf.mxu1  ;;  %v6979_v21 = vadd.f32 %v2100_v57, %v1988_v9  ;;  %v5730_v9 = vld [vmem:[#allocation2 + $0x274] ss:$12 sps:$4 sm:$0xff]   ;;  %v2033_v48 = vadd.f32 %v6846_v11, %v1920_v52  ;;  %v2043_v18 = vadd.f32 %v6865_v33, %v1930_v40 }
 0x175   : > { %7701 = vst [vmem:[#allocation15_spill] sm:$0xff] %v6977_v50  ;;  %v6981_v26 = vpop.f32.mrf.mxu0  ;;  %3569 = vmatpush2.bf16.msra.mxu0 %v5670_v58  ;;  %v2035_v0 = vadd.f32 %v6852_v14, %v1922_v55  ;;  %v1940_v40 = vadd.f32 %v6882_v1, %v6828_v51 }
 0x176   : > { %7702 = vst [vmem:[#allocation16_spill] sm:$0xff] %v6979_v21  ;;  %7703 = vst [vmem:[#allocation17_spill] sm:$0xff] %v6981_v26  ;;  %v6983_v25 = vpop.f32.mrf.mxu1  ;;  %4943 = vmatprep.subr.bf16.mxu0 %v5673_v10  ;;  %3676 = vmatpush2.bf16.msra.mxu1 %v5725_v42 }
 0x177   : > { %7704 = vst [vmem:[#allocation18_spill] sm:$0xff] %v6983_v25  ;;  %v2141_v39 = vpop.f32.mrf.mxu0  ;;  %v5728_v25 = vld [vmem:[#allocation2 + $0x270] ss:$12 sps:$4 sm:$0xff]   ;;  %3677 = vmatprep.subr.bf16.mxu1 %v5730_v9 }
 0x178   : > { %v2254_v54 = vpop.f32.mrf.mxu1  ;;  %v2142_v8 = vadd.f32 %v2141_v39, %v6841_v5  ;;  %v1932_v39 = vadd.f32 %v6869_v36, %v6833_v53 }
 0x179   : > { %v2143_v57 = vpop.f32.mrf.mxu0 }
 0x17a   : > { %v2256_v60 = vpop.f32.mrf.mxu1  ;;  %v2144_v58 = vadd.f32 %v2143_v57, %v6848_v12  ;;  %3678 = vmatpush2.bf16.msra.mxu1 %v5728_v25  ;;  %v5731_v12 = vld [vmem:[#allocation2 + $0x258] ss:$12 sps:$4 sm:$0xff]   ;;  %v2255_v42 = vadd.f32 %v2254_v54, %v2142_v8 }
 0x17b   : > { %v2145_v10 = vpop.f32.mrf.mxu0  ;;  %3679 = vmatprep.subr.bf16.mxu1 %v5733_v13  ;;  %v5675_v13 = vld [vmem:[#allocation2 + $0x158] ss:$12 sps:$4 sm:$0xff]  }
 0x17c   : > { %v2258_v47 = vpop.f32.mrf.mxu1  ;;  %v2146_v41 = vadd.f32 %v2145_v10, %v2033_v48  ;;  %v2257_v26 = vadd.f32 %v2256_v60, %v2144_v58  ;;  %v5736_v10 = vld [vmem:[#allocation2 + $0x244] ss:$12 sps:$4 sm:$0xff]   ;;  %v2785_v25 = vmax.f32 %v2255_v42, 0.0  ;;  %v1942_v42 = vadd.f32 %v6888_v6, %v6833_v53 }
 0x17d   : > { %v2147_v21 = vpop.f32.mrf.mxu0 }
 0x17e   : > { %v2260_v50 = vpop.f32.mrf.mxu1  ;;  %v2259_v11 = vadd.f32 %v2258_v47, %v2146_v41  ;;  %v2148_v52 = vadd.f32 %v2147_v21, %v2035_v0  ;;  %v2786_v32 = vmax.f32 %v2257_v26, 0.0  ;;  %3680 = vmatpush2.bf16.msra.mxu1 %v5731_v12  ;;  %v5734_v21 = vld [vmem:[#allocation2 + $0x240] ss:$12 sps:$4 sm:$0xff]   ;;  %v5674_v41 = vld [vmem:[#allocation2 + $0xb0] ss:$12 sps:$4 sm:$0xff]   ;;  %v2055_v6 = vadd.f32 %v6890_v7, %v1942_v42 }
 0x17f   : > { %v2151_v57 = vpop.f32.mrf.mxu0  ;;  %3681 = vmatprep.subr.bf16.mxu1 %v5736_v10 }
 0x180   : > { %v2264_v5 = vpop.f32.mrf.mxu1  ;;  %v2261_v14 = vadd.f32 %v2260_v50, %v2148_v52  ;;  %v2789_v48 = vmax.f32 %v2259_v11, 0.0  ;;  %v2152_v54 = vadd.f32 %v2151_v57, %v6860_v29  ;;  %v2045_v50 = vadd.f32 %v6871_v37, %v1932_v39  ;;  %v5676_v57 = vld [vmem:[#allocation2 + $0x98] ss:$12 sps:$4 sm:$0xff]  }
 0x181   : > { %v2153_v55 = vpop.f32.mrf.mxu0 }
 0x182   : > { %v2266_v9 = vpop.f32.mrf.mxu1  ;;  %v2790_v60 = vmax.f32 %v2261_v14, 0.0  ;;  %v2154_v0 = vadd.f32 %v2153_v55, %v6867_v35  ;;  %v7005_v33 = vpack.c.bf16 %v2789_v48, %v2785_v25  ;;  %3682 = vmatpush2.bf16.msra.mxu1 %v5734_v21  ;;  %v2265_v12 = vadd.f32 %v2264_v5, %v2152_v54  ;;  %v5677_v55 = vld [vmem:[#allocation2 + $0x140] ss:$12 sps:$4 sm:$0xff]  }
 0x183   : > { %v2155_v58 = vpop.f32.mrf.mxu0 }
 0x184   : > { %v2268_v8 = vpop.f32.mrf.mxu1  ;;  %v2156_v36 = vadd.f32 %v2155_v58, %v2043_v18  ;;  %v7001_v47 = vpack.c.bf16 %v2790_v60, %v2786_v32  ;;  %v2267_v11 = vadd.f32 %v2266_v9, %v2154_v0  ;;  %v2053_v9 = vadd.f32 %v6884_v34, %v1940_v40  ;;  %v5679_v40 = vld [vmem:[#allocation2 + $0x128] ss:$12 sps:$4 sm:$0xff]  }
 0x185   : > { %v2157_v35 = vpop.f32.mrf.mxu0  ;;  %v2793_v60 = vmax.f32 %v2265_v12, 0.0  ;;  %v1950_v34 = vadd.f32 %v6901_v43, %v6828_v51  ;;  %v1952_v43 = vadd.f32 %v6907_v46, %v6833_v53 }
 0x186   : > { %v2270_v26 = vpop.f32.mrf.mxu1  ;;  %v2269_v52 = vadd.f32 %v2268_v8, %v2156_v36  ;;  %v2158_v29 = vadd.f32 %v2157_v35, %v2045_v50  ;;  %3570 = vmatprep.mubr.bf16.mxu0 %v7001_v47  ;;  %v2794_v10 = vmax.f32 %v2267_v11, 0.0  ;;  %v5678_v8 = vld [vmem:[#allocation2 + $0x80] ss:$12 sps:$4 sm:$0xff]   ;;  %v5737_v50 = vld [vmem:[#allocation2 + $0x2f0] ss:$12 sps:$4 sm:$0xff]  }
 0x187   : > { %v2161_v37 = vpop.f32.mrf.mxu0  ;;  %3571 = vmatmul.mubr.bf16.vlgmr.msra.gmra.mxu0 %v7005_v33  ;;  %5007 = vmatprep.subr.bf16.mxu1 %v5737_v50  ;;  %v2065_v46 = vadd.f32 %v6909_v49, %v1952_v43 }
 0x188   : > { %v2274_v18 = vpop.f32.mrf.mxu1  ;;  %v2271_v1 = vadd.f32 %v2270_v26, %v2158_v29  ;;  %4944 = vmatpush3.bf16.msra.mxu0 %v5674_v41  ;;  %v2797_v39 = vmax.f32 %v2269_v52, 0.0  ;;  %v2162_v0 = vadd.f32 %v2161_v37, %v6879_v59  ;;  %v5680_v29 = vld [vmem:[#allocation2 + $0x68] ss:$12 sps:$4 sm:$0xff]  }
 0x189   : > { %v2163_v14 = vpop.f32.mrf.mxu0  ;;  %4945 = vmatprep.subr.bf16.mxu0 %v5675_v13 }
 0x18a   : > { %v2276_v48 = vpop.f32.mrf.mxu1  ;;  %v2798_v32 = vmax.f32 %v2271_v1, 0.0  ;;  %v2164_v5 = vadd.f32 %v2163_v14, %v6886_v2  ;;  %v7019_v36 = vpack.c.bf16 %v2797_v39, %v2793_v60  ;;  %v2275_v7 = vadd.f32 %v2274_v18, %v2162_v0  ;;  %v5681_v1 = vld [vmem:[#allocation2 + $0x110] ss:$12 sps:$4 sm:$0xff]  }
 0x18b   : > { %v2165_v21 = vpop.f32.mrf.mxu0  ;;  %v5682_v60 = vld [vmem:[#allocation2 + $0x50] ss:$12 sps:$4 sm:$0xff]  }
 0x18c   : > { %v2278_v25 = vpop.f32.mrf.mxu1  ;;  %v2166_v54 = vadd.f32 %v2165_v21, %v2053_v9  ;;  %v7015_v58 = vpack.c.bf16 %v2798_v32, %v2794_v10  ;;  %4946 = vmatpush3.bf16.msra.mxu0 %v5676_v57  ;;  %v2277_v59 = vadd.f32 %v2276_v48, %v2164_v5  ;;  %v2063_v57 = vadd.f32 %v6903_v45, %v1950_v34 }
 0x18d   : > { %v2167_v41 = vpop.f32.mrf.mxu0  ;;  %4947 = vmatprep.subr.bf16.mxu0 %v5677_v55  ;;  %v2801_v48 = vmax.f32 %v2275_v7, 0.0  ;;  %v1962_v34 = vadd.f32 %v6926_v30, %v6833_v53 }
 0x18e   : > { %v2280_v2 = vpop.f32.mrf.mxu1  ;;  %v2279_v35 = vadd.f32 %v2278_v25, %v2166_v54  ;;  %v2168_v26 = vadd.f32 %v2167_v41, %v2055_v6  ;;  %3580 = vmatprep.mubr.bf16.mxu0 %v7015_v58  ;;  %v2802_v39 = vmax.f32 %v2277_v59, 0.0  ;;  %v5683_v25 = vld [vmem:[#allocation2 + $0xf8] ss:$12 sps:$4 sm:$0xff]  }
 0x18f   : > { %v2171_v13 = vpop.f32.mrf.mxu0  ;;  %3581 = vmatmul.mubr.bf16.gmra.mxu0 %v7019_v36  ;;  %v2075_v30 = vadd.f32 %v6928_v31, %v1962_v34 }
 0x190   : > { %v2284_v11 = vpop.f32.mrf.mxu1  ;;  %v2281_v52 = vadd.f32 %v2280_v2, %v2168_v26  ;;  %4948 = vmatpush3.bf16.msra.mxu0 %v5678_v8  ;;  %v2805_v12 = vmax.f32 %v2279_v35, 0.0  ;;  %v2172_v55 = vadd.f32 %v2171_v13, %v6898_v38  ;;  %v5684_v2 = vld [vmem:[#allocation2 + $0x38] ss:$12 sps:$4 sm:$0xff]  }
 0x191   : > { %v2173_v37 = vpop.f32.mrf.mxu0  ;;  %4949 = vmatprep.subr.bf16.mxu0 %v5679_v40 }
 0x192   : > { %v2286_v42 = vpop.f32.mrf.mxu1  ;;  %v2806_v14 = vmax.f32 %v2281_v52, 0.0  ;;  %v2174_v18 = vadd.f32 %v2173_v37, %v6905_v44  ;;  %v7031_v0 = vpack.c.bf16 %v2805_v12, %v2801_v48  ;;  %v1960_v44 = vadd.f32 %v6920_v27, %v6828_v51  ;;  %v5685_v27 = vld [vmem:[#allocation2 + $0xe0] ss:$12 sps:$4 sm:$0xff]  }
 0x193   : > { %v2175_v9 = vpop.f32.mrf.mxu0  ;;  %v2285_v49 = vadd.f32 %v2284_v11, %v2172_v55 }
 0x194   : > { %v2288_v10 = vpop.f32.mrf.mxu1  ;;  %v2176_v32 = vadd.f32 %v2175_v9, %v2063_v57  ;;  %v7029_v5 = vpack.c.bf16 %v2806_v14, %v2802_v39  ;;  %4950 = vmatpush3.bf16.msra.mxu0 %v5680_v29  ;;  %v2287_v6 = vadd.f32 %v2286_v42, %v2174_v18  ;;  %v2073_v26 = vadd.f32 %v6922_v28, %v1960_v44  ;;  %v5687_v14 = vld [vmem:[#allocation2 + $0xc8] ss:$12 sps:$4 sm:$0xff]  }
 0x195   : > { %v2177_v21 = vpop.f32.mrf.mxu0  ;;  %4951 = vmatprep.subr.bf16.mxu0 %v5681_v1  ;;  %v2809_v43 = vmax.f32 %v2285_v49, 0.0  ;;  %v5686_v1 = vld [vmem:[#allocation2 + $0x20] ss:$12 sps:$4 sm:$0xff]  }
 0x196   : > { %v2290_v45 = vpop.f32.mrf.mxu1  ;;  %v2289_v38 = vadd.f32 %v2288_v10, %v2176_v32  ;;  %v2178_v54 = vadd.f32 %v2177_v21, %v2065_v46  ;;  %3590 = vmatprep.mubr.bf16.mxu0 %v7029_v5  ;;  %v2810_v7 = vmax.f32 %v2287_v6, 0.0  ;;  %v1972_v10 = vadd.f32 %v6945_v22, %v6833_v53  ;;  %v5688_v32 = vld [vmem:[#allocation2 + $0x8] ss:$12 sps:$4 sm:$0xff]  }
 0x197   : > { %v2181_v8 = vpop.f32.mrf.mxu0  ;;  %3591 = vmatmul.mubr.bf16.gmra.mxu0 %v7031_v0 }
 0x198   : > { %v2294_v50 = vpop.f32.mrf.mxu1  ;;  %v2291_v41 = vadd.f32 %v2290_v45, %v2178_v54  ;;  %4952 = vmatpush3.bf16.msra.mxu0 %v5682_v60  ;;  %v2813_v40 = vmax.f32 %v2289_v38, 0.0  ;;  %v2182_v52 = vadd.f32 %v2181_v8, %v6917_v23  ;;  %v2085_v22 = vadd.f32 %v6947_v24, %v1972_v10 }
 0x199   : > { %v2183_v59 = vpop.f32.mrf.mxu0  ;;  %4953 = vmatprep.subr.bf16.mxu0 %v5683_v25  ;;  %v1982_v24 = vadd.f32 %v6964_v15, %v6833_v53 }
 0x19a   : > { %v2296_v35 = vpop.f32.mrf.mxu1  ;;  %v2814_v13 = vmax.f32 %v2291_v41, 0.0  ;;  %v2184_v11 = vadd.f32 %v2183_v59, %v6924_v56  ;;  %v7045_v57 = vpack.c.bf16 %v2813_v40, %v2809_v43  ;;  %v1970_v56 = vadd.f32 %v6939_v19, %v6828_v51 }
 0x19b   : > { %v2185_v29 = vpop.f32.mrf.mxu0  ;;  %v2295_v31 = vadd.f32 %v2294_v50, %v2182_v52 }
 0x19c   : > { %v2298_v12 = vpop.f32.mrf.mxu1  ;;  %v2186_v37 = vadd.f32 %v2185_v29, %v2073_v26  ;;  %v7043_v42 = vpack.c.bf16 %v2814_v13, %v2810_v7  ;;  %4954 = vmatpush3.bf16.msra.mxu0 %v5684_v2  ;;  %v2297_v18 = vadd.f32 %v2296_v35, %v2184_v11  ;;  %v2083_v19 = vadd.f32 %v6941_v20, %v1970_v56 }
 0x19d   : > { %v2187_v39 = vpop.f32.mrf.mxu0  ;;  %4955 = vmatprep.subr.bf16.mxu0 %v5685_v27  ;;  %v2817_v38 = vmax.f32 %v2295_v31, 0.0  ;;  %v1980_v20 = vadd.f32 %v6958_v17, %v6828_v51 }
 0x19e   : > { %v2300_v28 = vpop.f32.mrf.mxu1  ;;  %v2299_v23 = vadd.f32 %v2298_v12, %v2186_v37  ;;  %v2188_v48 = vadd.f32 %v2187_v39, %v2075_v30  ;;  %3600 = vmatprep.mubr.bf16.mxu0 %v7043_v42  ;;  %v2818_v25 = vmax.f32 %v2297_v18, 0.0 }
 0x19f   : > { %v2191_v55 = vpop.f32.mrf.mxu0  ;;  %3601 = vmatmul.mubr.bf16.gmra.mxu0 %v7045_v57  ;;  %v2093_v52 = vadd.f32 %v6960_v61, %v1980_v20  ;;  %v7705_v61 = vld [vmem:[#allocation14_spill] sm:$0xff] }
 0x1a0   : > { %v2304_v9 = vpop.f32.mrf.mxu1  ;;  %v2301_v46 = vadd.f32 %v2300_v28, %v2188_v48  ;;  %4956 = vmatpush3.bf16.msra.mxu0 %v5686_v1  ;;  %v2821_v60 = vmax.f32 %v2299_v23, 0.0  ;;  %v2192_v54 = vadd.f32 %v2191_v55, %v6936_v16  ;;  %v2095_v28 = vadd.f32 %v6966_v62, %v1982_v24  ;;  %v7706_v62 = vld [vmem:[#allocation17_spill] sm:$0xff] }
 0x1a1   : > { %v2193_v21 = vpop.f32.mrf.mxu0  ;;  %4957 = vmatprep.subr.bf16.mxu0 %v5687_v14  ;;  %v1990_v48 = vadd.f32 %v7705_v61, %v6828_v51 }
 0x1a2   : > { %v2306_v45 = vpop.f32.mrf.mxu1  ;;  %v2822_v44 = vmax.f32 %v2301_v46, 0.0  ;;  %v2194_v6 = vadd.f32 %v2193_v21, %v6943_v3  ;;  %v7059_v41 = vpack.c.bf16 %v2821_v60, %v2817_v38  ;;  %v2305_v16 = vadd.f32 %v2304_v9, %v2192_v54  ;;  %v7707_v60 = vld [vmem:[#allocation11_spill] sm:$0xff] }
 0x1a3   : > { %v2195_v49 = vpop.f32.mrf.mxu0  ;;  %v1992_v46 = vadd.f32 %v7706_v62, %v6833_v53  ;;  %v7687_v21 = vsub.s32 2, %v7707_v60  ;;  %v590_v51 = vsub.s32 3, %v7707_v60  ;;  %v7711_v53 = vld [vmem:[#allocation18_spill] sm:$0xff] }
 0x1a4   : > { %v2308_v8 = vpop.f32.mrf.mxu1  ;;  %v2196_v50 = vadd.f32 %v2195_v49, %v2083_v19  ;;  %v7057_v34 = vpack.c.bf16 %v2822_v44, %v2818_v25  ;;  %4958 = vmatpush3.bf16.msra.mxu0 %v5688_v32  ;;  %v2307_v59 = vadd.f32 %v2306_v45, %v2194_v6  ;;  %v2825_v30 = vmax.f32 %v2305_v16, 0.0  ;;  %v7708_v44 = vld [vmem:[#allocation15_spill] sm:$0xff]  ;;  %v7709_v49 = vld [vmem:[#allocation16_spill] sm:$0xff] }
 0x1a5   : > { %v2197_v2 = vpop.f32.mrf.mxu0  ;;  %v2103_v6 = vadd.f32 %v7708_v44, %v1990_v48  ;;  %v7712_v16 = vld [vmem:[#allocation12_spill] sm:$0xff] }
 0x1a6   : > { %v2310_v40 = vpop.f32.mrf.mxu1  ;;  %v2309_v3 = vadd.f32 %v2308_v8, %v2196_v50  ;;  %v2198_v35 = vadd.f32 %v2197_v2, %v2085_v22  ;;  %3610 = vmatprep.mubr.bf16.mxu0 %v7057_v34  ;;  %v2826_v17 = vmax.f32 %v2307_v59, 0.0  ;;  %v7710_v50 = vld [vmem:[#allocation13_spill] sm:$0xff]  ;;  %v2105_v59 = vadd.f32 %v7711_v53, %v1992_v46 }
 0x1a7   : > { %v2201_v27 = vpop.f32.mrf.mxu0  ;;  %3611 = vmatmul.mubr.bf16.gmra.mxu0 %v7059_v41 }
 0x1a8   : > { %v2314_v26 = vpop.f32.mrf.mxu1  ;;  %v2311_v7 = vadd.f32 %v2310_v40, %v2198_v35  ;;  %v2829_v13 = vmax.f32 %v2309_v3, 0.0  ;;  %v2202_v37 = vadd.f32 %v2201_v27, %v6955_v63  ;;  %v7092_v27 = vrot.slane %v7712_v16, %v7687_v21 }
 0x1a9   : > { %v2203_v11 = vpop.f32.mrf.mxu0 }
 0x1aa   : > { %v2316_v43 = vpop.f32.mrf.mxu1  ;;  %v2830_v29 = vmax.f32 %v2311_v7, 0.0  ;;  %v2204_v12 = vadd.f32 %v2203_v11, %v6962_v4  ;;  %v7073_v15 = vpack.c.bf16 %v2829_v13, %v2825_v30  ;;  %v2315_v63 = vadd.f32 %v2314_v26, %v2202_v37 }
 0x1ab   : > { %v2205_v1 = vpop.f32.mrf.mxu0 }
 0x1ac   : > { %v2318_v39 = vpop.f32.mrf.mxu1  ;;  %v2206_v14 = vadd.f32 %v2205_v1, %v2093_v52  ;;  %v7071_v56 = vpack.c.bf16 %v2830_v29, %v2826_v17  ;;  %v2317_v31 = vadd.f32 %v2316_v43, %v2204_v12  ;;  %v2833_v22 = vmax.f32 %v2315_v63, 0.0 }
 0x1ad   : > { %v2207_v18 = vpop.f32.mrf.mxu0  ;;  %v7098_v52 = vrot.slane %v7712_v16, %v590_v51 }
 0x1ae   : > { %v2320_v23 = vpop.f32.mrf.mxu1  ;;  %v2319_v55 = vadd.f32 %v2318_v39, %v2206_v14  ;;  %v2208_v4 = vadd.f32 %v2207_v18, %v2095_v28  ;;  %3620 = vmatprep.mubr.bf16.mxu0 %v7071_v56  ;;  %v2834_v38 = vmax.f32 %v2317_v31, 0.0 }
 0x1af   : > { %v2211_v9 = vpop.f32.mrf.mxu0  ;;  %3621 = vmatmul.mubr.bf16.gmra.mxu0 %v7073_v15 }
 0x1b0   : > { %v2324_v10 = vpop.f32.mrf.mxu1  ;;  %v2321_v32 = vadd.f32 %v2320_v23, %v2208_v4  ;;  %v2837_v45 = vmax.f32 %v2319_v55, 0.0  ;;  %v2212_v2 = vadd.f32 %v2211_v9, %v7710_v50 }
 0x1b1   : > { %v2213_v19 = vpop.f32.mrf.mxu0 }
 0x1b2   : > { %v2326_v25 = vpop.f32.mrf.mxu1  ;;  %v2838_v54 = vmax.f32 %v2321_v32, 0.0  ;;  %v2214_v8 = vadd.f32 %v2213_v19, %v7709_v49  ;;  %v7094_v26 = vpack.c.bf16 %v2837_v45, %v2833_v22  ;;  %v2325_v17 = vadd.f32 %v2324_v10, %v2212_v2 }
 0x1b3   : > { %v2215_v40 = vpop.f32.mrf.mxu0 }
 0x1b4   : > { %v2328_v20 = vpop.f32.mrf.mxu1  ;;  %v2216_v3 = vadd.f32 %v2215_v40, %v2103_v6  ;;  %v7087_v35 = vpack.c.bf16 %v2838_v54, %v2834_v38  ;;  %v2327_v13 = vadd.f32 %v2326_v25, %v2214_v8  ;;  %v2841_v48 = vmax.f32 %v2325_v17, 0.0 }
 0x1b5   : > { %v2217_v24 = vpop.f32.mrf.mxu0 }
 0x1b6   : > { %v2330_v7 = vpop.f32.mrf.mxu1  ;;  %v2329_v11 = vadd.f32 %v2328_v20, %v2216_v3  ;;  %v2218_v43 = vadd.f32 %v2217_v24, %v2105_v59  ;;  %3630 = vmatprep.mubr.bf16.mxu0 %v7087_v35  ;;  %v2842_v14 = vmax.f32 %v2327_v13, 0.0 }
 0x1b7   : > { %v2367_v29 = vpop.f32.mrf.mxu0  ;;  %3631 = vmatmul.mubr.bf16.gmra.mxu0 %v7094_v26 }
 0x1b8   : > { %v2480_v12 = vpop.f32.mrf.mxu1  ;;  %v2331_v30 = vadd.f32 %v2330_v7, %v2218_v43  ;;  %v2368_v37 = vadd.f32 %v2367_v29, %v7092_v27  ;;  %v2845_v1 = vmax.f32 %v2329_v11, 0.0 }
 0x1b9   : > { %v2369_v39 = vpop.f32.mrf.mxu0 }
 0x1ba   : > { %v2482_v28 = vpop.f32.mrf.mxu1  ;;  %v2846_v18 = vmax.f32 %v2331_v30, 0.0  ;;  %v7102_v23 = vadd.f32 %v2480_v12, %v2368_v37  ;;  %v2370_v61 = vadd.f32 %v2369_v39, %v7098_v52  ;;  %v7113_v9 = vpack.c.bf16 %v2845_v1, %v2841_v48 }
 0x1bb   : > { %v7105_v31 = vpop.f32.mrf.mxu0 }
 0x1bc   : > { %v7107_v55 = vpop.f32.mrf.mxu1  ;;  %v7109_v4 = vadd.f32 %v2482_v28, %v2370_v61  ;;  %v7111_v63 = vpack.c.bf16 %v2846_v18, %v2842_v14 }
 0x1bd   : > { %v7115_v10 = vpop.f32.mrf.mxu0 }
 0x1be   : > { %v7117_v62 = vpop.f32.mrf.mxu1  ;;  %3640 = vmatprep.mubr.bf16.mxu0 %v7111_v63 }
 0x1bf   : > { %v2377_v46 = vpop.f32.mrf.mxu0  ;;  %3641 = vmatmul.mubr.bf16.gmra.mxu0 %v7113_v9 }
 0x1c0   : > { %v2490_v32 = vpop.f32.mrf.mxu1  ;;  %v2378_v45 = vadd.f32 %v2377_v46, %v7092_v27  ;;  %3796 = vmatprep.mubr.bf16.mxu0 %v7001_v47 }
 0x1c1   : > { %v2379_v19 = vpop.f32.mrf.mxu0 }
 0x1c2   : > { %v2492_v25 = vpop.f32.mrf.mxu1  ;;  %v7123_v51 = vadd.f32 %v2490_v32, %v2378_v45  ;;  %v2380_v44 = vadd.f32 %v2379_v19, %v7098_v52 }
 0x1c3   : > { %v7126_v6 = vpop.f32.mrf.mxu0 }
 0x1c4   : > { %v7128_v38 = vpop.f32.mrf.mxu1  ;;  %v7130_v54 = vadd.f32 %v2492_v25, %v2380_v44 }
 0x1c5   : > { %v7132_v49 = vpop.f32.mrf.mxu0 }
 0x1c6   : > { %v7134_v8 = vpop.f32.mrf.mxu1 }
 0x1c7   : > { %v2387_v22 = vpop.f32.mrf.mxu0  ;;  %3797 = vmatmul.mubr.bf16.vlgmr.msra.gmra.mxu0 %v7005_v33 }
 0x1c8   : > { %v2500_v50 = vpop.f32.mrf.mxu1  ;;  %v2388_v47 = vadd.f32 %v2387_v22, %v7092_v27  ;;  %3804 = vmatprep.mubr.bf16.mxu0 %v7015_v58 }
 0x1c9   : > { %v2389_v2 = vpop.f32.mrf.mxu0 }
 0x1ca   : > { %v2502_v40 = vpop.f32.mrf.mxu1  ;;  %v7139_v20 = vadd.f32 %v2500_v50, %v2388_v47  ;;  %v2390_v53 = vadd.f32 %v2389_v2, %v7098_v52 }
 0x1cb   : > { %v7142_v59 = vpop.f32.mrf.mxu0 }
 0x1cc   : > { %v7144_v3 = vpop.f32.mrf.mxu1  ;;  %v7146_v16 = vadd.f32 %v2502_v40, %v2390_v53 }
 0x1cd   : > { %v7148_v24 = vpop.f32.mrf.mxu0 }
 0x1ce   : > { %v7150_v7 = vpop.f32.mrf.mxu1 }
 0x1cf   : > { %v2397_v33 = vpop.f32.mrf.mxu0  ;;  %3805 = vmatmul.mubr.bf16.gmra.mxu0 %v7019_v36 }
 0x1d0   : > { %v2510_v13 = vpop.f32.mrf.mxu1  ;;  %v2398_v58 = vadd.f32 %v2397_v33, %v7092_v27  ;;  %3812 = vmatprep.mubr.bf16.mxu0 %v7029_v5 }
 0x1d1   : > { %v2399_v11 = vpop.f32.mrf.mxu0 }
 0x1d2   : > { %v2512_v43 = vpop.f32.mrf.mxu1  ;;  %v7155_v17 = vadd.f32 %v2510_v13, %v2398_v58  ;;  %v2400_v29 = vadd.f32 %v2399_v11, %v7098_v52 }
 0x1d3   : > { %v7158_v12 = vpop.f32.mrf.mxu0 }
 0x1d4   : > { %v7160_v30 = vpop.f32.mrf.mxu1  ;;  %v7162_v37 = vadd.f32 %v2512_v43, %v2400_v29 }
 0x1d5   : > { %v7164_v1 = vpop.f32.mrf.mxu0 }
 0x1d6   : > { %v7166_v39 = vpop.f32.mrf.mxu1 }
 0x1d7   : > { %v2407_v36 = vpop.f32.mrf.mxu0  ;;  %3813 = vmatmul.mubr.bf16.gmra.mxu0 %v7031_v0 }
 0x1d8   : > { %v2520_v28 = vpop.f32.mrf.mxu1  ;;  %v2408_v5 = vadd.f32 %v2407_v36, %v7092_v27  ;;  %3820 = vmatprep.mubr.bf16.mxu0 %v7043_v42 }
 0x1d9   : > { %v2409_v14 = vpop.f32.mrf.mxu0 }
 0x1da   : > { %v2522_v18 = vpop.f32.mrf.mxu1  ;;  %v7171_v61 = vadd.f32 %v2520_v28, %v2408_v5  ;;  %v2410_v48 = vadd.f32 %v2409_v14, %v7098_v52 }
 0x1db   : > { %v7174_v46 = vpop.f32.mrf.mxu0 }
 0x1dc   : > { %v7176_v32 = vpop.f32.mrf.mxu1  ;;  %v7178_v45 = vadd.f32 %v2522_v18, %v2410_v48 }
 0x1dd   : > { %v7180_v19 = vpop.f32.mrf.mxu0 }
 0x1de   : > { %v7182_v25 = vpop.f32.mrf.mxu1 }
 0x1df   : > { %v2417_v0 = vpop.f32.mrf.mxu0  ;;  %3821 = vmatmul.mubr.bf16.gmra.mxu0 %v7045_v57 }
 0x1e0   : > { %v2530_v44 = vpop.f32.mrf.mxu1  ;;  %v2418_v42 = vadd.f32 %v2417_v0, %v7092_v27  ;;  %3828 = vmatprep.mubr.bf16.mxu0 %v7057_v34 }
 0x1e1   : > { %v2419_v22 = vpop.f32.mrf.mxu0 }
 0x1e2   : > { %v2532_v50 = vpop.f32.mrf.mxu1  ;;  %v7187_v47 = vadd.f32 %v2530_v44, %v2418_v42  ;;  %v2420_v2 = vadd.f32 %v2419_v22, %v7098_v52 }
 0x1e3   : > { %v7190_v40 = vpop.f32.mrf.mxu0 }
 0x1e4   : > { %v7192_v53 = vpop.f32.mrf.mxu1  ;;  %v7194_v33 = vadd.f32 %v2532_v50, %v2420_v2 }
 0x1e5   : > { %v7196_v13 = vpop.f32.mrf.mxu0 }
 0x1e6   : > { %v7198_v58 = vpop.f32.mrf.mxu1 }
 0x1e7   : > { %v2427_v57 = vpop.f32.mrf.mxu0  ;;  %3829 = vmatmul.mubr.bf16.gmra.mxu0 %v7059_v41 }
 0x1e8   : > { %v2540_v11 = vpop.f32.mrf.mxu1  ;;  %v2428_v34 = vadd.f32 %v2427_v57, %v7092_v27  ;;  %3836 = vmatprep.mubr.bf16.mxu0 %v7071_v56 }
 0x1e9   : > { %v2429_v43 = vpop.f32.mrf.mxu0 }
 0x1ea   : > { %v2542_v29 = vpop.f32.mrf.mxu1  ;;  %v7203_v36 = vadd.f32 %v2540_v11, %v2428_v34  ;;  %v2430_v28 = vadd.f32 %v2429_v43, %v7098_v52 }
 0x1eb   : > { %v7206_v5 = vpop.f32.mrf.mxu0 }
 0x1ec   : > { %v7208_v14 = vpop.f32.mrf.mxu1  ;;  %v7210_v18 = vadd.f32 %v2542_v29, %v2430_v28 }
 0x1ed   : > { %v7212_v48 = vpop.f32.mrf.mxu0 }
 0x1ee   : > { %v7214_v0 = vpop.f32.mrf.mxu1 }
 0x1ef   : > { %v2437_v41 = vpop.f32.mrf.mxu0  ;;  %3837 = vmatmul.mubr.bf16.gmra.mxu0 %v7073_v15  ;;  %v2372_v15 = vadd.f32 %v7105_v31, %v7092_v27 }
 0x1f0   : > { %v2550_v44 = vpop.f32.mrf.mxu1  ;;  %v2438_v56 = vadd.f32 %v2437_v41, %v7092_v27  ;;  %3844 = vmatprep.mubr.bf16.mxu0 %v7087_v35  ;;  %v2374_v41 = vadd.f32 %v7115_v10, %v7098_v52  ;;  %v2382_v10 = vadd.f32 %v7126_v6, %v7092_v27 }
 0x1f1   : > { %v2439_v42 = vpop.f32.mrf.mxu0 }
 0x1f2   : > { %v2552_v22 = vpop.f32.mrf.mxu1  ;;  %v7219_v50 = vadd.f32 %v2550_v44, %v2438_v56  ;;  %v2440_v2 = vadd.f32 %v2439_v42, %v7098_v52  ;;  %v2485_v42 = vadd.f32 %v7107_v55, %v2372_v15  ;;  %v2487_v31 = vadd.f32 %v7117_v62, %v2374_v41 }
 0x1f3   : > { %v7222_v57 = vpop.f32.mrf.mxu0 }
 0x1f4   : > { %7713 = vst [vmem:[#allocation14_spill] sm:$0xff] %v7219_v50  ;;  %7714 = vst [vmem:[#allocation17_spill] sm:$0xff] %v7222_v57  ;;  %v7224_v11 = vpop.f32.mrf.mxu1  ;;  %v7226_v34 = vadd.f32 %v2552_v22, %v2440_v2 }
 0x1f5   : > { %7715 = vst [vmem:[#allocation15_spill] sm:$0xff] %v7224_v11  ;;  %v7228_v43 = vpop.f32.mrf.mxu0 }
 0x1f6   : > { %7716 = vst [vmem:[#allocation16_spill] sm:$0xff] %v7226_v34  ;;  %7717 = vst [vmem:[#allocation13_spill] sm:$0xff] %v7228_v43  ;;  %v7230_v29 = vpop.f32.mrf.mxu1 }
 0x1f7   : > { %7718 = vst [vmem:[#allocation18_spill] sm:$0xff] %v7230_v29  ;;  %v2593_v35 = vpop.f32.mrf.mxu0  ;;  %3845 = vmatmul.mubr.bf16.gmra.mxu0 %v7094_v26 }
 0x1f8   : > { %v2706_v28 = vpop.f32.mrf.mxu1  ;;  %3852 = vmatprep.mubr.bf16.mxu0 %v7111_v63  ;;  %v2594_v2 = vadd.f32 %v2593_v35, %v7102_v23  ;;  %v2384_v23 = vadd.f32 %v7132_v49, %v7098_v52  ;;  %v2495_v35 = vadd.f32 %v7128_v38, %v2382_v10  ;;  %v5739_v38 = vld [vmem:[#allocation2 + $0x2d8] ss:$12 sps:$4 sm:$0xff]  }
 0x1f9   : > { %v2595_v44 = vpop.f32.mrf.mxu0 }
 0x1fa   : > { %v2708_v56 = vpop.f32.mrf.mxu1  ;;  %v2596_v22 = vadd.f32 %v2595_v44, %v7109_v4  ;;  %v2707_v43 = vadd.f32 %v2706_v28, %v2594_v2 }
 0x1fb   : > { %v2597_v21 = vpop.f32.mrf.mxu0 }
 0x1fc   : > { %v2710_v60 = vpop.f32.mrf.mxu1  ;;  %v2598_v29 = vadd.f32 %v2597_v21, %v2485_v42  ;;  %v2709_v34 = vadd.f32 %v2708_v56, %v2596_v22 }
 0x1fd   : > { %v2599_v50 = vpop.f32.mrf.mxu0 }
 0x1fe   : > { %v2712_v26 = vpop.f32.mrf.mxu1  ;;  %v2711_v63 = vadd.f32 %v2710_v60, %v2598_v29  ;;  %v2600_v11 = vadd.f32 %v2599_v50, %v2487_v31  ;;  %v2788_v41 = vmax.f32 %v2709_v34, 0.0  ;;  %v2787_v60 = vmax.f32 %v2707_v43, 0.0 }
 0x1ff   : > { %v2603_v57 = vpop.f32.mrf.mxu0  ;;  %3853 = vmatmul.mubr.bf16.gmra.mxu0 %v7113_v9  ;;  %v2497_v9 = vadd.f32 %v7134_v8, %v2384_v23  ;;  %v2392_v34 = vadd.f32 %v7142_v59, %v7092_v27  ;;  %v5741_v59 = vld [vmem:[#allocation2 + $0x2c0] ss:$12 sps:$4 sm:$0xff]  }
 0x200   : > { %v2716_v55 = vpop.f32.mrf.mxu1  ;;  %v2713_v4 = vadd.f32 %v2712_v26, %v2600_v11  ;;  %v2791_v15 = vmax.f32 %v2711_v63, 0.0  ;;  %v2604_v50 = vadd.f32 %v2603_v57, %v7123_v51  ;;  %v5738_v11 = vld [vmem:[#allocation2 + $0x230] ss:$12 sps:$4 sm:$0xff]   ;;  %v2394_v26 = vadd.f32 %v7148_v24, %v7098_v52  ;;  %v5740_v63 = vld [vmem:[#allocation2 + $0x218] ss:$12 sps:$4 sm:$0xff]  }
 0x201   : > { %v2605_v62 = vpop.f32.mrf.mxu0 }
 0x202   : > { %v2718_v21 = vpop.f32.mrf.mxu1  ;;  %v2792_v44 = vmax.f32 %v2713_v4, 0.0  ;;  %v2606_v6 = vadd.f32 %v2605_v62, %v7130_v54  ;;  %v7253_v42 = vpack.c.bf16 %v2791_v15, %v2787_v60  ;;  %v2717_v51 = vadd.f32 %v2716_v55, %v2604_v50 }
 0x203   : > { %v2607_v29 = vpop.f32.mrf.mxu0  ;;  %v2505_v62 = vadd.f32 %v7144_v3, %v2392_v34  ;;  %v2507_v24 = vadd.f32 %v7150_v7, %v2394_v26 }
 0x204   : > { %v2720_v28 = vpop.f32.mrf.mxu1  ;;  %v7251_v56 = vpack.c.bf16 %v2792_v44, %v2788_v41  ;;  %v2608_v49 = vadd.f32 %v2607_v29, %v2495_v35  ;;  %v2719_v54 = vadd.f32 %v2718_v21, %v2606_v6  ;;  %v2795_v41 = vmax.f32 %v2717_v51, 0.0 }
 0x205   : > { %v2609_v22 = vpop.f32.mrf.mxu0 }
 0x206   : > { %v2722_v2 = vpop.f32.mrf.mxu1  ;;  %v2721_v43 = vadd.f32 %v2720_v28, %v2608_v49  ;;  %v2610_v31 = vadd.f32 %v2609_v22, %v2497_v9  ;;  %3683 = vmatprep.mubr.bf16.mxu1 %v7251_v56  ;;  %v2796_v21 = vmax.f32 %v2719_v54, 0.0  ;;  %v5742_v28 = vld [vmem:[#allocation2 + $0x200] ss:$12 sps:$4 sm:$0xff]   ;;  %v2404_v54 = vadd.f32 %v7164_v1, %v7098_v52 }
 0x207   : > { %v2613_v57 = vpop.f32.mrf.mxu0  ;;  %3684 = vmatmul.mubr.bf16.vlgmr.msra.gmra.mxu1 %v7253_v42 }
 0x208   : > { %v2726_v8 = vpop.f32.mrf.mxu1  ;;  %v2723_v10 = vadd.f32 %v2722_v2, %v2610_v31  ;;  %5008 = vmatpush3.bf16.msra.mxu1 %v5738_v11  ;;  %v2799_v23 = vmax.f32 %v2721_v43, 0.0  ;;  %v2614_v44 = vadd.f32 %v2613_v57, %v7139_v20  ;;  %v5743_v11 = vld [vmem:[#allocation2 + $0x2a8] ss:$12 sps:$4 sm:$0xff]   ;;  %v2517_v1 = vadd.f32 %v7166_v39, %v2404_v54 }
 0x209   : > { %v2615_v4 = vpop.f32.mrf.mxu0  ;;  %5009 = vmatprep.subr.bf16.mxu1 %v5739_v38  ;;  %v5744_v31 = vld [vmem:[#allocation2 + $0x1e8] ss:$12 sps:$4 sm:$0xff]  }
 0x20a   : > { %v2728_v15 = vpop.f32.mrf.mxu1  ;;  %v2800_v35 = vmax.f32 %v2723_v10, 0.0  ;;  %v2616_v55 = vadd.f32 %v2615_v4, %v7146_v16  ;;  %v7267_v9 = vpack.c.bf16 %v2799_v23, %v2795_v41  ;;  %v2402_v16 = vadd.f32 %v7158_v12, %v7092_v27  ;;  %v5745_v12 = vld [vmem:[#allocation2 + $0x290] ss:$12 sps:$4 sm:$0xff]  }
 0x20b   : > { %v2617_v6 = vpop.f32.mrf.mxu0  ;;  %v2727_v7 = vadd.f32 %v2726_v8, %v2614_v44 }
 0x20c   : > { %v2730_v60 = vpop.f32.mrf.mxu1  ;;  %v7265_v50 = vpack.c.bf16 %v2800_v35, %v2796_v21  ;;  %v2618_v29 = vadd.f32 %v2617_v6, %v2505_v62  ;;  %5010 = vmatpush3.bf16.msra.mxu1 %v5740_v63  ;;  %v2729_v22 = vadd.f32 %v2728_v15, %v2616_v55  ;;  %v2515_v10 = vadd.f32 %v7160_v30, %v2402_v16  ;;  %v5746_v55 = vld [vmem:[#allocation2 + $0x1d0] ss:$12 sps:$4 sm:$0xff]   ;;  %v5747_v6 = vld [vmem:[#allocation2 + $0x278] ss:$12 sps:$4 sm:$0xff]  }
 0x20d   : > { %v2619_v49 = vpop.f32.mrf.mxu0  ;;  %5011 = vmatprep.subr.bf16.mxu1 %v5741_v59  ;;  %v2803_v4 = vmax.f32 %v2727_v7, 0.0 }
 0x20e   : > { %v2732_v3 = vpop.f32.mrf.mxu1  ;;  %v2731_v20 = vadd.f32 %v2730_v60, %v2618_v29  ;;  %v2620_v2 = vadd.f32 %v2619_v49, %v2507_v24  ;;  %3693 = vmatprep.mubr.bf16.mxu1 %v7265_v50  ;;  %v2804_v63 = vmax.f32 %v2729_v22, 0.0  ;;  %v2414_v49 = vadd.f32 %v7180_v19, %v7098_v52 }
 0x20f   : > { %v2623_v38 = vpop.f32.mrf.mxu0  ;;  %3694 = vmatmul.mubr.bf16.gmra.mxu1 %v7267_v9 }
 0x210   : > { %v2736_v34 = vpop.f32.mrf.mxu1  ;;  %v2733_v43 = vadd.f32 %v2732_v3, %v2620_v2  ;;  %5012 = vmatpush3.bf16.msra.mxu1 %v5742_v28  ;;  %v2807_v51 = vmax.f32 %v2731_v20, 0.0  ;;  %v2624_v15 = vadd.f32 %v2623_v38, %v7155_v17  ;;  %v2527_v19 = vadd.f32 %v7182_v25, %v2414_v49 }
 0x211   : > { %v2625_v57 = vpop.f32.mrf.mxu0  ;;  %5013 = vmatprep.subr.bf16.mxu1 %v5743_v11  ;;  %v5748_v11 = vld [vmem:[#allocation2 + $0x1b8] ss:$12 sps:$4 sm:$0xff]  }
 0x212   : > { %v2738_v26 = vpop.f32.mrf.mxu1  ;;  %v2808_v23 = vmax.f32 %v2733_v43, 0.0  ;;  %v2626_v8 = vadd.f32 %v2625_v57, %v7162_v37  ;;  %v7281_v41 = vpack.c.bf16 %v2807_v51, %v2803_v4  ;;  %v2412_v37 = vadd.f32 %v7174_v46, %v7092_v27  ;;  %v5749_v46 = vld [vmem:[#allocation2 + $0x260] ss:$12 sps:$4 sm:$0xff]  }
 0x213   : > { %v2627_v59 = vpop.f32.mrf.mxu0  ;;  %v2737_v39 = vadd.f32 %v2736_v34, %v2624_v15 }
 0x214   : > { %v2740_v62 = vpop.f32.mrf.mxu1  ;;  %v7279_v21 = vpack.c.bf16 %v2808_v23, %v2804_v63  ;;  %v2628_v35 = vadd.f32 %v2627_v59, %v2515_v10  ;;  %5014 = vmatpush3.bf16.msra.mxu1 %v5744_v31  ;;  %v2739_v60 = vadd.f32 %v2738_v26, %v2626_v8  ;;  %v2525_v2 = vadd.f32 %v7176_v32, %v2412_v37  ;;  %v5751_v23 = vld [vmem:[#allocation2 + $0x248] ss:$12 sps:$4 sm:$0xff]  }
 0x215   : > { %v2629_v44 = vpop.f32.mrf.mxu0  ;;  %5015 = vmatprep.subr.bf16.mxu1 %v5745_v12  ;;  %v2811_v54 = vmax.f32 %v2737_v39, 0.0  ;;  %v5750_v12 = vld [vmem:[#allocation2 + $0x1a0] ss:$12 sps:$4 sm:$0xff]  }
 0x216   : > { %v2742_v30 = vpop.f32.mrf.mxu1  ;;  %v2741_v17 = vadd.f32 %v2740_v62, %v2628_v35  ;;  %v2630_v24 = vadd.f32 %v2629_v44, %v2517_v1  ;;  %3703 = vmatprep.mubr.bf16.mxu1 %v7279_v21  ;;  %v2812_v7 = vmax.f32 %v2739_v60, 0.0  ;;  %v2424_v62 = vadd.f32 %v7196_v13, %v7098_v52  ;;  %v5752_v35 = vld [vmem:[#allocation2 + $0x188] ss:$12 sps:$4 sm:$0xff]  }
 0x217   : > { %v2633_v29 = vpop.f32.mrf.mxu0  ;;  %3704 = vmatmul.mubr.bf16.gmra.mxu1 %v7281_v41 }
 0x218   : > { %v2746_v28 = vpop.f32.mrf.mxu1  ;;  %v2743_v3 = vadd.f32 %v2742_v30, %v2630_v24  ;;  %5016 = vmatpush3.bf16.msra.mxu1 %v5746_v55  ;;  %v2815_v16 = vmax.f32 %v2741_v17, 0.0  ;;  %v2634_v43 = vadd.f32 %v2633_v29, %v7171_v61  ;;  %v2537_v13 = vadd.f32 %v7198_v58, %v2424_v62 }
 0x219   : > { %v2635_v22 = vpop.f32.mrf.mxu0  ;;  %5017 = vmatprep.subr.bf16.mxu1 %v5747_v6  ;;  %v2434_v58 = vadd.f32 %v7212_v48, %v7098_v52 }
 0x21a   : > { %v2748_v20 = vpop.f32.mrf.mxu1  ;;  %v2816_v38 = vmax.f32 %v2743_v3, 0.0  ;;  %v2636_v34 = vadd.f32 %v2635_v22, %v7178_v45  ;;  %v7295_v10 = vpack.c.bf16 %v2815_v16, %v2811_v54  ;;  %v2422_v45 = vadd.f32 %v7190_v40, %v7092_v27 }
 0x21b   : > { %v2637_v31 = vpop.f32.mrf.mxu0  ;;  %v2747_v25 = vadd.f32 %v2746_v28, %v2634_v43 }
 0x21c   : > { %v2750_v51 = vpop.f32.mrf.mxu1  ;;  %v7293_v57 = vpack.c.bf16 %v2816_v38, %v2812_v7  ;;  %v2638_v26 = vadd.f32 %v2637_v31, %v2525_v2  ;;  %5018 = vmatpush3.bf16.msra.mxu1 %v5748_v11  ;;  %v2749_v8 = vadd.f32 %v2748_v20, %v2636_v34  ;;  %v2535_v40 = vadd.f32 %v7192_v53, %v2422_v45 }
 0x21d   : > { %v2639_v63 = vpop.f32.mrf.mxu0  ;;  %5019 = vmatprep.subr.bf16.mxu1 %v5749_v46  ;;  %v2819_v17 = vmax.f32 %v2747_v25, 0.0  ;;  %v2432_v53 = vadd.f32 %v7206_v5, %v7092_v27 }
 0x21e   : > { %v2752_v32 = vpop.f32.mrf.mxu1  ;;  %v2751_v61 = vadd.f32 %v2750_v51, %v2638_v26  ;;  %v2640_v4 = vadd.f32 %v2639_v63, %v2527_v19  ;;  %3713 = vmatprep.mubr.bf16.mxu1 %v7293_v57  ;;  %v2820_v6 = vmax.f32 %v2749_v8, 0.0 }
 0x21f   : > { %v2643_v15 = vpop.f32.mrf.mxu0  ;;  %3714 = vmatmul.mubr.bf16.gmra.mxu1 %v7295_v10  ;;  %v2545_v43 = vadd.f32 %v7208_v14, %v2432_v53  ;;  %v7719_v14 = vld [vmem:[#allocation17_spill] sm:$0xff] }
 0x220   : > { %v2756_v59 = vpop.f32.mrf.mxu1  ;;  %v2753_v1 = vadd.f32 %v2752_v32, %v2640_v4  ;;  %5020 = vmatpush3.bf16.msra.mxu1 %v5750_v12  ;;  %v2823_v55 = vmax.f32 %v2751_v61, 0.0  ;;  %v2644_v24 = vadd.f32 %v2643_v15, %v7187_v47  ;;  %v2547_v32 = vadd.f32 %v7214_v0, %v2434_v58  ;;  %v7720_v0 = vld [vmem:[#allocation13_spill] sm:$0xff] }
 0x221   : > { %v2645_v44 = vpop.f32.mrf.mxu0  ;;  %5021 = vmatprep.subr.bf16.mxu1 %v5751_v23  ;;  %v2442_v4 = vadd.f32 %v7719_v14, %v7092_v27  ;;  %v5762_v14 = vld [vmem:[#allocation5 + $0x18] sm:$0xff]  }
 0x222   : > { %v2758_v30 = vpop.f32.mrf.mxu1  ;;  %v2824_v37 = vmax.f32 %v2753_v1, 0.0  ;;  %v2646_v60 = vadd.f32 %v2645_v44, %v7194_v33  ;;  %v7309_v3 = vpack.c.bf16 %v2823_v55, %v2819_v17  ;;  %v2757_v47 = vadd.f32 %v2756_v59, %v2644_v24 }
 0x223   : > { %v2647_v39 = vpop.f32.mrf.mxu0  ;;  %v2444_v1 = vadd.f32 %v7720_v0, %v7098_v52  ;;  %v5767_v0 = vld [vmem:[#allocation5 + $0x40] sm:$0xff]  }
 0x224   : > { %v2760_v29 = vpop.f32.mrf.mxu1  ;;  %v7307_v28 = vpack.c.bf16 %v2824_v37, %v2820_v6  ;;  %v2648_v49 = vadd.f32 %v2647_v39, %v2535_v40  ;;  %5022 = vmatpush3.bf16.msra.mxu1 %v5752_v35  ;;  %v2759_v22 = vadd.f32 %v2758_v30, %v2646_v60  ;;  %v2827_v19 = vmax.f32 %v2757_v47, 0.0  ;;  %v7721_v40 = vld [vmem:[#allocation15_spill] sm:$0xff]  ;;  %v7722_v60 = vld [vmem:[#allocation16_spill] sm:$0xff]  ;;  %v7723_v39 = vld [vmem:[#allocation14_spill] sm:$0xff] }
 0x225   : > { %v2649_v11 = vpop.f32.mrf.mxu0  ;;  %v2555_v6 = vadd.f32 %v7721_v40, %v2442_v4  ;;  %v5771_v40 = vld [vmem:[#allocation5 + $0xa8] sm:$0xff]  }
 0x226   : > { %v2762_v16 = vpop.f32.mrf.mxu1  ;;  %v2761_v33 = vadd.f32 %v2760_v29, %v2648_v49  ;;  %v2650_v20 = vadd.f32 %v2649_v11, %v2537_v13  ;;  %3723 = vmatprep.mubr.bf16.mxu1 %v7307_v28  ;;  %v2828_v5 = vmax.f32 %v2759_v22, 0.0  ;;  %v5753_v11 = vld [vmem:[#allocation5 + $0x78] sm:$0xff]  }
 0x227   : > { %v2653_v46 = vpop.f32.mrf.mxu0  ;;  %3724 = vmatmul.mubr.bf16.gmra.mxu1 %v7309_v3  ;;  %5071 = vmatprep.subr.bf16.mxu0 %v5753_v11 }
 0x228   : > { %v2766_v2 = vpop.f32.mrf.mxu1  ;;  %v2763_v7 = vadd.f32 %v2762_v16, %v2650_v20  ;;  %v2831_v38 = vmax.f32 %v2761_v33, 0.0  ;;  %v2654_v26 = vadd.f32 %v2653_v46, %v7203_v36  ;;  %v7724_v16 = vld [vmem:[#allocation18_spill] sm:$0xff] }
 0x229   : > { %v2655_v34 = vpop.f32.mrf.mxu0  ;;  %v2557_v53 = vadd.f32 %v7724_v16, %v2444_v1  ;;  %v5754_v33 = vld [vmem:[#allocation5 + $0x38] sm:$0xff]  }
 0x22a   : > { %v2768_v54 = vpop.f32.mrf.mxu1  ;;  %v2832_v31 = vmax.f32 %v2763_v7, 0.0  ;;  %v2656_v51 = vadd.f32 %v2655_v34, %v7210_v18  ;;  %v7323_v45 = vpack.c.bf16 %v2831_v38, %v2827_v19  ;;  %v2767_v36 = vadd.f32 %v2766_v2, %v2654_v26  ;;  %5072 = vmatpush3.bf16.msra.mxu0 %v5754_v33  ;;  %v5755_v34 = vld [vmem:[#allocation5 + $0x70] sm:$0xff]   ;;  %v5757_v26 = vld [vmem:[#allocation5 + $0x68] sm:$0xff]  }
 0x22b   : > { %v2657_v12 = vpop.f32.mrf.mxu0  ;;  %5073 = vmatprep.subr.bf16.mxu0 %v5755_v34 }
 0x22c   : > { %v2770_v63 = vpop.f32.mrf.mxu1  ;;  %v7321_v23 = vpack.c.bf16 %v2832_v31, %v2828_v5  ;;  %v2658_v48 = vadd.f32 %v2657_v12, %v2545_v43  ;;  %v2769_v25 = vadd.f32 %v2768_v54, %v2656_v51  ;;  %v2835_v24 = vmax.f32 %v2767_v36, 0.0  ;;  %v5756_v43 = vld [vmem:[#allocation5 + $0x30] sm:$0xff]   ;;  %v5765_v36 = vld [vmem:[#allocation5 + $0x48] sm:$0xff]  }
 0x22d   : > { %v2659_v8 = vpop.f32.mrf.mxu0 }
 0x22e   : > { %v2772_v61 = vpop.f32.mrf.mxu1  ;;  %v2771_v15 = vadd.f32 %v2770_v63, %v2658_v48  ;;  %v2660_v18 = vadd.f32 %v2659_v8, %v2547_v32  ;;  %3733 = vmatprep.mubr.bf16.mxu1 %v7321_v23  ;;  %v2836_v27 = vmax.f32 %v2769_v25, 0.0  ;;  %5074 = vmatpush3.bf16.msra.mxu0 %v5756_v43  ;;  %v5758_v63 = vld [vmem:[#allocation5 + $0x28] sm:$0xff]   ;;  %v5759_v48 = vld [vmem:[#allocation5 + $0x60] sm:$0xff]   ;;  %v5763_v25 = vld [vmem:[#allocation5 + $0x50] sm:$0xff]  }
 0x22f   : > { %v2663_v59 = vpop.f32.mrf.mxu0  ;;  %3734 = vmatmul.mubr.bf16.gmra.mxu1 %v7323_v45  ;;  %5075 = vmatprep.subr.bf16.mxu0 %v5757_v26  ;;  %v5760_v8 = vld [vmem:[#allocation5 + $0x20] sm:$0xff]  }
 0x230   : > { %v2776_v62 = vpop.f32.mrf.mxu1  ;;  %v2773_v35 = vadd.f32 %v2772_v61, %v2660_v18  ;;  %v2839_v55 = vmax.f32 %v2771_v15, 0.0  ;;  %v2664_v29 = vadd.f32 %v2663_v59, %v7723_v39  ;;  %v5761_v61 = vld [vmem:[#allocation5 + $0x58] sm:$0xff]   ;;  %v5764_v15 = vld [vmem:[#allocation5 + $0x10] sm:$0xff]   ;;  %v5766_v59 = vld [vmem:[#allocation5 + $0x8] sm:$0xff]  }
 0x231   : > { %v2665_v44 = vpop.f32.mrf.mxu0 }
 0x232   : > { %v2778_v30 = vpop.f32.mrf.mxu1  ;;  %v2840_v37 = vmax.f32 %v2773_v35, 0.0  ;;  %v2666_v17 = vadd.f32 %v2665_v44, %v7722_v60  ;;  %v7337_v20 = vpack.c.bf16 %v2839_v55, %v2835_v24  ;;  %v2777_v7 = vadd.f32 %v2776_v62, %v2664_v29  ;;  %5076 = vmatpush3.bf16.msra.mxu0 %v5758_v63  ;;  %v5773_v60 = vld [vmem:[#allocation5 + $0x98] sm:$0xff]   ;;  %v5774_v24 = vld [vmem:[#allocation5 + $0x90] sm:$0xff]   ;;  %v5775_v29 = vld [vmem:[#allocation5 + $0x88] sm:$0xff]  }
 0x233   : > { %v2667_v13 = vpop.f32.mrf.mxu0  ;;  %5077 = vmatprep.subr.bf16.mxu0 %v5759_v48 }
 0x234   : > { %v2780_v49 = vpop.f32.mrf.mxu1  ;;  %v7335_v22 = vpack.c.bf16 %v2840_v37, %v2836_v27  ;;  %v2668_v52 = vadd.f32 %v2667_v13, %v2555_v6  ;;  %v2779_v46 = vadd.f32 %v2778_v30, %v2666_v17  ;;  %v2843_v19 = vmax.f32 %v2777_v7, 0.0  ;;  %v5772_v27 = vld [vmem:[#allocation5 + $0xa0] sm:$0xff]  }
 0x235   : > { %v2669_v47 = vpop.f32.mrf.mxu0  ;;  %v7424_v7 = vld [vmem:[%s7676_s4] sm:$0x7] }
 0x236   : > { %v2781_v2 = vadd.f32 %v2780_v49, %v2668_v52  ;;  %v2670_v58 = vadd.f32 %v2669_v47, %v2557_v53  ;;  %3743 = vmatprep.mubr.bf16.mxu1 %v7335_v22  ;;  %v2782_v38 = vpop.f32.mrf.mxu1  ;;  %v2844_v31 = vmax.f32 %v2779_v46, 0.0  ;;  %5078 = vmatpush3.bf16.msra.mxu0 %v5760_v8  ;;  %v5776_v49 = vld [vmem:[#allocation5 + $0x80] sm:$0xff]  }
 0x237   : > { %3744 = vmatmul.mubr.bf16.gmra.mxu1 %v7337_v20  ;;  %5079 = vmatprep.subr.bf16.mxu0 %v5761_v61 }
 0x238   : > { %v2783_v54 = vadd.f32 %v2782_v38, %v2670_v58  ;;  %v2847_v5 = vmax.f32 %v2781_v2, 0.0  ;;  %v7725_v38 = vld [vmem:[#allocation11_spill] sm:$0xff] }
 0x239   : > { %v7726_v34 = vsub.s32 1, %v7725_v38  ;;  %v7727_v43 = vsub.s32 0, %v7725_v38 }
 0x23a   : > { %v2848_v51 = vmax.f32 %v2783_v54, 0.0  ;;  %v2879_v32 = vpack.c.bf16 %v2847_v5, %v2843_v19  ;;  %5080 = vmatpush3.bf16.msra.mxu0 %v5762_v14 }
 0x23b   : > { %5081 = vmatprep.subr.bf16.mxu0 %v5763_v25  ;;  %v7429_v54 = vrot.slane %v7424_v7, %v7726_v34  ;;  %v7434_v5 = vrot.slane %v7424_v7, %v7727_v43 }
 0x23c   : > { %v2880_v12 = vpack.c.bf16 %v2848_v51, %v2844_v31 }
 0x23e   : > { %3753 = vmatprep.mubr.bf16.mxu1 %v2880_v12  ;;  %5082 = vmatpush3.bf16.msra.mxu0 %v5764_v15 }
 0x23f   : > { %3754 = vmatmul.mubr.bf16.gmra.mxu1 %v2879_v32  ;;  %5083 = vmatprep.subr.bf16.mxu0 %v5765_v36 }
 0x240   : > { %3893 = vmatprep.mubr.bf16.mxu1 %v7251_v56 }
 0x242   : > { %5084 = vmatpush3.bf16.msra.mxu0 %v5766_v59 }
 0x243   : > { %5085 = vmatprep.subr.bf16.mxu0 %v5767_v0 }
 0x247   : > { %v7342_v4 = vpop.f32.mrf.mxu0  ;;  %3894 = vmatmul.mubr.bf16.vlgmr.msra.gmra.mxu1 %v7253_v42  ;;  %v5768_v42 = vld [vmem:[#allocation5] sm:$0xff]  }
 0x248   : > { %3901 = vmatprep.mubr.bf16.mxu1 %v7265_v50  ;;  %5086 = vmatpush3.bf16.msra.mxu0 %v5768_v42  ;;  %v3573_v63 = vadd.f32 %v7342_v4, %v7434_v5 }
 0x249   : > { %v7346_v18 = vpop.f32.mrf.mxu0 }
 0x24a   : > { %v3575_v26 = vadd.f32 %v7346_v18, %v7429_v54 }
 0x24b   : > { %v7348_v56 = vpop.f32.mrf.mxu0 }
 0x24d   : > { %v7350_v62 = vpop.f32.mrf.mxu0 }
 0x24e   : > { %v3579_v8 = vadd.f32 %v7350_v62, %v7429_v54 }
 0x24f   : > { %3902 = vmatmul.mubr.bf16.gmra.mxu1 %v7267_v9  ;;  %v7354_v50 = vpop.f32.mrf.mxu0 }
 0x250   : > { %3909 = vmatprep.mubr.bf16.mxu1 %v7279_v21 }
 0x251   : > { %v7356_v1 = vpop.f32.mrf.mxu0 }
 0x252   : > { %v3585_v4 = vadd.f32 %v7356_v1, %v7429_v54 }
 0x253   : > { %v7360_v35 = vpop.f32.mrf.mxu0 }
 0x255   : > { %v7362_v55 = vpop.f32.mrf.mxu0 }
 0x257   : > { %3910 = vmatmul.mubr.bf16.gmra.mxu1 %v7281_v41  ;;  %v7366_v9 = vpop.f32.mrf.mxu0 }
 0x258   : > { %3917 = vmatprep.mubr.bf16.mxu1 %v7293_v57 }
 0x259   : > { %v7368_v21 = vpop.f32.mrf.mxu0 }
 0x25b   : > { %v7372_v44 = vpop.f32.mrf.mxu0 }
 0x25d   : > { %v7374_v41 = vpop.f32.mrf.mxu0 }
 0x25f   : > { %3918 = vmatmul.mubr.bf16.gmra.mxu1 %v7295_v10  ;;  %v7378_v57 = vpop.f32.mrf.mxu0 }
 0x260   : > { %3925 = vmatprep.mubr.bf16.mxu1 %v7307_v28  ;;  %v5769_v28 = vld [vmem:[#allocation5 + $0xb8] sm:$0xff]  }
 0x261   : > { %v7380_v10 = vpop.f32.mrf.mxu0  ;;  %5151 = vmatprep.subr.bf16.mxu1 %v5769_v28 }
 0x262   : > { %5152 = vmatpush3.bf16.msra.mxu1 %v5769_v28 }
 0x263   : > { %v7383_v30 = vpop.f32.mrf.mxu0 }
 0x267   : > { %3926 = vmatmul.mubr.bf16.gmra.mxu1 %v7309_v3  ;;  %v7385_v3 = vpop.f32.mrf.mxu0 }
 0x268   : > { %3933 = vmatprep.mubr.bf16.mxu1 %v7321_v23  ;;  %v5770_v23 = vld [vmem:[#allocation5 + $0xb0] sm:$0xff]  }
 0x269   : > { %5153 = vmatprep.subr.bf16.mxu1 %v5770_v23 }
 0x26a   : > { %5154 = vmatpush3.bf16.msra.mxu1 %v5770_v23 }
 0x26b   : > { %5155 = vmatprep.subr.bf16.mxu1 %v5771_v40 }
 0x26e   : > { %5156 = vmatpush3.bf16.msra.mxu1 %v5771_v40  ;;  %v3587_v40 = vadd.f32 %v7360_v35, %v7434_v5 }
 0x26f   : > { %3934 = vmatmul.mubr.bf16.gmra.mxu1 %v7323_v45  ;;  %v7387_v45 = vpop.f32.mrf.mxu0  ;;  %5157 = vmatprep.subr.bf16.mxu1 %v5772_v27 }
 0x270   : > { %3941 = vmatprep.mubr.bf16.mxu1 %v7335_v22 }
 0x271   : > { %v7389_v6 = vpop.f32.mrf.mxu0 }
 0x272   : > { %5158 = vmatpush3.bf16.msra.mxu1 %v5772_v27  ;;  %v3583_v27 = vadd.f32 %v7354_v50, %v7434_v5 }
 0x273   : > { %v7391_v37 = vpop.f32.mrf.mxu0  ;;  %5159 = vmatprep.subr.bf16.mxu1 %v5773_v60 }
 0x275   : > { %v7393_v17 = vpop.f32.mrf.mxu0 }
 0x276   : > { %5160 = vmatpush3.bf16.msra.mxu1 %v5773_v60 }
 0x277   : > { %3942 = vmatmul.mubr.bf16.gmra.mxu1 %v7337_v20  ;;  %5161 = vmatprep.subr.bf16.mxu1 %v5774_v24  ;;  %v7395_v39 = vpop.f32.mrf.mxu0 }
 0x278   : > { %3949 = vmatprep.mubr.bf16.mxu1 %v2880_v12  ;;  %v3577_v12 = vadd.f32 %v7348_v56, %v7434_v5 }
 0x279   : > { %v7397_v13 = vpop.f32.mrf.mxu0 }
 0x27a   : > { %5162 = vmatpush3.bf16.msra.mxu1 %v5774_v24 }
 0x27b   : > { %5163 = vmatprep.subr.bf16.mxu1 %v5775_v29  ;;  %v7399_v11 = vpop.f32.mrf.mxu0 }
 0x27d   : > { %v7401_v16 = vpop.f32.mrf.mxu0 }
 0x27e   : > { %5164 = vmatpush3.bf16.msra.mxu1 %v5775_v29 }
 0x27f   : > { %3950 = vmatmul.mubr.bf16.gmra.mxu1 %v2879_v32  ;;  %5165 = vmatprep.subr.bf16.mxu1 %v5776_v49  ;;  %v7403_v53 = vpop.f32.mrf.mxu0 }
 0x281   : > { %v7405_v22 = vpop.f32.mrf.mxu0 }
 0x282   : > { %5166 = vmatpush3.bf16.msra.mxu1 %v5776_v49  ;;  %v3589_v49 = vadd.f32 %v7362_v55, %v7429_v54  ;;  %v3597_v55 = vadd.f32 %v7372_v44, %v7434_v5 }
 0x283   : > { %v7407_v52 = vpop.f32.mrf.mxu0 }
 0x285   : > { %v7409_v33 = vpop.f32.mrf.mxu0 }
 0x287   : > { %v7411_v20 = vpop.f32.mrf.mxu0 }
 0x289   : > { %v7413_v47 = vpop.f32.mrf.mxu0 }
 0x28b   : > { %v7415_v46 = vpop.f32.mrf.mxu0 }
 0x28d   : > { %v7417_v2 = vpop.f32.mrf.mxu0 }
 0x28f   : > { %v7419_v58 = vpop.f32.mrf.mxu0 }
 0x291   : > { %v7436_v31 = vpop.f32.mrf.mxu0 }
 0x293   : > { %v7444_v32 = vpop.f32.mrf.mxu0 }
 0x295   : > { %v7448_v59 = vpop.f32.mrf.mxu0 }
 0x297   : > { %v7456_v60 = vpop.f32.mrf.mxu0 }
 0x2c7   : > { %v3685_v51 = vpop.f32.mrf.mxu1 }
 0x2c8   : > { %v3686_v25 = vadd.f32 %v3685_v51, %v3573_v63 }
 0x2c9   : > { %v3687_v19 = vpop.f32.mrf.mxu1 }
 0x2ca   : > { %v3688_v61 = vadd.f32 %v3687_v19, %v3575_v26  ;;  %v3958_v28 = vmax.f32 %v3686_v25, 0.0  ;;  %v7460_v26 = vpop.f32.mrf.mxu0  ;;  %v3593_v25 = vadd.f32 %v7366_v9, %v7434_v5 }
 0x2cb   : > { %v3689_v48 = vpop.f32.mrf.mxu1 }
 0x2cc   : > { %v3690_v14 = vadd.f32 %v3689_v48, %v3577_v12  ;;  %v3959_v42 = vmax.f32 %v3688_v61, 0.0  ;;  %v3595_v61 = vadd.f32 %v7368_v21, %v7429_v54 }
 0x2cd   : > { %v3691_v15 = vpop.f32.mrf.mxu1 }
 0x2ce   : > { %v3692_v36 = vadd.f32 %v3691_v15, %v3579_v8  ;;  %v3961_v18 = vmax.f32 %v3690_v14, 0.0  ;;  %v7468_v15 = vpop.f32.mrf.mxu0 }
 0x2cf   : > { %v3695_v0 = vpop.f32.mrf.mxu1 }
 0x2d0   : > { %v3962_v56 = vmax.f32 %v3692_v36, 0.0  ;;  %v4006_v24 = vpack.c.bf16 %v3961_v18, %v3958_v28  ;;  %v3696_v51 = vadd.f32 %v3695_v0, %v3583_v27  ;;  %v3599_v0 = vadd.f32 %v7374_v41, %v7429_v54 }
 0x2d1   : > { %v3697_v23 = vpop.f32.mrf.mxu1  ;;  %v3607_v41 = vadd.f32 %v7383_v30, %v7434_v5 }
 0x2d2   : > { %v4007_v62 = vpack.c.bf16 %v3962_v56, %v3959_v42  ;;  %v3698_v34 = vadd.f32 %v3697_v23, %v3585_v4  ;;  %v3964_v48 = vmax.f32 %v3696_v51, 0.0  ;;  %v7472_v4 = vpop.f32.mrf.mxu0 }
 0x2d3   : > { %v3699_v29 = vpop.f32.mrf.mxu1 }
 0x2d4   : > { %v3700_v43 = vadd.f32 %v3699_v29, %v3587_v40  ;;  %4261 = vmatprep.mubr.bf16.mxu0 %v4007_v62  ;;  %v3965_v63 = vmax.f32 %v3698_v34, 0.0  ;;  %v3605_v29 = vadd.f32 %v7380_v10, %v7429_v54  ;;  %v3603_v34 = vadd.f32 %v7378_v57, %v7434_v5 }
 0x2d5   : > { %v3701_v19 = vpop.f32.mrf.mxu1  ;;  %4262 = vmatmul.mubr.bf16.vlgmr.msra.gmra.mxu0 %v4006_v24 }
 0x2d6   : > { %v3702_v1 = vadd.f32 %v3701_v19, %v3589_v49  ;;  %v3967_v35 = vmax.f32 %v3700_v43, 0.0  ;;  %v7480_v43 = vpop.f32.mrf.mxu0 }
 0x2d7   : > { %v3705_v12 = vpop.f32.mrf.mxu1 }
 0x2d8   : > { %v3968_v50 = vmax.f32 %v3702_v1, 0.0  ;;  %v4009_v36 = vpack.c.bf16 %v3967_v35, %v3964_v48  ;;  %v3706_v28 = vadd.f32 %v3705_v12, %v3593_v25  ;;  %v3609_v1 = vadd.f32 %v7385_v3, %v7429_v54  ;;  %v7484_v48 = vpop.f32.mrf.mxu0 }
 0x2d9   : > { %v3707_v8 = vpop.f32.mrf.mxu1  ;;  %v3615_v25 = vadd.f32 %v7389_v6, %v7429_v54  ;;  %v3617_v3 = vadd.f32 %v7391_v37, %v7434_v5 }
 0x2da   : > { %v4010_v14 = vpack.c.bf16 %v3968_v50, %v3965_v63  ;;  %v3708_v42 = vadd.f32 %v3707_v8, %v3595_v61  ;;  %v3970_v27 = vmax.f32 %v3706_v28, 0.0  ;;  %v3619_v28 = vadd.f32 %v7393_v17, %v7429_v54 }
 0x2db   : > { %v3709_v18 = vpop.f32.mrf.mxu1  ;;  %v3627_v17 = vadd.f32 %v7399_v11, %v7434_v5 }
 0x2dc   : > { %v3710_v56 = vadd.f32 %v3709_v18, %v3597_v55  ;;  %4269 = vmatprep.mubr.bf16.mxu0 %v4010_v14  ;;  %v3971_v62 = vmax.f32 %v3708_v42, 0.0  ;;  %v3613_v18 = vadd.f32 %v7387_v45, %v7434_v5 }
 0x2dd   : > { %v3711_v23 = vpop.f32.mrf.mxu1  ;;  %4270 = vmatmul.mubr.bf16.gmra.mxu0 %v4009_v36 }
 0x2de   : > { %v3712_v21 = vadd.f32 %v3711_v23, %v3599_v0  ;;  %v3973_v44 = vmax.f32 %v3710_v56, 0.0  ;;  %v7492_v0 = vpop.f32.mrf.mxu0 }
 0x2df   : > { %v3715_v40 = vpop.f32.mrf.mxu1 }
 0x2e0   : > { %v3974_v9 = vmax.f32 %v3712_v21, 0.0  ;;  %v4012_v51 = vpack.c.bf16 %v3973_v44, %v3970_v27  ;;  %v3716_v63 = vadd.f32 %v3715_v40, %v3603_v34  ;;  %v3623_v34 = vadd.f32 %v7395_v39, %v7434_v5 }
 0x2e1   : > { %v3717_v24 = vpop.f32.mrf.mxu1 }
 0x2e2   : > { %v4013_v49 = vpack.c.bf16 %v3974_v9, %v3971_v62  ;;  %v3718_v35 = vadd.f32 %v3717_v24, %v3605_v29  ;;  %v3976_v55 = vmax.f32 %v3716_v63, 0.0  ;;  %v7496_v62 = vpop.f32.mrf.mxu0 }
 0x2e3   : > { %v3719_v19 = vpop.f32.mrf.mxu1 }
 0x2e4   : > { %v3720_v12 = vadd.f32 %v3719_v19, %v3607_v41  ;;  %4277 = vmatprep.mubr.bf16.mxu0 %v4013_v49  ;;  %v3977_v61 = vmax.f32 %v3718_v35, 0.0  ;;  %v3625_v41 = vadd.f32 %v7397_v13, %v7429_v54  ;;  %v3629_v35 = vadd.f32 %v7401_v16, %v7429_v54 }
 0x2e5   : > { %v3721_v50 = vpop.f32.mrf.mxu1  ;;  %4278 = vmatmul.mubr.bf16.gmra.mxu0 %v4012_v51  ;;  %v7504_v51 = vpop.f32.mrf.mxu0  ;;  %v3637_v16 = vadd.f32 %v7407_v52, %v7434_v5 }
 0x2e6   : > { %v3722_v10 = vadd.f32 %v3721_v50, %v3609_v1  ;;  %v3979_v30 = vmax.f32 %v3720_v12, 0.0 }
 0x2e7   : > { %v3725_v8 = vpop.f32.mrf.mxu1 }
 0x2e8   : > { %v3980_v57 = vmax.f32 %v3722_v10, 0.0  ;;  %v4015_v42 = vpack.c.bf16 %v3979_v30, %v3976_v55  ;;  %v3726_v44 = vadd.f32 %v3725_v8, %v3613_v18  ;;  %v7508_v30 = vpop.f32.mrf.mxu0 }
 0x2e9   : > { %v3727_v14 = vpop.f32.mrf.mxu1 }
 0x2ea   : > { %v4016_v36 = vpack.c.bf16 %v3980_v57, %v3977_v61  ;;  %v3728_v23 = vadd.f32 %v3727_v14, %v3615_v25  ;;  %v3982_v24 = vmax.f32 %v3726_v44, 0.0  ;;  %v3635_v14 = vadd.f32 %v7405_v22, %v7429_v54 }
 0x2eb   : > { %v3729_v56 = vpop.f32.mrf.mxu1 }
 0x2ec   : > { %v3730_v21 = vadd.f32 %v3729_v56, %v3617_v3  ;;  %4285 = vmatprep.mubr.bf16.mxu0 %v4016_v36  ;;  %v3983_v27 = vmax.f32 %v3728_v23, 0.0  ;;  %v3633_v3 = vadd.f32 %v7403_v53, %v7434_v5  ;;  %v7516_v36 = vpop.f32.mrf.mxu0  ;;  %v3639_v56 = vadd.f32 %v7409_v33, %v7429_v54 }
 0x2ed   : > { %v3731_v40 = vpop.f32.mrf.mxu1  ;;  %4286 = vmatmul.mubr.bf16.gmra.mxu0 %v4015_v42  ;;  %v3647_v33 = vadd.f32 %v7415_v46, %v7434_v5 }
 0x2ee   : > { %v3732_v6 = vadd.f32 %v3731_v40, %v3619_v28  ;;  %v3985_v37 = vmax.f32 %v3730_v21, 0.0  ;;  %v7520_v40 = vpop.f32.mrf.mxu0 }
 0x2ef   : > { %v3735_v9 = vpop.f32.mrf.mxu1 }
 0x2f0   : > { %v3986_v45 = vmax.f32 %v3732_v6, 0.0  ;;  %v4018_v19 = vpack.c.bf16 %v3985_v37, %v3982_v24  ;;  %v3736_v50 = vadd.f32 %v3735_v9, %v3623_v34  ;;  %v3649_v34 = vadd.f32 %v7417_v2, %v7429_v54 }
 0x2f1   : > { %v3737_v29 = vpop.f32.mrf.mxu1 }
 0x2f2   : > { %v4019_v49 = vpack.c.bf16 %v3986_v45, %v3983_v27  ;;  %v3738_v12 = vadd.f32 %v3737_v29, %v3625_v41  ;;  %v3988_v57 = vmax.f32 %v3736_v50, 0.0  ;;  %v3645_v45 = vadd.f32 %v7413_v47, %v7429_v54  ;;  %v7528_v41 = vpop.f32.mrf.mxu0 }
 0x2f3   : > { %v3739_v1 = vpop.f32.mrf.mxu1  ;;  %v3643_v29 = vadd.f32 %v7411_v20, %v7434_v5  ;;  %v7728_v20 = vsub.s32 2, %v7725_v38 }
 0x2f4   : > { %v3740_v63 = vadd.f32 %v3739_v1, %v3627_v17  ;;  %4293 = vmatprep.mubr.bf16.mxu0 %v4019_v49  ;;  %v3989_v61 = vmax.f32 %v3738_v12, 0.0 }
 0x2f5   : > { %v3741_v10 = vpop.f32.mrf.mxu1  ;;  %4294 = vmatmul.mubr.bf16.gmra.mxu0 %v4018_v19  ;;  %v7537_v5 = vrot.slane %v7424_v7, %v7728_v20 }
 0x2f6   : > { %v3742_v13 = vadd.f32 %v3741_v10, %v3629_v35  ;;  %v3991_v11 = vmax.f32 %v3740_v63, 0.0  ;;  %v7532_v63 = vpop.f32.mrf.mxu0  ;;  %v4961_v10 = vadd.f32 %v7436_v31, %v7419_v58 }
 0x2f7   : > { %v3745_v8 = vpop.f32.mrf.mxu1 }
 0x2f8   : > { %v3992_v39 = vmax.f32 %v3742_v13, 0.0  ;;  %v4021_v18 = vpack.c.bf16 %v3991_v11, %v3988_v57  ;;  %v3746_v21 = vadd.f32 %v3745_v8, %v3633_v3  ;;  %v4964_v8 = vadd.f32 %v7448_v59, %v7444_v32  ;;  %v7543_v57 = vpop.f32.mrf.mxu0 }
 0x2f9   : > { %v3747_v55 = vpop.f32.mrf.mxu1  ;;  %v3799_v38 = vadd.f32 %v4961_v10, %v7537_v5  ;;  %v4967_v32 = vadd.f32 %v7460_v26, %v7456_v60 }
 0x2fa   : > { %v4022_v25 = vpack.c.bf16 %v3992_v39, %v3989_v61  ;;  %v3748_v28 = vadd.f32 %v3747_v55, %v3635_v14  ;;  %v3994_v9 = vmax.f32 %v3746_v21, 0.0  ;;  %v3802_v58 = vadd.f32 %v4964_v8, %v7537_v5 }
 0x2fb   : > { %v3749_v42 = vpop.f32.mrf.mxu1 }
 0x2fc   : > { %v3750_v23 = vadd.f32 %v3749_v42, %v3637_v16  ;;  %4301 = vmatprep.mubr.bf16.mxu0 %v4022_v25  ;;  %v3995_v37 = vmax.f32 %v3748_v28, 0.0  ;;  %v4987_v25 = vpop.f32.mrf.mxu0  ;;  %v4970_v42 = vadd.f32 %v7472_v4, %v7468_v15  ;;  %v4973_v15 = vadd.f32 %v7484_v48, %v7480_v43 }
 0x2fd   : > { %v3751_v44 = vpop.f32.mrf.mxu1  ;;  %4302 = vmatmul.mubr.bf16.gmra.mxu0 %v4021_v18 }
 0x2fe   : > { %v3752_v22 = vadd.f32 %v3751_v44, %v3639_v56  ;;  %v3997_v52 = vmax.f32 %v3750_v23, 0.0  ;;  %v7551_v21 = vpop.f32.mrf.mxu0 }
 0x2ff   : > { %v3755_v6 = vpop.f32.mrf.mxu1 }
 0x300   : > { %v3998_v53 = vmax.f32 %v3752_v22, 0.0  ;;  %v4024_v17 = vpack.c.bf16 %v3997_v52, %v3994_v9  ;;  %v3756_v35 = vadd.f32 %v3755_v6, %v3643_v29  ;;  %v3807_v22 = vadd.f32 %v4967_v32, %v7537_v5  ;;  %v4990_v60 = vpop.f32.mrf.mxu0 }
 0x301   : > { %v3757_v27 = vpop.f32.mrf.mxu1 }
 0x302   : > { %v4025_v24 = vpack.c.bf16 %v3998_v53, %v3995_v37  ;;  %v3758_v19 = vadd.f32 %v3757_v27, %v3645_v45  ;;  %v4000_v13 = vmax.f32 %v3756_v35, 0.0  ;;  %v3810_v37 = vadd.f32 %v4970_v42, %v7537_v5 }
 0x303   : > { %v3759_v49 = vpop.f32.mrf.mxu1  ;;  %v4976_v45 = vadd.f32 %v7496_v62, %v7492_v0 }
 0x304   : > { %v3760_v1 = vadd.f32 %v3759_v49, %v3647_v33  ;;  %4309 = vmatprep.mubr.bf16.mxu0 %v4025_v24  ;;  %v4001_v2 = vmax.f32 %v3758_v19, 0.0 }
 0x305   : > { %v3761_v12 = vpop.f32.mrf.mxu1  ;;  %4310 = vmatmul.mubr.bf16.gmra.mxu0 %v4024_v17  ;;  %v4992_v17 = vpop.f32.mrf.mxu0  ;;  %v3818_v35 = vadd.f32 %v4976_v45, %v7537_v5 }
 0x306   : > { %v3762_v47 = vadd.f32 %v3761_v12, %v3649_v34  ;;  %v4003_v46 = vmax.f32 %v3760_v1, 0.0  ;;  %v3815_v34 = vadd.f32 %v4973_v15, %v7537_v5 }
 0x307   : > { %v5023_v50 = vpop.f32.mrf.mxu1  ;;  %v4993_v43 = vpop.f32.mrf.mxu0 }
 0x308   : > { %v4004_v54 = vmax.f32 %v3762_v47, 0.0  ;;  %v4027_v55 = vpack.c.bf16 %v4003_v46, %v4000_v13  ;;  %v4979_v46 = vadd.f32 %v7508_v30, %v7504_v51 }
 0x309   : > { %v5024_v11 = vpop.f32.mrf.mxu1 }
 0x30a   : > { %v4028_v61 = vpack.c.bf16 %v4004_v54, %v4001_v2  ;;  %v5025_v39 = vadd.f32 %v5024_v11, %v5023_v50  ;;  %v4982_v50 = vadd.f32 %v7520_v40, %v7516_v36  ;;  %v4995_v54 = vpop.f32.mrf.mxu0  ;;  %v3823_v11 = vadd.f32 %v4979_v46, %v7537_v5 }
 0x30b   : > { %v5026_v14 = vpop.f32.mrf.mxu1 }
 0x30c   : > { %4317 = vmatprep.mubr.bf16.mxu0 %v4028_v61  ;;  %v3896_v31 = vadd.f32 %v5025_v39, %v3799_v38  ;;  %v3826_v39 = vadd.f32 %v4982_v50, %v7537_v5  ;;  %v4996_v51 = vpop.f32.mrf.mxu0  ;;  %v4985_v38 = vadd.f32 %v7532_v63, %v7528_v41  ;;  %v4991_v63 = vadd.f32 %v4990_v60, %v7551_v21 }
 0x30d   : > { %v5027_v7 = vpop.f32.mrf.mxu1  ;;  %4318 = vmatmul.mubr.bf16.gmra.mxu0 %v4027_v55  ;;  %v4997_v21 = vadd.f32 %v4996_v51, %v4995_v54 }
 0x30e   : > { %v5028_v16 = vadd.f32 %v5027_v7, %v5026_v14  ;;  %v3960_v56 = vmax.f32 %v3896_v31, 0.0  ;;  %v4988_v7 = vadd.f32 %v4987_v25, %v7543_v57  ;;  %v4994_v25 = vadd.f32 %v4993_v43, %v4992_v17 }
 0x30f   : > { %v5029_v3 = vpop.f32.mrf.mxu1 }
 0x310   : > { %v3899_v59 = vadd.f32 %v5028_v16, %v3802_v58 }
 0x311   : > { %v5030_v18 = vpop.f32.mrf.mxu1 }
 0x312   : > { %v3963_v28 = vmax.f32 %v3899_v59, 0.0  ;;  %v5031_v23 = vadd.f32 %v5030_v18, %v5029_v3  ;;  %v4998_v3 = vpop.f32.mrf.mxu0  ;;  %v3831_v59 = vadd.f32 %v4985_v38, %v7537_v5 }
 0x313   : > { %v5032_v44 = vpop.f32.mrf.mxu1 }
 0x314   : > { %v4008_v52 = vpack.c.bf16 %v3963_v28, %v3960_v56  ;;  %v3904_v53 = vadd.f32 %v5031_v23, %v3807_v22  ;;  %v3834_v56 = vadd.f32 %v4988_v7, %v7537_v5 }
 0x315   : > { %v5033_v6 = vpop.f32.mrf.mxu1 }
 0x316   : > { %v5034_v9 = vadd.f32 %v5033_v6, %v5032_v44  ;;  %5167 = vmatprep.mubr.bf16.mxu1 %v4008_v52  ;;  %v3966_v33 = vmax.f32 %v3904_v53, 0.0  ;;  %v4999_v44 = vpop.f32.mrf.mxu0 }
 0x317   : > { %v5035_v26 = vpop.f32.mrf.mxu1  ;;  %v5000_v17 = vadd.f32 %v4999_v44, %v4998_v3 }
 0x318   : > { %v3907_v4 = vadd.f32 %v5034_v9, %v3810_v37  ;;  %v5001_v53 = vpop.f32.mrf.mxu0 }
 0x319   : > { %v5036_v27 = vpop.f32.mrf.mxu1  ;;  %v3850_v46 = vadd.f32 %v5000_v17, %v7537_v5 }
 0x31a   : > { %v3969_v24 = vmax.f32 %v3907_v4, 0.0  ;;  %v5037_v29 = vadd.f32 %v5036_v27, %v5035_v26  ;;  %v3839_v26 = vadd.f32 %v4991_v63, %v7537_v5  ;;  %v3842_v27 = vadd.f32 %v4994_v25, %v7537_v5 }
 0x31b   : > { %v5038_v49 = vpop.f32.mrf.mxu1 }
 0x31c   : > { %v4011_v19 = vpack.c.bf16 %v3969_v24, %v3966_v33  ;;  %v3912_v12 = vadd.f32 %v5037_v29, %v3815_v34  ;;  %v5002_v24 = vpop.f32.mrf.mxu0 }
 0x31d   : > { %v5039_v1 = vpop.f32.mrf.mxu1 }
 0x31e   : > { %v5040_v47 = vadd.f32 %v5039_v1, %v5038_v49  ;;  %5168 = vmatmul.mubr.bf16.vlgmr.msra.gmra.mxu1 %v4011_v19  ;;  %v3972_v20 = vmax.f32 %v3912_v12, 0.0 }
 0x31f   : > { %v5041_v48 = vpop.f32.mrf.mxu1 }
 0x320   : > { %v3915_v0 = vadd.f32 %v5040_v47, %v3818_v35  ;;  %v5004_v35 = vpop.f32.mrf.mxu0  ;;  %v3847_v47 = vadd.f32 %v4997_v21, %v7537_v5 }
 0x321   : > { %v5042_v62 = vpop.f32.mrf.mxu1 }
 0x322   : > { %v3975_v10 = vmax.f32 %v3915_v0, 0.0  ;;  %v5043_v2 = vadd.f32 %v5042_v62, %v5041_v48  ;;  %v5005_v50 = vpop.f32.mrf.mxu0 }
 0x323   : > { %v5044_v13 = vpop.f32.mrf.mxu1 }
 0x324   : > { %v4014_v8 = vpack.c.bf16 %v3975_v10, %v3972_v20  ;;  %v3920_v55 = vadd.f32 %v5043_v2, %v3823_v11  ;;  %v5003_v10 = vadd.f32 %v5002_v24, %v5001_v53 }
 0x325   : > { %v5045_v61 = vpop.f32.mrf.mxu1 }
 0x326   : > { %v5046_v14 = vadd.f32 %v5045_v61, %v5044_v13  ;;  %5171 = vmatprep.mubr.bf16.mxu1 %v4014_v8  ;;  %v3978_v58 = vmax.f32 %v3920_v55, 0.0  ;;  %v5006_v13 = vadd.f32 %v5005_v50, %v5004_v35  ;;  %v3855_v55 = vadd.f32 %v5003_v10, %v7537_v5 }
 0x327   : > { %v5047_v30 = vpop.f32.mrf.mxu1 }
 0x328   : > { %v3923_v36 = vadd.f32 %v5046_v14, %v3826_v39 }
 0x329   : > { %v5048_v40 = vpop.f32.mrf.mxu1 }
 0x32a   : > { %v3981_v31 = vmax.f32 %v3923_v36, 0.0  ;;  %v5049_v16 = vadd.f32 %v5048_v40, %v5047_v30  ;;  %v3858_v30 = vadd.f32 %v5006_v13, %v7537_v5 }
 0x32b   : > { %v5050_v32 = vpop.f32.mrf.mxu1 }
 0x32c   : > { %v4017_v18 = vpack.c.bf16 %v3981_v31, %v3978_v58  ;;  %v3928_v28 = vadd.f32 %v5049_v16, %v3831_v59 }
 0x32d   : > { %v5051_v42 = vpop.f32.mrf.mxu1 }
 0x32e   : > { %v5052_v23 = vadd.f32 %v5051_v42, %v5050_v32  ;;  %5172 = vmatmul.mubr.bf16.gmra.mxu1 %v4017_v18  ;;  %v3984_v52 = vmax.f32 %v3928_v28, 0.0 }
 0x32f   : > { %v5053_v41 = vpop.f32.mrf.mxu1 }
 0x330   : > { %v3931_v22 = vadd.f32 %v5052_v23, %v3834_v56 }
 0x331   : > { %v5054_v57 = vpop.f32.mrf.mxu1 }
 0x332   : > { %v3987_v6 = vmax.f32 %v3931_v22, 0.0  ;;  %v5055_v37 = vadd.f32 %v5054_v57, %v5053_v41 }
 0x333   : > { %v5056_v9 = vpop.f32.mrf.mxu1 }
 0x334   : > { %v4020_v15 = vpack.c.bf16 %v3987_v6, %v3984_v52  ;;  %v3936_v45 = vadd.f32 %v5055_v37, %v3839_v26 }
 0x335   : > { %v5057_v4 = vpop.f32.mrf.mxu1 }
 0x336   : > { %v5058_v33 = vadd.f32 %v5057_v4, %v5056_v9  ;;  %5175 = vmatprep.mubr.bf16.mxu1 %v4020_v15  ;;  %v3990_v34 = vmax.f32 %v3936_v45, 0.0  ;;  %v7585_v15 = vld [vmem:[%s7678_s6] ss:$0 sm:$0xff] }
 0x337   : > { %v5059_v29 = vpop.f32.mrf.mxu1 }
 0x338   : > { %v3939_v60 = vadd.f32 %v5058_v33, %v3842_v27 }
 0x339   : > { %v5060_v49 = vpop.f32.mrf.mxu1 }
 0x33a   : > { %v3993_v19 = vmax.f32 %v3939_v60, 0.0  ;;  %v5061_v1 = vadd.f32 %v5060_v49, %v5059_v29 }
 0x33b   : > { %v5062_v12 = vpop.f32.mrf.mxu1 }
 0x33c   : > { %v4023_v43 = vpack.c.bf16 %v3993_v19, %v3990_v34  ;;  %v3944_v0 = vadd.f32 %v5061_v1, %v3847_v47 }
 0x33d   : > { %v5063_v48 = vpop.f32.mrf.mxu1 }
 0x33e   : > { %v5064_v62 = vadd.f32 %v5063_v48, %v5062_v12  ;;  %5176 = vmatmul.mubr.bf16.gmra.mxu1 %v4023_v43  ;;  %v3996_v11 = vmax.f32 %v3944_v0, 0.0 }
 0x33f   : > { %v5065_v20 = vpop.f32.mrf.mxu1 }
 0x340   : > { %v3947_v2 = vadd.f32 %v5064_v62, %v3850_v46 }
 0x341   : > { %v5066_v54 = vpop.f32.mrf.mxu1 }
 0x342   : > { %v3999_v8 = vmax.f32 %v3947_v2, 0.0  ;;  %v5067_v61 = vadd.f32 %v5066_v54, %v5065_v20 }
 0x343   : > { %v5068_v39 = vpop.f32.mrf.mxu1 }
 0x344   : > { %v4026_v14 = vpack.c.bf16 %v3999_v8, %v3996_v11  ;;  %v3952_v38 = vadd.f32 %v5067_v61, %v3855_v55 }
 0x345   : > { %v5069_v51 = vpop.f32.mrf.mxu1 }
 0x346   : > { %v5070_v36 = vadd.f32 %v5069_v51, %v5068_v39  ;;  %5179 = vmatprep.mubr.bf16.mxu1 %v4026_v14  ;;  %v4002_v7 = vmax.f32 %v3952_v38, 0.0 }
 0x348   : > { %v3955_v40 = vadd.f32 %v5070_v36, %v3858_v30 }
 0x34a   : > { %v4005_v58 = vmax.f32 %v3955_v40, 0.0 }
 0x34c   : > { %v4029_v31 = vpack.c.bf16 %v4005_v58, %v4002_v7 }
 0x34e   : > { %5180 = vmatmul.mubr.bf16.gmra.mxu1 %v4029_v31 }
 0x395   : > { %v5087_v16 = vpop.f32.mrf.mxu0 }
 0x397   : > { %v5088_v3 = vpop.f32.mrf.mxu0 }
 0x398   : > { %v5089_v26 = vadd.f32 %v5088_v3, %v5087_v16 }
 0x399   : > { %v5090_v32 = vpop.f32.mrf.mxu0 }
 0x39a   : > { %v4264_v21 = vadd.f32 %v5089_v26, %v7585_v15 }
 0x39b   : > { %v5091_v59 = vpop.f32.mrf.mxu0 }
 0x39c   : > { %v5092_v24 = vadd.f32 %v5091_v59, %v5090_v32 }
 0x39d   : > { %v5093_v18 = vpop.f32.mrf.mxu0 }
 0x39e   : > { %v4267_v35 = vadd.f32 %v5092_v24, %v7585_v15 }
 0x39f   : > { %v5094_v42 = vpop.f32.mrf.mxu0 }
 0x3a0   : > { %v5095_v53 = vadd.f32 %v5094_v42, %v5093_v18 }
 0x3a1   : > { %v5096_v56 = vpop.f32.mrf.mxu0 }
 0x3a2   : > { %v4272_v27 = vadd.f32 %v5095_v53, %v7585_v15 }
 0x3a3   : > { %v5097_v28 = vpop.f32.mrf.mxu0 }
 0x3a4   : > { %v5098_v4 = vadd.f32 %v5097_v28, %v5096_v56 }
 0x3a5   : > { %v5099_v23 = vpop.f32.mrf.mxu0 }
 0x3a6   : > { %v4275_v17 = vadd.f32 %v5098_v4, %v7585_v15 }
 0x3a7   : > { %v5100_v5 = vpop.f32.mrf.mxu0 }
 0x3a8   : > { %v5101_v0 = vadd.f32 %v5100_v5, %v5099_v23 }
 0x3a9   : > { %v5102_v44 = vpop.f32.mrf.mxu0 }
 0x3aa   : > { %v4280_v13 = vadd.f32 %v5101_v0, %v7585_v15 }
 0x3ab   : > { %v5103_v41 = vpop.f32.mrf.mxu0 }
 0x3ac   : > { %v5104_v2 = vadd.f32 %v5103_v41, %v5102_v44 }
 0x3ad   : > { %v5105_v63 = vpop.f32.mrf.mxu0 }
 0x3ae   : > { %v4283_v51 = vadd.f32 %v5104_v2, %v7585_v15 }
 0x3af   : > { %v5106_v22 = vpop.f32.mrf.mxu0 }
 0x3b0   : > { %v5107_v48 = vadd.f32 %v5106_v22, %v5105_v63 }
 0x3b1   : > { %v5108_v57 = vpop.f32.mrf.mxu0 }
 0x3b2   : > { %v4288_v50 = vadd.f32 %v5107_v48, %v7585_v15 }
 0x3b3   : > { %v5109_v25 = vpop.f32.mrf.mxu0 }
 0x3b4   : > { %v5110_v62 = vadd.f32 %v5109_v25, %v5108_v57 }
 0x3b5   : > { %v5111_v52 = vpop.f32.mrf.mxu0 }
 0x3b6   : > { %v4291_v61 = vadd.f32 %v5110_v62, %v7585_v15 }
 0x3b7   : > { %v5112_v6 = vpop.f32.mrf.mxu0 }
 0x3b8   : > { %v5113_v58 = vadd.f32 %v5112_v6, %v5111_v52 }
 0x3b9   : > { %v5114_v37 = vpop.f32.mrf.mxu0 }
 0x3ba   : > { %v4296_v42 = vadd.f32 %v5113_v58, %v7585_v15 }
 0x3bb   : > { %v5115_v9 = vpop.f32.mrf.mxu0 }
 0x3bc   : > { %v5116_v59 = vadd.f32 %v5115_v9, %v5114_v37 }
 0x3bd   : > { %v5117_v45 = vpop.f32.mrf.mxu0 }
 0x3be   : > { %v4299_v63 = vadd.f32 %v5116_v59, %v7585_v15 }
 0x3bf   : > { %v5118_v34 = vpop.f32.mrf.mxu0 }
 0x3c0   : > { %v5119_v40 = vadd.f32 %v5118_v34, %v5117_v45 }
 0x3c1   : > { %v5120_v43 = vpop.f32.mrf.mxu0 }
 0x3c2   : > { %v4304_v16 = vadd.f32 %v5119_v40, %v7585_v15 }
 0x3c3   : > { %v5121_v46 = vpop.f32.mrf.mxu0 }
 0x3c4   : > { %v5122_v31 = vadd.f32 %v5121_v46, %v5120_v43 }
 0x3c5   : > { %v5123_v20 = vpop.f32.mrf.mxu0 }
 0x3c6   : > { %v4307_v23 = vadd.f32 %v5122_v31, %v7585_v15 }
 0x3c7   : > { %v5124_v39 = vpop.f32.mrf.mxu0 }
 0x3c8   : > { %v5125_v37 = vadd.f32 %v5124_v39, %v5123_v20 }
 0x3c9   : > { %v5126_v36 = vpop.f32.mrf.mxu0 }
 0x3ca   : > { %v4312_v45 = vadd.f32 %v5125_v37, %v7585_v15 }
 0x3cb   : > { %v5127_v7 = vpop.f32.mrf.mxu0 }
 0x3cc   : > { %v5128_v4 = vadd.f32 %v5127_v7, %v5126_v36 }
 0x3cd   : > { %v5129_v3 = vpop.f32.mrf.mxu0 }
 0x3cf   : > { %v5130_v5 = vpop.f32.mrf.mxu0 }
 0x3d0   : > { %v5131_v52 = vadd.f32 %v5130_v5, %v5129_v3 }
 0x3d1   : > { %v5132_v25 = vpop.f32.mrf.mxu0 }
 0x3d2   : > { %v4320_v9 = vadd.f32 %v5131_v52, %v7585_v15 }
 0x3d3   : > { %v5133_v6 = vpop.f32.mrf.mxu0 }
 0x3d4   : > { %v5134_v53 = vadd.f32 %v5133_v6, %v5132_v25 }
 0x3de   : > { %v5169_v33 = vpop.f32.mrf.mxu1 }
 0x3df   : > { %v4369_v29 = vadd.f32 %v5169_v33, %v4272_v27 }
 0x3e0   : > { %v4360_v60 = vpop.f32.mrf.mxu1 }
 0x3e1   : > { %4425 = vst [vmem:[%s7589_s29 + $0x10] sm:$0xff] %v4369_v29  ;;  %v4361_v49 = vadd.f32 %v4360_v60, %v4264_v21  ;;  %v4323_v29 = vadd.f32 %v5134_v53, %v7585_v15 }
 0x3e2   : > { %v5170_v19 = vpop.f32.mrf.mxu1 }
 0x3e3   : > { %4423 = vst [vmem:[%s7589_s29] sm:$0xff] %v4361_v49  ;;  %v4372_v1 = vadd.f32 %v5170_v19, %v4275_v17  ;;  %v4315_v49 = vadd.f32 %v5128_v4, %v7585_v15 }
 0x3e4   : > { %v4363_v12 = vpop.f32.mrf.mxu1 }
 0x3e5   : > { %4426 = vst [vmem:[%s7589_s29 + $0x18] sm:$0xff] %v4372_v1  ;;  %v4364_v47 = vadd.f32 %v4363_v12, %v4267_v35 }
 0x3e7   : > { %4424 = vst [vmem:[%s7589_s29 + $0x8] sm:$0xff] %v4364_v47 }
 0x3ee   : > { %v5173_v10 = vpop.f32.mrf.mxu1 }
 0x3ef   : > { %v4385_v54 = vadd.f32 %v5173_v10, %v4288_v50 }
 0x3f0   : > { %v4376_v11 = vpop.f32.mrf.mxu1 }
 0x3f1   : > { %4429 = vst [vmem:[%s7589_s29 + $0x30] sm:$0xff] %v4385_v54  ;;  %v4377_v8 = vadd.f32 %v4376_v11, %v4280_v13 }
 0x3f2   : > { %v5174_v55 = vpop.f32.mrf.mxu1 }
 0x3f3   : > { %4427 = vst [vmem:[%s7589_s29 + $0x20] sm:$0xff] %v4377_v8  ;;  %v4388_v14 = vadd.f32 %v5174_v55, %v4291_v61 }
 0x3f4   : > { %v4379_v30 = vpop.f32.mrf.mxu1 }
 0x3f5   : > { %4430 = vst [vmem:[%s7589_s29 + $0x38] sm:$0xff] %v4388_v14  ;;  %v4380_v38 = vadd.f32 %v4379_v30, %v4283_v51 }
 0x3f7   : > { %4428 = vst [vmem:[%s7589_s29 + $0x28] sm:$0xff] %v4380_v38 }
 0x3fe   : > { %v5177_v32 = vpop.f32.mrf.mxu1 }
 0x3ff   : > { %v4401_v18 = vadd.f32 %v5177_v32, %v4304_v16 }
 0x400   : > { %v4392_v56 = vpop.f32.mrf.mxu1 }
 0x401   : > { %4433 = vst [vmem:[%s7589_s29 + $0x50] sm:$0xff] %v4401_v18  ;;  %v4393_v28 = vadd.f32 %v4392_v56, %v4296_v42 }
 0x402   : > { %v5178_v44 = vpop.f32.mrf.mxu1 }
 0x403   : > { %4431 = vst [vmem:[%s7589_s29 + $0x40] sm:$0xff] %v4393_v28  ;;  %v4404_v41 = vadd.f32 %v5178_v44, %v4307_v23 }
 0x404   : > { %v4395_v22 = vpop.f32.mrf.mxu1 }
 0x405   : > { %4434 = vst [vmem:[%s7589_s29 + $0x58] sm:$0xff] %v4404_v41  ;;  %v4396_v57 = vadd.f32 %v4395_v22, %v4299_v63 }
 0x407   : > { %4432 = vst [vmem:[%s7589_s29 + $0x48] sm:$0xff] %v4396_v57 }
 0x40e   : > { %v5181_v26 = vpop.f32.mrf.mxu1 }
 0x40f   : > { %v4417_v27 = vadd.f32 %v5181_v26, %v4320_v9 }
 0x410   : > { %v4408_v33 = vpop.f32.mrf.mxu1 }
 0x411   : > { %4437 = vst [vmem:[%s7589_s29 + $0x70] sm:$0xff] %v4417_v27  ;;  %v4409_v24 = vadd.f32 %v4408_v33, %v4312_v45 }
 0x412   : > { %v5182_v21 = vpop.f32.mrf.mxu1 }
 0x413   : > { %4435 = vst [vmem:[%s7589_s29 + $0x60] sm:$0xff] %v4409_v24  ;;  %v4420_v60 = vadd.f32 %v5182_v21, %v4323_v29 }
 0x414   : > { %v4411_v17 = vpop.f32.mrf.mxu1 }
 0x415   : > { %4438 = vst [vmem:[%s7589_s29 + $0x78] sm:$0xff] %v4420_v60  ;;  %v4412_v34 = vadd.f32 %v4411_v17, %v4315_v49 }
 0x417   : > { %4436 = vst [vmem:[%s7589_s29 + $0x68] sm:$0xff] %v4412_v34 }
 0x418   : > { %5887 = shalt.err (!%p5884_p3)
}
 0x419   : > { %s5888_s21 = scalar_lea.hbm %s7624_s16, 2048  ;;  %s5892_s23 = scalar_lea.hbm %s7679_s7, 4096 }
 0x41a   : > { %p5889_p2 = scmp.ne.s32.totalorder %s7624_s16, %s5888_s21  ;;  %p5893_p6 = scmp.lt.s32.totalorder %s7624_s16, %s7679_s7 }
 0x41b   : > { %p5894_p9 = scmp.lt.s32.totalorder %s5892_s23, %s5888_s21 }
 0x41c   : > { %p5890_p4 = pnand %p5889_p2, %p6032_p5 }
 0x41d   : > { %p5895_p10 = por %p5894_p9, %p5893_p6 }
 0x41e   : > { %p5891_p13 = pneg %p5890_p4 }
 0x420   : > { %p5896_p12 = pnand %p5895_p10, %p5891_p13 }
 0x422   : > { %5899 = shalt.err (!%p5896_p12)
}
 0x423   : > { %s5952_s14 = smov 128   ;;  %s5953_s17 = smov 8  }
 0x424   : > { %5192 = dma.vmem_to_hbm [thread:$0]  (%p6032_p5), %s7626_s8, 2048, %s7624_s16, %s7632_s28, %s5952_s14, %s5952_s14, %s5953_s17  }
 0x425 PF: > { %p5209_p7 = scmp.ge.s32.totalorder %s5942_s27, 2  ;;  %s4468_s18 = sand.u32 1, %s5930_s24  }
 0x426   : > { %p7729_p8 = scmp.ne.s32.totalorder %s7690_s12, 0  ;;  %s4469_s19 = scalar_lea.sflag [#allocation4], %s4468_s18 }
 0x428   : > { %p5202_p11 = pnand %p5209_p7, %p7729_p8 }
 0x42a   : > { %p5203_p0 = pneg %p5202_p11 }
 0x42c   : > { %5925 = dma.done.wait (%p5203_p0), %s4469_s19, 2048  }
 0x42d   : > { %5927 = vsyncadd (%p5203_p0), %s4469_s19, 4294965248  ;;  %p19_p1 = scmp.ge.s32.totalorder %s6019_s30, 4   ;;  %s7730_s24 = smov %s5934_s25 }
 0x42e   : > { %s7731_s25 = smov %s5938_s26  ;;  %s7732_s26 = smov %s6030_s10 }
 0x42f   : > { %s7733_s27 = smov %s6019_s30  ;;  %21 = sbr.rel (!%p19_p1) target bundleno = 5 (0x5), region = 92 }
 0x434   :  { %4474 = vsyncpa [#allocation3], 1 }
 0x435   :  { %4476 = vsyncpa [#allocation3 + $0x1], 1 }
 0x436   :  { %4477 = vsyncpa [#allocation6], 1 }
 0x437   :  { %4478 = vsyncpa [#allocation4], 1 }
 0x438   :  { %4480 = vsyncpa [#allocation4 + $0x1], 1 }

</bundles_post_ra>
